<compile_context>
chip_gen: v7x
topology: tpu7x:2x2x1
jax: 0.10.0
libtpu: 0.0.40
codegen_flags: <defaults>
</compile_context>

<pallas_src>
import jax
import jax.numpy as jnp
from jax.experimental import pallas as pl
from jax.experimental.pallas import tpu as pltpu

INPUT_SIZE = 16      # small stand-in for the module's 128 (must be divisible by 8)
NUM_CLASSES = 10
BATCH = 2


# ----------------------------------------------------------------------------
# fused features kernel: 3 x (conv3x3 "same" + bias + ReLU + maxpool 2x2)
# ----------------------------------------------------------------------------
def _conv3x3_relu_pool2(xpad, w, b, H, W, Cin, Cout):
    """xpad: (H+2, W+2, Cin) bf16 zero-padded; w: (9*Cin, Cout) bf16;
    b: (1, Cout) f32.  Returns (H//2, W//2, Cout) f32."""
    # im2col: build one (H*W, 9*Cin) patch matrix -> single deep-K MXU matmul.
    cols = [xpad[ky:ky + H, kx:kx + W, :].reshape(H * W, Cin)
            for ky in range(3) for kx in range(3)]
    patches = jnp.concatenate(cols, axis=-1)                       # (H*W, 9*Cin)
    acc = jnp.dot(patches, w, preferred_element_type=jnp.float32)  # f32 accum
    acc = jnp.maximum(acc + b, 0.0)                                # bias + ReLU (f32)
    Ho, Wo = H // 2, W // 2
    y = acc.reshape(Ho, 2, Wo, 2, Cout)
    y = jnp.maximum(y[:, 0], y[:, 1])                              # pool rows (VPU)
    y = jnp.maximum(y[:, :, 0], y[:, :, 1])                        # pool cols (VPU)
    return y                                                       # (Ho, Wo, Cout)


def features_kernel(xp_ref, w1_ref, b1_ref, w2_ref, b2_ref, w3_ref, b3_ref,
                    o_ref, a1_ref, a2_ref):
    # xp_ref : (1, S+2, S+2, 3)  bf16, zero-padded NHWC input for one image
    # w*_ref : (9*Cin, Cout)     bf16 im2col-flattened conv weights
    # b*_ref : (1, Cout)         f32 biases
    # o_ref  : (1, S/8, (S/8)*128) bf16, lane-dense NHWC-flattened features
    # a1_ref / a2_ref: VMEM scratch holding the zero-padded inputs of layers 2/3
    S = xp_ref.shape[1] - 2
    S2, S4, S8 = S // 2, S // 4, S // 8

    # layer 1: (S, S, 3) -> (S2, S2, 32), written into padded VMEM scratch
    y1 = _conv3x3_relu_pool2(xp_ref[0], w1_ref[...], b1_ref[...], S, S, 3, 32)
    a1_ref[...] = jnp.zeros_like(a1_ref)
    a1_ref[1:S2 + 1, 1:S2 + 1, :] = y1.astype(a1_ref.dtype)

    # layer 2: (S2, S2, 32) -> (S4, S4, 64)
    y2 = _conv3x3_relu_pool2(a1_ref[...], w2_ref[...], b2_ref[...],
                             S2, S2, 32, 64)
    a2_ref[...] = jnp.zeros_like(a2_ref)
    a2_ref[1:S4 + 1, 1:S4 + 1, :] = y2.astype(a2_ref.dtype)

    # layer 3: (S4, S4, 64) -> (S8, S8, 128); lane-dense store (last dim % 128 == 0)
    y3 = _conv3x3_relu_pool2(a2_ref[...], w3_ref[...], b3_ref[...],
                             S4, S4, 64, 128)
    o_ref[0] = y3.reshape(S8, S8 * 128).astype(o_ref.dtype)


def features_forward(xp, p):
    """xp: (B, S+2, S+2, 3) bf16 zero-padded NHWC -> (B, S//8, (S//8)*128) bf16."""
    B = xp.shape[0]
    S = xp.shape[1] - 2
    S2, S4, S8 = S // 2, S // 4, S // 8
    return pl.pallas_call(
        features_kernel,
        out_shape=jax.ShapeDtypeStruct((B, S8, S8 * 128), jnp.bfloat16),
        grid=(B,),
        in_specs=[
            pl.BlockSpec((1, S + 2, S + 2, 3), lambda b: (b, 0, 0, 0)),
            pl.BlockSpec(p["c1_w"].shape, lambda b: (0, 0)),
            pl.BlockSpec(p["c1_b"].shape, lambda b: (0, 0)),
            pl.BlockSpec(p["c2_w"].shape, lambda b: (0, 0)),
            pl.BlockSpec(p["c2_b"].shape, lambda b: (0, 0)),
            pl.BlockSpec(p["c3_w"].shape, lambda b: (0, 0)),
            pl.BlockSpec(p["c3_b"].shape, lambda b: (0, 0)),
        ],
        out_specs=pl.BlockSpec((1, S8, S8 * 128), lambda b: (b, 0, 0)),
        scratch_shapes=[
            pltpu.VMEM((S2 + 2, S2 + 2, 32), jnp.bfloat16),   # padded layer-2 input
            pltpu.VMEM((S4 + 2, S4 + 2, 64), jnp.bfloat16),   # padded layer-3 input
        ],
        compiler_params=pltpu.CompilerParams(
            dimension_semantics=("parallel",)),
    )(xp, p["c1_w"], p["c1_b"], p["c2_w"], p["c2_b"], p["c3_w"], p["c3_b"])


# ----------------------------------------------------------------------------
# classifier: Linear(K->256) -> ReLU -> (Dropout=identity) -> Linear(256->10)
# K-tiled over the flat dimension with an f32 VMEM accumulator.
# ----------------------------------------------------------------------------
def classifier_kernel(x_ref, w1_ref, b1_ref, w2_ref, b2_ref, o_ref, acc_ref):
    k = pl.program_id(0)

    @pl.when(k == 0)
    def _():
        acc_ref[...] = jnp.zeros_like(acc_ref)

    acc_ref[...] += jnp.dot(x_ref[...], w1_ref[...],
                            preferred_element_type=jnp.float32)

    @pl.when(k == pl.num_programs(0) - 1)
    def _():
        h = jnp.maximum(acc_ref[...] + b1_ref[...], 0.0)   # bias + ReLU in f32
        # TODO(synk): nn.Dropout(0.3) is implemented as identity (inference
        # semantics); training-mode stochastic masking omitted.
        y = jnp.dot(h.astype(w2_ref.dtype), w2_ref[...],
                    preferred_element_type=jnp.float32) + b2_ref[...]
        o_ref[...] = y.astype(o_ref.dtype)


def classifier_forward(x, p):
    """x: (B, K) bf16 flattened features -> (B, NUM_CLASSES) f32 logits."""
    B, K = x.shape
    H1 = p["l1_w"].shape[1]
    n_out = p["l2_w"].shape[1]
    # largest 128-multiple K-tile (<= 2048) dividing K, with >= 2 grid steps
    # when possible -> bounded VMEM per step and a pipelined weight DMA.
    tk = K
    for t in (2048, 1024, 512, 256, 128):
        if t < K and K % t == 0:
            tk = t
            break
    return pl.pallas_call(
        classifier_kernel,
        out_shape=jax.ShapeDtypeStruct((B, n_out), jnp.float32),
        grid=(K // tk,),
        in_specs=[
            pl.BlockSpec((B, tk), lambda k: (0, k)),
            pl.BlockSpec((tk, H1), lambda k: (k, 0)),
            pl.BlockSpec((1, H1), lambda k: (0, 0)),
            pl.BlockSpec((H1, n_out), lambda k: (0, 0)),
            pl.BlockSpec((1, n_out), lambda k: (0, 0)),
        ],
        out_specs=pl.BlockSpec((B, n_out), lambda k: (0, 0)),
        scratch_shapes=[pltpu.VMEM((B, H1), jnp.float32)],
        compiler_params=pltpu.CompilerParams(
            dimension_semantics=("arbitrary",)),
    )(x, p["l1_w"], p["l1_b"], p["l2_w"], p["l2_b"])


# ----------------------------------------------------------------------------
# Parameters (deterministic; shapes mirror nn.Module.__init__)
# ----------------------------------------------------------------------------
def init_params(key):
    """PyTorch-layout params: conv weights HWIO (3,3,Cin,Cout); l1_w rows in
    PyTorch (C,H,W) flatten order."""
    ks = jax.random.split(key, 10)

    def conv_w(k, cin, cout):
        scale = (2.0 / (cin * 9)) ** 0.5
        return scale * jax.random.normal(k, (3, 3, cin, cout), jnp.float32)

    def lin_w(k, fin, fout):
        scale = (2.0 / fin) ** 0.5
        return scale * jax.random.normal(k, (fin, fout), jnp.float32)

    flat = 128 * (INPUT_SIZE // 8) ** 2
    return {
        "c1_w": conv_w(ks[0], 3, 32),
        "c1_b": 0.01 * jax.random.normal(ks[1], (32,), jnp.float32),
        "c2_w": conv_w(ks[2], 32, 64),
        "c2_b": 0.01 * jax.random.normal(ks[3], (64,), jnp.float32),
        "c3_w": conv_w(ks[4], 64, 128),
        "c3_b": 0.01 * jax.random.normal(ks[5], (128,), jnp.float32),
        "l1_w": lin_w(ks[6], flat, 256),
        "l1_b": 0.01 * jax.random.normal(ks[7], (256,), jnp.float32),
        "l2_w": lin_w(ks[8], 256, NUM_CLASSES),
        "l2_b": 0.01 * jax.random.normal(ks[9], (NUM_CLASSES,), jnp.float32),
    }


def prepare_params(p, input_size):
    """One-time conversion from PyTorch-style layout to kernel layout:
    im2col-flattened bf16 conv weights, bf16 linear weights, f32 (1,n) biases,
    and the NCHW-flatten permutation folded into l1_w's rows."""
    s8 = input_size // 8
    flat = 128 * s8 * s8
    # PyTorch flattens the conv output as (C, H, W); the kernel flattens as
    # (H, W, C).  Permute l1_w's rows once so numerics are identical.
    perm = jnp.arange(flat).reshape(128, s8, s8).transpose(1, 2, 0).reshape(-1)
    bf16 = jnp.bfloat16
    return {
        "c1_w": p["c1_w"].reshape(9 * 3, 32).astype(bf16),
        "c1_b": p["c1_b"].reshape(1, 32).astype(jnp.float32),
        "c2_w": p["c2_w"].reshape(9 * 32, 64).astype(bf16),
        "c2_b": p["c2_b"].reshape(1, 64).astype(jnp.float32),
        "c3_w": p["c3_w"].reshape(9 * 64, 128).astype(bf16),
        "c3_b": p["c3_b"].reshape(1, 128).astype(jnp.float32),
        "l1_w": p["l1_w"][perm, :].astype(bf16),
        "l1_b": p["l1_b"].reshape(1, 256).astype(jnp.float32),
        "l2_w": p["l2_w"].astype(bf16),
        "l2_b": p["l2_b"].reshape(1, NUM_CLASSES).astype(jnp.float32),
    }


# ----------------------------------------------------------------------------
# forward pass
# ----------------------------------------------------------------------------
def simple_cnn_forward(params, x_nchw):
    x = jnp.transpose(x_nchw, (0, 2, 3, 1)).astype(jnp.bfloat16)   # NCHW -> NHWC
    xp = jnp.pad(x, ((0, 0), (1, 1), (1, 1), (0, 0)))              # "same" pad
    feats = features_forward(xp, params)            # (B, S/8, (S/8)*128) bf16
    flat = feats.reshape(feats.shape[0], -1)        # NHWC flatten (perm in l1_w)
    return classifier_forward(flat, params)         # (B, NUM_CLASSES) f32


if __name__ == "__main__":
    root = jax.random.PRNGKey(0)
    kx, kp = jax.random.split(root)
    x = jax.random.normal(kx, (BATCH, 3, INPUT_SIZE, INPUT_SIZE), jnp.float32)
    params = prepare_params(init_params(kp), INPUT_SIZE)

    out = jax.jit(simple_cnn_forward)(params, x)
    out = jax.block_until_ready(out)

    assert out.shape == (BATCH, NUM_CLASSES), out.shape
    assert bool(jnp.all(jnp.isfinite(out)))
    print("KERNEL_OK")
</pallas_src>

<mosaic_0001>
module attributes {stable_mosaic.version = 11 : i64} {
  func.func @features_kernel(%arg0: i32, %arg1: memref<1x18x18x3xbf16, #tpu.memory_space<vmem>>, %arg2: memref<27x32xbf16, #tpu.memory_space<vmem>>, %arg3: memref<1x32xf32, #tpu.memory_space<vmem>>, %arg4: memref<288x64xbf16, #tpu.memory_space<vmem>>, %arg5: memref<1x64xf32, #tpu.memory_space<vmem>>, %arg6: memref<576x128xbf16, #tpu.memory_space<vmem>>, %arg7: memref<1x128xf32, #tpu.memory_space<vmem>>, %arg8: memref<1x2x256xbf16, #tpu.memory_space<vmem>>, %arg9: memref<10x10x32xbf16, #tpu.memory_space<vmem>>, %arg10: memref<6x6x64xbf16, #tpu.memory_space<vmem>>) attributes {dimension_semantics = [#tpu.dimension_semantics<parallel>], iteration_bounds = array<i64: 2>, scalar_prefetch = 0 : i64, scratch_operands = 2 : i64, tpu.core_type = #tpu.core_type<tc>, window_params = [{transform_indices = @transform_0, window_bounds = array<i64: 1, 18, 18, 3>}, {pipeline_mode = #tpu.pipeline_mode<synchronous>, transform_indices = @transform_1, window_bounds = array<i64: 27, 32>}, {pipeline_mode = #tpu.pipeline_mode<synchronous>, transform_indices = @transform_2, window_bounds = array<i64: 1, 32>}, {pipeline_mode = #tpu.pipeline_mode<synchronous>, transform_indices = @transform_3, window_bounds = array<i64: 288, 64>}, {pipeline_mode = #tpu.pipeline_mode<synchronous>, transform_indices = @transform_4, window_bounds = array<i64: 1, 64>}, {pipeline_mode = #tpu.pipeline_mode<synchronous>, transform_indices = @transform_5, window_bounds = array<i64: 576, 128>}, {pipeline_mode = #tpu.pipeline_mode<synchronous>, transform_indices = @transform_6, window_bounds = array<i64: 1, 128>}, {transform_indices = @transform_7, window_bounds = array<i64: 1, 2, 256>}]} {
    %c0 = arith.constant 0 : index
    %c0_0 = arith.constant 0 : index
    %c0_1 = arith.constant 0 : index
    %c0_2 = arith.constant 0 : index
    %0 = vector.load %arg1[%c0, %c0_0, %c0_1, %c0_2] : memref<1x18x18x3xbf16, #tpu.memory_space<vmem>>, vector<1x18x18x3xbf16>
    %1 = vector.shape_cast %0 : vector<1x18x18x3xbf16> to vector<18x18x3xbf16>
    %c0_3 = arith.constant 0 : index
    %c0_4 = arith.constant 0 : index
    %2 = vector.load %arg2[%c0_3, %c0_4] : memref<27x32xbf16, #tpu.memory_space<vmem>>, vector<27x32xbf16>
    %c0_5 = arith.constant 0 : index
    %c0_6 = arith.constant 0 : index
    %3 = vector.load %arg3[%c0_5, %c0_6] : memref<1x32xf32, #tpu.memory_space<vmem>>, vector<1x32xf32>
    %4 = vector.extract_strided_slice %1 {offsets = [0, 0, 0], sizes = [16, 16, 3], strides = [1, 1, 1]} : vector<18x18x3xbf16> to vector<16x16x3xbf16>
    %5 = vector.shape_cast %4 : vector<16x16x3xbf16> to vector<256x3xbf16>
    %6 = vector.extract_strided_slice %1 {offsets = [0, 1, 0], sizes = [16, 16, 3], strides = [1, 1, 1]} : vector<18x18x3xbf16> to vector<16x16x3xbf16>
    %7 = vector.shape_cast %6 : vector<16x16x3xbf16> to vector<256x3xbf16>
    %8 = vector.extract_strided_slice %1 {offsets = [0, 2, 0], sizes = [16, 16, 3], strides = [1, 1, 1]} : vector<18x18x3xbf16> to vector<16x16x3xbf16>
    %9 = vector.shape_cast %8 : vector<16x16x3xbf16> to vector<256x3xbf16>
    %10 = vector.extract_strided_slice %1 {offsets = [1, 0, 0], sizes = [16, 16, 3], strides = [1, 1, 1]} : vector<18x18x3xbf16> to vector<16x16x3xbf16>
    %11 = vector.shape_cast %10 : vector<16x16x3xbf16> to vector<256x3xbf16>
    %12 = vector.extract_strided_slice %1 {offsets = [1, 1, 0], sizes = [16, 16, 3], strides = [1, 1, 1]} : vector<18x18x3xbf16> to vector<16x16x3xbf16>
    %13 = vector.shape_cast %12 : vector<16x16x3xbf16> to vector<256x3xbf16>
    %14 = vector.extract_strided_slice %1 {offsets = [1, 2, 0], sizes = [16, 16, 3], strides = [1, 1, 1]} : vector<18x18x3xbf16> to vector<16x16x3xbf16>
    %15 = vector.shape_cast %14 : vector<16x16x3xbf16> to vector<256x3xbf16>
    %16 = vector.extract_strided_slice %1 {offsets = [2, 0, 0], sizes = [16, 16, 3], strides = [1, 1, 1]} : vector<18x18x3xbf16> to vector<16x16x3xbf16>
    %17 = vector.shape_cast %16 : vector<16x16x3xbf16> to vector<256x3xbf16>
    %18 = vector.extract_strided_slice %1 {offsets = [2, 1, 0], sizes = [16, 16, 3], strides = [1, 1, 1]} : vector<18x18x3xbf16> to vector<16x16x3xbf16>
    %19 = vector.shape_cast %18 : vector<16x16x3xbf16> to vector<256x3xbf16>
    %20 = vector.extract_strided_slice %1 {offsets = [2, 2, 0], sizes = [16, 16, 3], strides = [1, 1, 1]} : vector<18x18x3xbf16> to vector<16x16x3xbf16>
    %21 = vector.shape_cast %20 : vector<16x16x3xbf16> to vector<256x3xbf16>
    %22 = tpu.concatenate %5, %7, %9, %11, %13, %15, %17, %19, %21 in 1 : vector<256x3xbf16>, vector<256x3xbf16>, vector<256x3xbf16>, vector<256x3xbf16>, vector<256x3xbf16>, vector<256x3xbf16>, vector<256x3xbf16>, vector<256x3xbf16>, vector<256x3xbf16> -> vector<256x27xbf16>
    %cst = arith.constant dense<0.000000e+00> : vector<256x32xf32>
    %23 = tpu.matmul %22, %2, %cst {dimension_numbers = #tpu.dot_dimension_numbers<[1], [0], [0], [1], [0, 0, 1, 1], [], []>} : vector<256x27xbf16>, vector<27x32xbf16>, vector<256x32xf32> -> vector<256x32xf32>
    %24 = vector.broadcast %3 : vector<1x32xf32> to vector<256x32xf32>
    %25 = arith.addf %23, %24 : vector<256x32xf32>
    %cst_7 = arith.constant 0.000000e+00 : f32
    %26 = vector.broadcast %cst_7 : f32 to vector<256x32xf32>
    %27 = arith.maximumf %25, %26 : vector<256x32xf32>
    %28 = vector.shape_cast %27 : vector<256x32xf32> to vector<8x2x8x2x32xf32>
    %29 = vector.extract_strided_slice %28 {offsets = [0, 0, 0, 0, 0], sizes = [8, 1, 8, 2, 32], strides = [1, 1, 1, 1, 1]} : vector<8x2x8x2x32xf32> to vector<8x1x8x2x32xf32>
    %30 = vector.shape_cast %29 : vector<8x1x8x2x32xf32> to vector<8x8x2x32xf32>
    %31 = vector.extract_strided_slice %28 {offsets = [0, 1, 0, 0, 0], sizes = [8, 1, 8, 2, 32], strides = [1, 1, 1, 1, 1]} : vector<8x2x8x2x32xf32> to vector<8x1x8x2x32xf32>
    %32 = vector.shape_cast %31 : vector<8x1x8x2x32xf32> to vector<8x8x2x32xf32>
    %33 = arith.maximumf %30, %32 : vector<8x8x2x32xf32>
    %34 = vector.extract_strided_slice %33 {offsets = [0, 0, 0, 0], sizes = [8, 8, 1, 32], strides = [1, 1, 1, 1]} : vector<8x8x2x32xf32> to vector<8x8x1x32xf32>
    %35 = vector.shape_cast %34 : vector<8x8x1x32xf32> to vector<8x8x32xf32>
    %36 = vector.extract_strided_slice %33 {offsets = [0, 0, 1, 0], sizes = [8, 8, 1, 32], strides = [1, 1, 1, 1]} : vector<8x8x2x32xf32> to vector<8x8x1x32xf32>
    %37 = vector.shape_cast %36 : vector<8x8x1x32xf32> to vector<8x8x32xf32>
    %38 = arith.maximumf %35, %37 : vector<8x8x32xf32>
    %cst_8 = arith.constant 0.000000e+00 : bf16
    %39 = vector.broadcast %cst_8 : bf16 to vector<10x10x32xbf16>
    %c0_9 = arith.constant 0 : index
    %c0_10 = arith.constant 0 : index
    %c0_11 = arith.constant 0 : index
    %40 = vector.load %arg9[%c0_9, %c0_10, %c0_11] : memref<10x10x32xbf16, #tpu.memory_space<vmem>>, vector<10x10x32xbf16>
    tpu.vector_store %arg9[%c0_9, %c0_10, %c0_11], %39 {strides = array<i32>} : memref<10x10x32xbf16, #tpu.memory_space<vmem>>, vector<10x10x32xbf16>,
    %41 = arith.truncf %38 : vector<8x8x32xf32> to vector<8x8x32xbf16>
    %c1 = arith.constant 1 : index
    %c1_12 = arith.constant 1 : index
    %c0_13 = arith.constant 0 : index
    %42 = vector.load %arg9[%c1, %c1_12, %c0_13] : memref<10x10x32xbf16, #tpu.memory_space<vmem>>, vector<8x8x32xbf16>
    tpu.vector_store %arg9[%c1, %c1_12, %c0_13], %41 {strides = array<i32>} : memref<10x10x32xbf16, #tpu.memory_space<vmem>>, vector<8x8x32xbf16>,
    %c0_14 = arith.constant 0 : index
    %c0_15 = arith.constant 0 : index
    %c0_16 = arith.constant 0 : index
    %43 = vector.load %arg9[%c0_14, %c0_15, %c0_16] : memref<10x10x32xbf16, #tpu.memory_space<vmem>>, vector<10x10x32xbf16>
    %c0_17 = arith.constant 0 : index
    %c0_18 = arith.constant 0 : index
    %44 = vector.load %arg4[%c0_17, %c0_18] : memref<288x64xbf16, #tpu.memory_space<vmem>>, vector<288x64xbf16>
    %c0_19 = arith.constant 0 : index
    %c0_20 = arith.constant 0 : index
    %45 = vector.load %arg5[%c0_19, %c0_20] : memref<1x64xf32, #tpu.memory_space<vmem>>, vector<1x64xf32>
    %46 = vector.extract_strided_slice %43 {offsets = [0, 0, 0], sizes = [8, 8, 32], strides = [1, 1, 1]} : vector<10x10x32xbf16> to vector<8x8x32xbf16>
    %47 = vector.shape_cast %46 : vector<8x8x32xbf16> to vector<64x32xbf16>
    %48 = vector.extract_strided_slice %43 {offsets = [0, 1, 0], sizes = [8, 8, 32], strides = [1, 1, 1]} : vector<10x10x32xbf16> to vector<8x8x32xbf16>
    %49 = vector.shape_cast %48 : vector<8x8x32xbf16> to vector<64x32xbf16>
    %50 = vector.extract_strided_slice %43 {offsets = [0, 2, 0], sizes = [8, 8, 32], strides = [1, 1, 1]} : vector<10x10x32xbf16> to vector<8x8x32xbf16>
    %51 = vector.shape_cast %50 : vector<8x8x32xbf16> to vector<64x32xbf16>
    %52 = vector.extract_strided_slice %43 {offsets = [1, 0, 0], sizes = [8, 8, 32], strides = [1, 1, 1]} : vector<10x10x32xbf16> to vector<8x8x32xbf16>
    %53 = vector.shape_cast %52 : vector<8x8x32xbf16> to vector<64x32xbf16>
    %54 = vector.extract_strided_slice %43 {offsets = [1, 1, 0], sizes = [8, 8, 32], strides = [1, 1, 1]} : vector<10x10x32xbf16> to vector<8x8x32xbf16>
    %55 = vector.shape_cast %54 : vector<8x8x32xbf16> to vector<64x32xbf16>
    %56 = vector.extract_strided_slice %43 {offsets = [1, 2, 0], sizes = [8, 8, 32], strides = [1, 1, 1]} : vector<10x10x32xbf16> to vector<8x8x32xbf16>
    %57 = vector.shape_cast %56 : vector<8x8x32xbf16> to vector<64x32xbf16>
    %58 = vector.extract_strided_slice %43 {offsets = [2, 0, 0], sizes = [8, 8, 32], strides = [1, 1, 1]} : vector<10x10x32xbf16> to vector<8x8x32xbf16>
    %59 = vector.shape_cast %58 : vector<8x8x32xbf16> to vector<64x32xbf16>
    %60 = vector.extract_strided_slice %43 {offsets = [2, 1, 0], sizes = [8, 8, 32], strides = [1, 1, 1]} : vector<10x10x32xbf16> to vector<8x8x32xbf16>
    %61 = vector.shape_cast %60 : vector<8x8x32xbf16> to vector<64x32xbf16>
    %62 = vector.extract_strided_slice %43 {offsets = [2, 2, 0], sizes = [8, 8, 32], strides = [1, 1, 1]} : vector<10x10x32xbf16> to vector<8x8x32xbf16>
    %63 = vector.shape_cast %62 : vector<8x8x32xbf16> to vector<64x32xbf16>
    %64 = tpu.concatenate %47, %49, %51, %53, %55, %57, %59, %61, %63 in 1 : vector<64x32xbf16>, vector<64x32xbf16>, vector<64x32xbf16>, vector<64x32xbf16>, vector<64x32xbf16>, vector<64x32xbf16>, vector<64x32xbf16>, vector<64x32xbf16>, vector<64x32xbf16> -> vector<64x288xbf16>
    %cst_21 = arith.constant dense<0.000000e+00> : vector<64x64xf32>
    %65 = tpu.matmul %64, %44, %cst_21 {dimension_numbers = #tpu.dot_dimension_numbers<[1], [0], [0], [1], [0, 0, 1, 1], [], []>} : vector<64x288xbf16>, vector<288x64xbf16>, vector<64x64xf32> -> vector<64x64xf32>
    %66 = vector.broadcast %45 : vector<1x64xf32> to vector<64x64xf32>
    %67 = arith.addf %65, %66 : vector<64x64xf32>
    %cst_22 = arith.constant 0.000000e+00 : f32
    %68 = vector.broadcast %cst_22 : f32 to vector<64x64xf32>
    %69 = arith.maximumf %67, %68 : vector<64x64xf32>
    %70 = vector.shape_cast %69 : vector<64x64xf32> to vector<4x2x4x2x64xf32>
    %71 = vector.extract_strided_slice %70 {offsets = [0, 0, 0, 0, 0], sizes = [4, 1, 4, 2, 64], strides = [1, 1, 1, 1, 1]} : vector<4x2x4x2x64xf32> to vector<4x1x4x2x64xf32>
    %72 = vector.shape_cast %71 : vector<4x1x4x2x64xf32> to vector<4x4x2x64xf32>
    %73 = vector.extract_strided_slice %70 {offsets = [0, 1, 0, 0, 0], sizes = [4, 1, 4, 2, 64], strides = [1, 1, 1, 1, 1]} : vector<4x2x4x2x64xf32> to vector<4x1x4x2x64xf32>
    %74 = vector.shape_cast %73 : vector<4x1x4x2x64xf32> to vector<4x4x2x64xf32>
    %75 = arith.maximumf %72, %74 : vector<4x4x2x64xf32>
    %76 = vector.extract_strided_slice %75 {offsets = [0, 0, 0, 0], sizes = [4, 4, 1, 64], strides = [1, 1, 1, 1]} : vector<4x4x2x64xf32> to vector<4x4x1x64xf32>
    %77 = vector.shape_cast %76 : vector<4x4x1x64xf32> to vector<4x4x64xf32>
    %78 = vector.extract_strided_slice %75 {offsets = [0, 0, 1, 0], sizes = [4, 4, 1, 64], strides = [1, 1, 1, 1]} : vector<4x4x2x64xf32> to vector<4x4x1x64xf32>
    %79 = vector.shape_cast %78 : vector<4x4x1x64xf32> to vector<4x4x64xf32>
    %80 = arith.maximumf %77, %79 : vector<4x4x64xf32>
    %cst_23 = arith.constant 0.000000e+00 : bf16
    %81 = vector.broadcast %cst_23 : bf16 to vector<6x6x64xbf16>
    %c0_24 = arith.constant 0 : index
    %c0_25 = arith.constant 0 : index
    %c0_26 = arith.constant 0 : index
    %82 = vector.load %arg10[%c0_24, %c0_25, %c0_26] : memref<6x6x64xbf16, #tpu.memory_space<vmem>>, vector<6x6x64xbf16>
    tpu.vector_store %arg10[%c0_24, %c0_25, %c0_26], %81 {strides = array<i32>} : memref<6x6x64xbf16, #tpu.memory_space<vmem>>, vector<6x6x64xbf16>,
    %83 = arith.truncf %80 : vector<4x4x64xf32> to vector<4x4x64xbf16>
    %c1_27 = arith.constant 1 : index
    %c1_28 = arith.constant 1 : index
    %c0_29 = arith.constant 0 : index
    %84 = vector.load %arg10[%c1_27, %c1_28, %c0_29] : memref<6x6x64xbf16, #tpu.memory_space<vmem>>, vector<4x4x64xbf16>
    tpu.vector_store %arg10[%c1_27, %c1_28, %c0_29], %83 {strides = array<i32>} : memref<6x6x64xbf16, #tpu.memory_space<vmem>>, vector<4x4x64xbf16>,
    %c0_30 = arith.constant 0 : index
    %c0_31 = arith.constant 0 : index
    %c0_32 = arith.constant 0 : index
    %85 = vector.load %arg10[%c0_30, %c0_31, %c0_32] : memref<6x6x64xbf16, #tpu.memory_space<vmem>>, vector<6x6x64xbf16>
    %c0_33 = arith.constant 0 : index
    %c0_34 = arith.constant 0 : index
    %86 = vector.load %arg6[%c0_33, %c0_34] : memref<576x128xbf16, #tpu.memory_space<vmem>>, vector<576x128xbf16>
    %c0_35 = arith.constant 0 : index
    %c0_36 = arith.constant 0 : index
    %87 = vector.load %arg7[%c0_35, %c0_36] : memref<1x128xf32, #tpu.memory_space<vmem>>, vector<1x128xf32>
    %88 = vector.extract_strided_slice %85 {offsets = [0, 0, 0], sizes = [4, 4, 64], strides = [1, 1, 1]} : vector<6x6x64xbf16> to vector<4x4x64xbf16>
    %89 = vector.shape_cast %88 : vector<4x4x64xbf16> to vector<16x64xbf16>
    %90 = vector.extract_strided_slice %85 {offsets = [0, 1, 0], sizes = [4, 4, 64], strides = [1, 1, 1]} : vector<6x6x64xbf16> to vector<4x4x64xbf16>
    %91 = vector.shape_cast %90 : vector<4x4x64xbf16> to vector<16x64xbf16>
    %92 = vector.extract_strided_slice %85 {offsets = [0, 2, 0], sizes = [4, 4, 64], strides = [1, 1, 1]} : vector<6x6x64xbf16> to vector<4x4x64xbf16>
    %93 = vector.shape_cast %92 : vector<4x4x64xbf16> to vector<16x64xbf16>
    %94 = vector.extract_strided_slice %85 {offsets = [1, 0, 0], sizes = [4, 4, 64], strides = [1, 1, 1]} : vector<6x6x64xbf16> to vector<4x4x64xbf16>
    %95 = vector.shape_cast %94 : vector<4x4x64xbf16> to vector<16x64xbf16>
    %96 = vector.extract_strided_slice %85 {offsets = [1, 1, 0], sizes = [4, 4, 64], strides = [1, 1, 1]} : vector<6x6x64xbf16> to vector<4x4x64xbf16>
    %97 = vector.shape_cast %96 : vector<4x4x64xbf16> to vector<16x64xbf16>
    %98 = vector.extract_strided_slice %85 {offsets = [1, 2, 0], sizes = [4, 4, 64], strides = [1, 1, 1]} : vector<6x6x64xbf16> to vector<4x4x64xbf16>
    %99 = vector.shape_cast %98 : vector<4x4x64xbf16> to vector<16x64xbf16>
    %100 = vector.extract_strided_slice %85 {offsets = [2, 0, 0], sizes = [4, 4, 64], strides = [1, 1, 1]} : vector<6x6x64xbf16> to vector<4x4x64xbf16>
    %101 = vector.shape_cast %100 : vector<4x4x64xbf16> to vector<16x64xbf16>
    %102 = vector.extract_strided_slice %85 {offsets = [2, 1, 0], sizes = [4, 4, 64], strides = [1, 1, 1]} : vector<6x6x64xbf16> to vector<4x4x64xbf16>
    %103 = vector.shape_cast %102 : vector<4x4x64xbf16> to vector<16x64xbf16>
    %104 = vector.extract_strided_slice %85 {offsets = [2, 2, 0], sizes = [4, 4, 64], strides = [1, 1, 1]} : vector<6x6x64xbf16> to vector<4x4x64xbf16>
    %105 = vector.shape_cast %104 : vector<4x4x64xbf16> to vector<16x64xbf16>
    %106 = tpu.concatenate %89, %91, %93, %95, %97, %99, %101, %103, %105 in 1 : vector<16x64xbf16>, vector<16x64xbf16>, vector<16x64xbf16>, vector<16x64xbf16>, vector<16x64xbf16>, vector<16x64xbf16>, vector<16x64xbf16>, vector<16x64xbf16>, vector<16x64xbf16> -> vector<16x576xbf16>
    %cst_37 = arith.constant dense<0.000000e+00> : vector<16x128xf32>
    %107 = tpu.matmul %106, %86, %cst_37 {dimension_numbers = #tpu.dot_dimension_numbers<[1], [0], [0], [1], [0, 0, 1, 1], [], []>} : vector<16x576xbf16>, vector<576x128xbf16>, vector<16x128xf32> -> vector<16x128xf32>
    %108 = vector.broadcast %87 : vector<1x128xf32> to vector<16x128xf32>
    %109 = arith.addf %107, %108 : vector<16x128xf32>
    %cst_38 = arith.constant 0.000000e+00 : f32
    %110 = vector.broadcast %cst_38 : f32 to vector<16x128xf32>
    %111 = arith.maximumf %109, %110 : vector<16x128xf32>
    %112 = vector.shape_cast %111 : vector<16x128xf32> to vector<2x2x2x2x128xf32>
    %113 = vector.extract_strided_slice %112 {offsets = [0, 0, 0, 0, 0], sizes = [2, 1, 2, 2, 128], strides = [1, 1, 1, 1, 1]} : vector<2x2x2x2x128xf32> to vector<2x1x2x2x128xf32>
    %114 = vector.shape_cast %113 : vector<2x1x2x2x128xf32> to vector<2x2x2x128xf32>
    %115 = vector.extract_strided_slice %112 {offsets = [0, 1, 0, 0, 0], sizes = [2, 1, 2, 2, 128], strides = [1, 1, 1, 1, 1]} : vector<2x2x2x2x128xf32> to vector<2x1x2x2x128xf32>
    %116 = vector.shape_cast %115 : vector<2x1x2x2x128xf32> to vector<2x2x2x128xf32>
    %117 = arith.maximumf %114, %116 : vector<2x2x2x128xf32>
    %118 = vector.extract_strided_slice %117 {offsets = [0, 0, 0, 0], sizes = [2, 2, 1, 128], strides = [1, 1, 1, 1]} : vector<2x2x2x128xf32> to vector<2x2x1x128xf32>
    %119 = vector.shape_cast %118 : vector<2x2x1x128xf32> to vector<2x2x128xf32>
    %120 = vector.extract_strided_slice %117 {offsets = [0, 0, 1, 0], sizes = [2, 2, 1, 128], strides = [1, 1, 1, 1]} : vector<2x2x2x128xf32> to vector<2x2x1x128xf32>
    %121 = vector.shape_cast %120 : vector<2x2x1x128xf32> to vector<2x2x128xf32>
    %122 = arith.maximumf %119, %121 : vector<2x2x128xf32>
    %123 = vector.shape_cast %122 : vector<2x2x128xf32> to vector<2x256xf32>
    %124 = arith.truncf %123 : vector<2x256xf32> to vector<2x256xbf16>
    %c0_39 = arith.constant 0 : index
    %c0_40 = arith.constant 0 : index
    %c0_41 = arith.constant 0 : index
    %125 = vector.load %arg8[%c0_39, %c0_40, %c0_41] : memref<1x2x256xbf16, #tpu.memory_space<vmem>>, vector<1x2x256xbf16>
    %126 = vector.shape_cast %125 : vector<1x2x256xbf16> to vector<2x256xbf16>
    %127 = vector.shape_cast %124 : vector<2x256xbf16> to vector<1x2x256xbf16>
    tpu.vector_store %arg8[%c0_39, %c0_40, %c0_41], %127 {strides = array<i32>} : memref<1x2x256xbf16, #tpu.memory_space<vmem>>, vector<1x2x256xbf16>,
    return
  }
  func.func @transform_0(%arg0: i32) -> (i32, i32, i32, i32) {
    %c0_i32 = arith.constant 0 : i32
    %c0_i32_0 = arith.constant 0 : i32
    %c0_i32_1 = arith.constant 0 : i32
    %c0_i32_2 = arith.constant 0 : i32
    return %arg0, %c0_i32, %c0_i32_0, %c0_i32_1 : i32, i32, i32, i32
  }
  func.func @transform_1(%arg0: i32) -> (i32, i32) {
    %c0_i32 = arith.constant 0 : i32
    %c0_i32_0 = arith.constant 0 : i32
    %c0_i32_1 = arith.constant 0 : i32
    return %c0_i32, %c0_i32_0 : i32, i32
  }
  func.func @transform_2(%arg0: i32) -> (i32, i32) {
    %c0_i32 = arith.constant 0 : i32
    %c0_i32_0 = arith.constant 0 : i32
    %c0_i32_1 = arith.constant 0 : i32
    return %c0_i32, %c0_i32_0 : i32, i32
  }
  func.func @transform_3(%arg0: i32) -> (i32, i32) {
    %c0_i32 = arith.constant 0 : i32
    %c0_i32_0 = arith.constant 0 : i32
    %c0_i32_1 = arith.constant 0 : i32
    return %c0_i32, %c0_i32_0 : i32, i32
  }
  func.func @transform_4(%arg0: i32) -> (i32, i32) {
    %c0_i32 = arith.constant 0 : i32
    %c0_i32_0 = arith.constant 0 : i32
    %c0_i32_1 = arith.constant 0 : i32
    return %c0_i32, %c0_i32_0 : i32, i32
  }
  func.func @transform_5(%arg0: i32) -> (i32, i32) {
    %c0_i32 = arith.constant 0 : i32
    %c0_i32_0 = arith.constant 0 : i32
    %c0_i32_1 = arith.constant 0 : i32
    return %c0_i32, %c0_i32_0 : i32, i32
  }
  func.func @transform_6(%arg0: i32) -> (i32, i32) {
    %c0_i32 = arith.constant 0 : i32
    %c0_i32_0 = arith.constant 0 : i32
    %c0_i32_1 = arith.constant 0 : i32
    return %c0_i32, %c0_i32_0 : i32, i32
  }
  func.func @transform_7(%arg0: i32) -> (i32, i32, i32) {
    %c0_i32 = arith.constant 0 : i32
    %c0_i32_0 = arith.constant 0 : i32
    %c0_i32_1 = arith.constant 0 : i32
    return %arg0, %c0_i32, %c0_i32_0 : i32, i32, i32
  }
}

module attributes {stable_mosaic.version = 11 : i64} {
  func.func @classifier_kernel(%arg0: i32, %arg1: memref<2x256xbf16, #tpu.memory_space<vmem>>, %arg2: memref<256x256xbf16, #tpu.memory_space<vmem>>, %arg3: memref<1x256xf32, #tpu.memory_space<vmem>>, %arg4: memref<256x10xbf16, #tpu.memory_space<vmem>>, %arg5: memref<1x10xf32, #tpu.memory_space<vmem>>, %arg6: memref<2x10xf32, #tpu.memory_space<vmem>>, %arg7: memref<2x256xf32, #tpu.memory_space<vmem>>) attributes {dimension_semantics = [#tpu.dimension_semantics<arbitrary>], iteration_bounds = array<i64: 2>, scalar_prefetch = 0 : i64, scratch_operands = 1 : i64, tpu.core_type = #tpu.core_type<tc>, window_params = [{transform_indices = @transform_0, window_bounds = array<i64: 2, 256>}, {transform_indices = @transform_1, window_bounds = array<i64: 256, 256>}, {pipeline_mode = #tpu.pipeline_mode<synchronous>, transform_indices = @transform_2, window_bounds = array<i64: 1, 256>}, {pipeline_mode = #tpu.pipeline_mode<synchronous>, transform_indices = @transform_3, window_bounds = array<i64: 256, 10>}, {pipeline_mode = #tpu.pipeline_mode<synchronous>, transform_indices = @transform_4, window_bounds = array<i64: 1, 10>}, {pipeline_mode = #tpu.pipeline_mode<synchronous>, transform_indices = @transform_5, window_bounds = array<i64: 2, 10>}]} {
    %c0_i32 = arith.constant 0 : i32
    %0 = arith.cmpi eq, %arg0, %c0_i32 : i32
    %1 = arith.extui %0 : i1 to i32
    %c0_i32_0 = arith.constant 0 : i32
    %2 = arith.cmpi ne, %1, %c0_i32_0 : i32
    scf.if %2 {
      %cst_9 = arith.constant 0.000000e+00 : f32
      %12 = vector.broadcast %cst_9 : f32 to vector<2x256xf32>
      %c0_10 = arith.constant 0 : index
      %c0_11 = arith.constant 0 : index
      %13 = vector.load %arg7[%c0_10, %c0_11] : memref<2x256xf32, #tpu.memory_space<vmem>>, vector<2x256xf32>
      tpu.vector_store %arg7[%c0_10, %c0_11], %12 {strides = array<i32>} : memref<2x256xf32, #tpu.memory_space<vmem>>, vector<2x256xf32>,
    } else {
    }
    %c0 = arith.constant 0 : index
    %c0_1 = arith.constant 0 : index
    %3 = vector.load %arg7[%c0, %c0_1] : memref<2x256xf32, #tpu.memory_space<vmem>>, vector<2x256xf32>
    %c0_2 = arith.constant 0 : index
    %c0_3 = arith.constant 0 : index
    %4 = vector.load %arg1[%c0_2, %c0_3] : memref<2x256xbf16, #tpu.memory_space<vmem>>, vector<2x256xbf16>
    %c0_4 = arith.constant 0 : index
    %c0_5 = arith.constant 0 : index
    %5 = vector.load %arg2[%c0_4, %c0_5] : memref<256x256xbf16, #tpu.memory_space<vmem>>, vector<256x256xbf16>
    %cst = arith.constant dense<0.000000e+00> : vector<2x256xf32>
    %6 = tpu.matmul %4, %5, %cst {dimension_numbers = #tpu.dot_dimension_numbers<[1], [0], [0], [1], [0, 0, 1, 1], [], []>} : vector<2x256xbf16>, vector<256x256xbf16>, vector<2x256xf32> -> vector<2x256xf32>
    %7 = arith.addf %3, %6 : vector<2x256xf32>
    %c0_6 = arith.constant 0 : index
    %c0_7 = arith.constant 0 : index
    %8 = vector.load %arg7[%c0_6, %c0_7] : memref<2x256xf32, #tpu.memory_space<vmem>>, vector<2x256xf32>
    tpu.vector_store %arg7[%c0_6, %c0_7], %7 {strides = array<i32>} : memref<2x256xf32, #tpu.memory_space<vmem>>, vector<2x256xf32>,
    %c1_i32 = arith.constant 1 : i32
    %9 = arith.cmpi eq, %arg0, %c1_i32 : i32
    %10 = arith.extui %9 : i1 to i32
    %c0_i32_8 = arith.constant 0 : i32
    %11 = arith.cmpi ne, %10, %c0_i32_8 : i32
    scf.if %11 {
      %c0_9 = arith.constant 0 : index
      %c0_10 = arith.constant 0 : index
      %12 = vector.load %arg7[%c0_9, %c0_10] : memref<2x256xf32, #tpu.memory_space<vmem>>, vector<2x256xf32>
      %c0_11 = arith.constant 0 : index
      %c0_12 = arith.constant 0 : index
      %13 = vector.load %arg3[%c0_11, %c0_12] : memref<1x256xf32, #tpu.memory_space<vmem>>, vector<1x256xf32>
      %14 = vector.broadcast %13 : vector<1x256xf32> to vector<2x256xf32>
      %15 = arith.addf %12, %14 : vector<2x256xf32>
      %cst_13 = arith.constant 0.000000e+00 : f32
      %16 = vector.broadcast %cst_13 : f32 to vector<2x256xf32>
      %17 = arith.maximumf %15, %16 : vector<2x256xf32>
      %18 = arith.truncf %17 : vector<2x256xf32> to vector<2x256xbf16>
      %c0_14 = arith.constant 0 : index
      %c0_15 = arith.constant 0 : index
      %19 = vector.load %arg4[%c0_14, %c0_15] : memref<256x10xbf16, #tpu.memory_space<vmem>>, vector<256x10xbf16>
      %cst_16 = arith.constant dense<0.000000e+00> : vector<2x10xf32>
      %20 = tpu.matmul %18, %19, %cst_16 {dimension_numbers = #tpu.dot_dimension_numbers<[1], [0], [0], [1], [0, 0, 1, 1], [], []>} : vector<2x256xbf16>, vector<256x10xbf16>, vector<2x10xf32> -> vector<2x10xf32>
      %c0_17 = arith.constant 0 : index
      %c0_18 = arith.constant 0 : index
      %21 = vector.load %arg5[%c0_17, %c0_18] : memref<1x10xf32, #tpu.memory_space<vmem>>, vector<1x10xf32>
      %22 = vector.broadcast %21 : vector<1x10xf32> to vector<2x10xf32>
      %23 = arith.addf %20, %22 : vector<2x10xf32>
      %c0_19 = arith.constant 0 : index
      %c0_20 = arith.constant 0 : index
      %24 = vector.load %arg6[%c0_19, %c0_20] : memref<2x10xf32, #tpu.memory_space<vmem>>, vector<2x10xf32>
      tpu.vector_store %arg6[%c0_19, %c0_20], %23 {strides = array<i32>} : memref<2x10xf32, #tpu.memory_space<vmem>>, vector<2x10xf32>,
    } else {
    }
    return
  }
  func.func @transform_0(%arg0: i32) -> (i32, i32) {
    %c0_i32 = arith.constant 0 : i32
    %c0_i32_0 = arith.constant 0 : i32
    return %c0_i32, %arg0 : i32, i32
  }
  func.func @transform_1(%arg0: i32) -> (i32, i32) {
    %c0_i32 = arith.constant 0 : i32
    %c0_i32_0 = arith.constant 0 : i32
    return %arg0, %c0_i32 : i32, i32
  }
  func.func @transform_2(%arg0: i32) -> (i32, i32) {
    %c0_i32 = arith.constant 0 : i32
    %c0_i32_0 = arith.constant 0 : i32
    %c0_i32_1 = arith.constant 0 : i32
    return %c0_i32, %c0_i32_0 : i32, i32
  }
  func.func @transform_3(%arg0: i32) -> (i32, i32) {
    %c0_i32 = arith.constant 0 : i32
    %c0_i32_0 = arith.constant 0 : i32
    %c0_i32_1 = arith.constant 0 : i32
    return %c0_i32, %c0_i32_0 : i32, i32
  }
  func.func @transform_4(%arg0: i32) -> (i32, i32) {
    %c0_i32 = arith.constant 0 : i32
    %c0_i32_0 = arith.constant 0 : i32
    %c0_i32_1 = arith.constant 0 : i32
    return %c0_i32, %c0_i32_0 : i32, i32
  }
  func.func @transform_5(%arg0: i32) -> (i32, i32) {
    %c0_i32 = arith.constant 0 : i32
    %c0_i32_0 = arith.constant 0 : i32
    %c0_i32_1 = arith.constant 0 : i32
    return %c0_i32, %c0_i32_0 : i32, i32
  }
}

</mosaic_0001>

<bundles_post_ra>
// kernel: simple_cnn_forward.3
= control target key start
LH: loop header
LB: loop body
LE: loop exit
PB: predicated region body
PF: predicated region fallthrough
CT: control target
= control target key end

     0   :  { %10 = vsyncpa [#allocation4], 0  ;;  %s1026_s18 = smov 0   ;;  %s1174_s0 = inlined_call_operand.vmem [shape: bf16[2,512], index: 0, kind: input, shape index: {}]   ;;  %s1175_s1 = inlined_call_operand.vmem [shape: bf16[512,256], index: 1, kind: input, shape index: {}]   ;;  %s1176_s2 = inlined_call_operand.vmem [shape: f32[1,256], index: 2, kind: input, shape index: {}]   ;;  %s1177_s3 = inlined_call_operand.vmem [shape: bf16[256,10], index: 3, kind: input, shape index: {}]   ;;  %s1178_s4 = inlined_call_operand.vmem [shape: f32[1,10], index: 4, kind: input, shape index: {}]   ;;  %s1179_s5 = inlined_call_operand.hbm [shape: f32[2,10], index: 5, kind: output, shape index: {}]  }
   0x1 LB: > { %s1032_s19 = sadd.s32 4294967295, %s990_s18   ;;  %p788_p0 = scmp.ge.s32.totalorder %s990_s18, 1  ;;  %s990_s18 = sphi %s1026_s18, %s16_s18  }
   0x2   : > { %p195_p1 = scmp.lt.s32.totalorder %s990_s18, 3 }
   0x4   : > { %p196_p2 = pnand %p788_p0, %p195_p1 }
   0x5   : > { %s789_s20 = sshll.u32 (!%p196_p2), %s1032_s19, 1  ;;  %s790_s21 = sshll.u32 (!%p196_p2), %s1032_s19, 5 }
   0x6   : > { %199 = sbr.rel (%p196_p2) target bundleno = 568 (0x238), region = 40  ;;  %p224_p3 = scmp.lt.s32.totalorder (!%p196_p2), %s789_s20, 3 }
   0x7   : > { %p229_p4 = scmp.lt.s32.totalorder (!%p196_p2), %s790_s21, 63  ;;  %p793_p5 = scmp.ne.s32.totalorder (!%p196_p2), %s1032_s19, 0 }
   0xd   : > { %s1181_s20 = smov (!%p224_p3, %s789_s20), 3  ;;  %s1183_s21 = smov (!%p229_p4, %s790_s21), 63 }
   0xe   : > { %s226_s24 = scalar_lea.vmem %s1174_s0, %s1181_s20  ;;  %s849_s25 = sshll.u32 %s1183_s21, 3  ;;  %v992_v0 = vmov (!%p793_p5), 0.0  }
   0xf   : > { %s1047_s28 = scalar_lea.vmem %s1175_s1, %s849_s25  ;;  %239 = sbr.rel (%p793_p5) target bundleno = 22 (0x16), region = 44  ;;  %240 = vst [vmem:[#allocation2] sm:$0xf] (!%p793_p5), %v992_v0 }
  0x16 PF: > { %v890_v1 = vld [vmem:[%s1047_s28 + $0x4] ss:$8 sps:$4 sm:$0xff]   ;;  %v892_v2 = vld [vmem:[%s1047_s28] ss:$8 sps:$4 sm:$0xff]   ;;  %v893_v3 = vld [vmem:[%s1047_s28 + $0x14] ss:$8 sps:$4 sm:$0xff]   ;;  %v287_v12 = vlaneseq }
  0x17   : > { %460 = vmatprep.subr.bf16.mxu0 %v890_v1  ;;  %v895_v4 = vld [vmem:[%s1047_s28 + $0x10] ss:$8 sps:$4 sm:$0xff]   ;;  %v896_v5 = vld [vmem:[%s1047_s28 + $0x24] ss:$8 sps:$4 sm:$0xff]   ;;  %v898_v6 = vld [vmem:[%s1047_s28 + $0x20] ss:$8 sps:$4 sm:$0xff]  }
  0x18   : > { %461 = vmatpush1.bf16.msra.mxu0 %v892_v2  ;;  %v899_v7 = vld [vmem:[%s1047_s28 + $0x34] ss:$8 sps:$4 sm:$0xff]   ;;  %v901_v8 = vld [vmem:[%s1047_s28 + $0x30] ss:$8 sps:$4 sm:$0xff]   ;;  %v902_v9 = vld [vmem:[%s1047_s28 + $0x44] ss:$8 sps:$4 sm:$0xff]  }
  0x19   : > { %462 = vmatprep.subr.bf16.mxu0 %v893_v3  ;;  %v993_v10 = vmov 1966171168   ;;  %v904_v13 = vld [vmem:[%s1047_s28 + $0x40] ss:$8 sps:$4 sm:$0xff]   ;;  %v905_v14 = vld [vmem:[%s1047_s28 + $0x54] ss:$8 sps:$4 sm:$0xff]  }
  0x1a   : > { %v285_v11 = vunpack.c.l.s4 %v993_v10  ;;  %v1061_v16 = vshrl.u32 %v287_v12, 7  ;;  %v907_v17 = vld [vmem:[%s1047_s28 + $0x50] ss:$8 sps:$4 sm:$0xff]   ;;  %v908_v18 = vld [vmem:[%s1047_s28 + $0x64] ss:$8 sps:$4 sm:$0xff]   ;;  %p827_p6 = scmp.ne.s32.totalorder %s1032_s19, 1 }
  0x1b   : > { %v794_v20 = vld.sshfl [vmem:[%s226_s24] sm:$0x11 pattern:$0x75316420]  ;;  %v911_v23 = vld [vmem:[%s1047_s28 + $0x74] ss:$8 sps:$4 sm:$0xff]  }
  0x1c   : > { %463 = vmatpush1.bf16.msra.mxu0 %v895_v4  ;;  %v286_v15 = vunpack.c.0.s8 %v285_v11  ;;  %v283_v21 = vcombine.high %v794_v20, %v794_v20  ;;  %v910_v22 = vld [vmem:[%s1047_s28 + $0x60] ss:$8 sps:$4 sm:$0xff]   ;;  %v913_v25 = vld [vmem:[%s1047_s28 + $0x70] ss:$8 sps:$4 sm:$0xff]   ;;  %v914_v26 = vld [vmem:[%s1047_s28 + $0x84] ss:$8 sps:$4 sm:$0xff]  }
  0x1d   : > { %464 = vmatprep.subr.bf16.mxu0 %v896_v5  ;;  %v916_v27 = vld [vmem:[%s1047_s28 + $0x80] ss:$8 sps:$4 sm:$0xff]   ;;  %v917_v28 = vld [vmem:[%s1047_s28 + $0x94] ss:$8 sps:$4 sm:$0xff]   ;;  %v919_v29 = vld [vmem:[%s1047_s28 + $0x90] ss:$8 sps:$4 sm:$0xff]  }
  0x1e   : > { %v289_v19 = vsub.s32 %v286_v15, %v1061_v16  ;;  %v920_v30 = vld [vmem:[%s1047_s28 + $0xa4] ss:$8 sps:$4 sm:$0xff]   ;;  %v922_v31 = vld [vmem:[%s1047_s28 + $0xa0] ss:$8 sps:$4 sm:$0xff]   ;;  %v923_v32 = vld [vmem:[%s1047_s28 + $0xb4] ss:$8 sps:$4 sm:$0xff]  }
  0x1f   : > { %v925_v33 = vld [vmem:[%s1047_s28 + $0xb0] ss:$8 sps:$4 sm:$0xff]   ;;  %v926_v34 = vld [vmem:[%s1047_s28 + $0xc4] ss:$8 sps:$4 sm:$0xff]   ;;  %v928_v35 = vld [vmem:[%s1047_s28 + $0xc0] ss:$8 sps:$4 sm:$0xff]  }
  0x20   : > { %465 = vmatpush1.bf16.msra.mxu0 %v898_v6  ;;  %v297_v24 = vrot.slane %v283_v21, %v289_v19  ;;  %v929_v36 = vld [vmem:[%s1047_s28 + $0xd4] ss:$8 sps:$4 sm:$0xff]   ;;  %v931_v37 = vld [vmem:[%s1047_s28 + $0xd0] ss:$8 sps:$4 sm:$0xff]   ;;  %v932_v38 = vld [vmem:[%s1047_s28 + $0xe4] ss:$8 sps:$4 sm:$0xff]   ;;  %v290_v42 = vrot.slane %v794_v20, %v289_v19 }
  0x21   : > { %466 = vmatprep.subr.bf16.mxu0 %v899_v7  ;;  %v934_v39 = vld [vmem:[%s1047_s28 + $0xe0] ss:$8 sps:$4 sm:$0xff]   ;;  %v935_v40 = vld [vmem:[%s1047_s28 + $0xf4] ss:$8 sps:$4 sm:$0xff]   ;;  %v937_v41 = vld [vmem:[%s1047_s28 + $0xf0] ss:$8 sps:$4 sm:$0xff]  }
  0x22   : > { %492 = vmatprep.mubr.bf16.mxu0 %v297_v24  ;;  %v994_v43 = vmov 1983009808   ;;  %v241_v51 = vld [vmem:[#allocation2] sm:$0xf]  ;;  %v940_v57 = vld [vmem:[%s1177_s3 + $0x48] sm:$0xff] (!%p827_p6)   ;;  %v942_v59 = vld [vmem:[%s1177_s3 + $0x50] sm:$0xff] (!%p827_p6)  }
  0x23   : > { %v505_v44 = vunpack.c.l.s4 %v994_v43  ;;  %v938_v55 = vld [vmem:[%s1177_s3 + $0x40] sm:$0xff] (!%p827_p6)   ;;  %v941_v58 = vld [vmem:[%s1177_s3 + $0x8] sm:$0xff] (!%p827_p6)   ;;  %v943_v60 = vld [vmem:[%s1177_s3 + $0x10] sm:$0xff] (!%p827_p6)   ;;  %v523_v0 = vsub.s32 (!%p827_p6), 0, %v1061_v16  ;;  %v527_v1 = vsub.s32 (!%p827_p6), 1, %v1061_v16  ;;  %vm728_vm0 = vcmask (!%p827_p6), 74752  }
  0x24   : > { %467 = vmatpush1.bf16.msra.mxu0 %v901_v8  ;;  %v939_v56 = vld [vmem:[%s1177_s3] sm:$0xff] (!%p827_p6)   ;;  %v944_v61 = vld [vmem:[%s1177_s3 + $0x58] sm:$0xff] (!%p827_p6)   ;;  %v948_v3 = vld [vmem:[%s1177_s3 + $0x68] sm:$0xff] (!%p827_p6)  }
  0x25   : > { %468 = vmatprep.subr.bf16.mxu0 %v902_v9  ;;  %v506_v45 = vunpack.c.0.s8 %v505_v44  ;;  %v945_v62 = vld [vmem:[%s1177_s3 + $0x18] sm:$0xff] (!%p827_p6)   ;;  %v946_v63 = vld [vmem:[%s1177_s3 + $0x60] sm:$0xff] (!%p827_p6)   ;;  %v949_v7 = vld [vmem:[%s1177_s3 + $0x28] sm:$0xff] (!%p827_p6)  }
  0x26   : > { %v947_v2 = vld [vmem:[%s1177_s3 + $0x20] sm:$0xff] (!%p827_p6)   ;;  %v950_v9 = vld [vmem:[%s1177_s3 + $0x70] sm:$0xff] (!%p827_p6)  }
  0x27   : > { %v509_v47 = vsub.s32 %v506_v45, %v1061_v16  ;;  %v519_v4 = vld [vmem:[%s1176_s2] sm:$0x3] (!%p827_p6)  ;;  %v951_v12 = vld [vmem:[%s1177_s3 + $0x30] sm:$0xff] (!%p827_p6)   ;;  %v953_v16 = vld [vmem:[%s1177_s3 + $0x38] sm:$0xff] (!%p827_p6)  }
  0x28   : > { %469 = vmatpush1.bf16.msra.mxu0 %v904_v13  ;;  %v524_v5 = vrot.slane (!%p827_p6), %v519_v4, %v523_v0  ;;  %v528_v6 = vrot.slane (!%p827_p6), %v519_v4, %v527_v1 }
  0x29   : > { %470 = vmatprep.subr.bf16.mxu0 %v905_v14  ;;  %v952_v14 = vld [vmem:[%s1177_s3 + $0x78] sm:$0xff] (!%p827_p6)  }
  0x2a   : > { %v529_v8 = vcombine.low (!%p827_p6), %v524_v5, %v528_v6 }
  0x2c   : > { %471 = vmatpush1.bf16.msra.mxu0 %v907_v17  ;;  %v536_v11 = vrot.slane (!%p827_p6), %v529_v8, %v509_v47 }
  0x2d   : > { %472 = vmatprep.subr.bf16.mxu0 %v908_v18 }
  0x30   : > { %473 = vmatpush1.bf16.msra.mxu0 %v910_v22  ;;  %v828_v22 = vld [vmem:[%s1178_s4] ss:$0 sm:$0xff] (!%p827_p6) }
  0x31   : > { %474 = vmatprep.subr.bf16.mxu0 %v911_v23 }
  0x34   : > { %475 = vmatpush1.bf16.msra.mxu0 %v913_v25 }
  0x35   : > { %476 = vmatprep.subr.bf16.mxu0 %v914_v26 }
  0x38   : > { %477 = vmatpush1.bf16.msra.mxu0 %v916_v27 }
  0x39   : > { %478 = vmatprep.subr.bf16.mxu0 %v917_v28 }
  0x3c   : > { %479 = vmatpush1.bf16.msra.mxu0 %v919_v29 }
  0x3d   : > { %480 = vmatprep.subr.bf16.mxu0 %v920_v30 }
  0x40   : > { %481 = vmatpush1.bf16.msra.mxu0 %v922_v31 }
  0x41   : > { %482 = vmatprep.subr.bf16.mxu0 %v923_v32 }
  0x44   : > { %483 = vmatpush1.bf16.msra.mxu0 %v925_v33 }
  0x45   : > { %484 = vmatprep.subr.bf16.mxu0 %v926_v34 }
  0x48   : > { %485 = vmatpush1.bf16.msra.mxu0 %v928_v35 }
  0x49   : > { %486 = vmatprep.subr.bf16.mxu0 %v929_v36 }
  0x4c   : > { %487 = vmatpush1.bf16.msra.mxu0 %v931_v37 }
  0x4d   : > { %488 = vmatprep.subr.bf16.mxu0 %v932_v38 }
  0x50   : > { %489 = vmatpush1.bf16.msra.mxu0 %v934_v39 }
  0x51   : > { %490 = vmatprep.subr.bf16.mxu0 %v935_v40 }
  0x54   : > { %491 = vmatpush1.bf16.msra.mxu0 %v937_v41 }
  0x55   : > { %850 = vmatprep.subr.bf16.mxu0 (!%p827_p6), %v938_v55 }
  0x57   : > { %493 = vmatmul.mubr.bf16.vlgmr.msra.gmra.mrb[0].mxu0 %v290_v42 }
  0x58   : > { %851 = vmatpush3.bf16.msra.mxu0 (!%p827_p6), %v939_v56 }
  0x59   : > { %852 = vmatprep.subr.bf16.mxu0 (!%p827_p6), %v940_v57 }
  0x5c   : > { %853 = vmatpush3.bf16.msra.mxu0 (!%p827_p6), %v941_v58 }
  0x5d   : > { %854 = vmatprep.subr.bf16.mxu0 (!%p827_p6), %v942_v59 }
  0x60   : > { %855 = vmatpush3.bf16.msra.mxu0 (!%p827_p6), %v943_v60 }
  0x61   : > { %856 = vmatprep.subr.bf16.mxu0 (!%p827_p6), %v944_v61 }
  0x64   : > { %857 = vmatpush3.bf16.msra.mxu0 (!%p827_p6), %v945_v62 }
  0x65   : > { %858 = vmatprep.subr.bf16.mxu0 (!%p827_p6), %v946_v63 }
  0x68   : > { %859 = vmatpush3.bf16.msra.mxu0 (!%p827_p6), %v947_v2 }
  0x69   : > { %860 = vmatprep.subr.bf16.mxu0 (!%p827_p6), %v948_v3 }
  0x6c   : > { %861 = vmatpush3.bf16.msra.mxu0 (!%p827_p6), %v949_v7 }
  0x6d   : > { %862 = vmatprep.subr.bf16.mxu0 (!%p827_p6), %v950_v9 }
  0x70   : > { %863 = vmatpush3.bf16.msra.mxu0 (!%p827_p6), %v951_v12 }
  0x71   : > { %864 = vmatprep.subr.bf16.mxu0 (!%p827_p6), %v952_v14 }
  0x74   : > { %865 = vmatpush3.bf16.msra.mxu0 (!%p827_p6), %v953_v16 }
 0x12a   : > { %v494_v46 = vpop.f32.mrb[0].mxu0 }
 0x12b   : > { %v496_v48 = vpop.f32.mrb[1].mxu0 }
 0x12c   : > { %v503_v49 = vcombine.low %v494_v46, %v496_v48  ;;  %v498_v50 = vpop.f32.mrb[2].mxu0  ;;  %517 = sbr.rel (%p827_p6) target bundleno = 543 (0x21f), region = 48 }
 0x12d   : > { %v499_v52 = vpop.f32.mrb[3].mxu0 }
 0x12e   : > { %v510_v53 = vrot.slane %v503_v49, %v509_v47 }
 0x130   : > { %v512_v54 = vadd.f32 %v510_v53, %v241_v51 }
 0x132   : > { %513 = vst [vmem:[#allocation2] sm:$0xf] %v512_v54 }
 0x139   : > { %v518_v10 = vld [vmem:[#allocation2] sm:$0xf] }
 0x13a   : > { %v538_v13 = vadd.f32 %v536_v11, %v518_v10 }
 0x13c   : > { %v539_v15 = vmax.f32 %v538_v13, 0.0 }
 0x13e   : > { %v547_v17 = vrot.slane %v539_v15, %v509_v47 }
 0x140   : > { %v548_v18 = vcombine.high %v547_v17, %v547_v17  ;;  %v551_v19 = vpack.c.bf16 %v547_v17, %v547_v17 }
 0x142   : > { %v552_v20 = vpack.c.bf16 %v548_v18, %v548_v18 }
 0x144   : > { %720 = vmatprep.mubr.bf16.mxu0 %v552_v20 }
 0x145   : > { %721 = vmatmul.mubr.bf16.vlgmr.msra.gmra.mrb[0].mxu0 %v551_v19 }
 0x218   : > { %v866_v21 = vpop.f32.mrb[0].mxu0 }
 0x219   : > { %v867_v23 = vpop.f32.mrb[1].mxu0 }
 0x21a   : > { %v868_v24 = vadd.f32 %v867_v23, %v866_v21  ;;  %v869_v25 = vpop.f32.mrb[2].mxu0 }
 0x21b   : > { %v870_v26 = vpop.f32.mrb[3].mxu0 }
 0x21c   : > { %v723_v27 = vadd.f32 %v868_v24, %v828_v22 }
 0x21e   : > { %729 = vst.msk [vmem:[#allocation3] sm:$0x3] %vm728_vm0, %v723_v27 }
 0x21f PF: > { %p876_p7 = scmp.eq.s32.totalorder %s1032_s19, 1  ;;  %s995_s21 = smov [#allocation3]  }
 0x220   : > { %s737_s22 = sshll.u32 %s995_s21, 4  ;;  %s738_s22 = int_to_ptr.vmem [resolvable:$true] %s737_s22 }
 0x221   : > { %s954_s23 = scalar_lea.vmem %s738_s22, 32  ;;  %p961_p11 = scmp.lt.s32.totalorder %s738_s22, %s738_s22 }
 0x222   : > { %p955_p8 = scmp.ne.s32.totalorder %s738_s22, %s954_s23  ;;  %p962_p12 = scmp.lt.s32.totalorder %s954_s23, %s954_s23 }
 0x224   : > { %p956_p9 = pnand %p955_p8, %p876_p7  ;;  %p963_p13 = por %p962_p12, %p961_p11 }
 0x226   : > { %p957_p10 = pneg %p956_p9 }
 0x228   : > { %p964_p0 = pnand %p963_p13, %p957_p10 }
 0x22a   : > { %967 = shalt.err (!%p964_p0)
}
 0x22b   : > { %s968_s26 = scalar_lea.hbm %s1179_s5, 32 }
 0x22c   : > { %p969_p1 = scmp.ne.s32.totalorder %s1179_s5, %s968_s26  ;;  %p974_p4 = scmp.lt.u32.totalorder %s968_s26, %s1179_s5 }
 0x22e   : > { %p970_p2 = pnand %p969_p1, %p876_p7 }
 0x230   : > { %p971_p3 = pneg %p970_p2 }
 0x232   : > { %p976_p5 = pnand %p974_p4, %p971_p3 }
 0x234   : > { %979 = shalt.err (!%p976_p5)
}
 0x235   : > { %873 = dma.vmem_to_hbm [thread:$0]  (%p876_p7), %s738_s22, 32, %s1179_s5, [#allocation4]  }
 0x236   : > { %985 = dma.done.wait (%p876_p7), [#allocation4], 32  }
 0x237   : > { %987 = vsyncadd (%p876_p7), [#allocation4], 4294967264 }
 0x238 PF: > { %s16_s18 = sadd.s32 1, %s990_s18  }
 0x239   : > { %p13_p6 = scmp.ge.s32.totalorder %s16_s18, 4  }
 0x23b   :  { %15 = sbr.rel (!%p13_p6) target bundleno = 1 (0x1), region = 78 }
 0x242   :  { %750 = vsyncpa [#allocation4], 1 }
 0x243   :  { %752 = vsyncpa [#allocation4 + $0x1], 1 }

// kernel: simple_cnn_forward.2
= control target key start
LH: loop header
LB: loop body
LE: loop exit
PB: predicated region body
PF: predicated region fallthrough
CT: control target
= control target key end

     0   :  { %s6387_s24 = smov 0   ;;  %s8276_s0 = inlined_call_operand.vmem [shape: bf16[2,18,18,3], index: 0, kind: input, shape index: {}]   ;;  %s8277_s1 = inlined_call_operand.vmem [shape: bf16[27,32], index: 1, kind: input, shape index: {}]   ;;  %s8278_s2 = inlined_call_operand.vmem [shape: f32[1,32], index: 2, kind: input, shape index: {}]   ;;  %s8279_s3 = inlined_call_operand.vmem [shape: bf16[288,64], index: 3, kind: input, shape index: {}]   ;;  %s8280_s4 = inlined_call_operand.vmem [shape: f32[1,64], index: 4, kind: input, shape index: {}]   ;;  %s8281_s5 = inlined_call_operand.vmem [shape: bf16[576,128], index: 5, kind: input, shape index: {}]   ;;  %s8282_s6 = inlined_call_operand.vmem [shape: f32[1,128], index: 6, kind: input, shape index: {}]   ;;  %s8283_s7 = inlined_call_operand.vmem [shape: bf16[2,2,256], index: 7, kind: output, shape index: {}]  }
   0x1 LB: > { %s5564_s25 = sadd.s32 4294967295, %s6327_s24   ;;  %p5568_p0 = scmp.ge.s32.totalorder %s6327_s24, 1  ;;  %s6327_s24 = sphi %s6387_s24, %s17_s24  }
   0x2   : > { %p237_p1 = scmp.lt.s32.totalorder %s6327_s24, 3 }
   0x4   : > { %p238_p2 = pnand %p5568_p0, %p237_p1 }
   0x5   : > { %p268_p3 = scmp.lt.s32.totalorder (!%p238_p2), %s5564_s25, 1  ;;  %vm772_vm0 = vcmask (!%p238_p2), 1042432   ;;  %vm773_vm1 = vcmask (!%p238_p2), 1046532   ;;  %vm337_vm2 = vsmask.f32 (!%p238_p2), 3328  ;;  %s6329_s30 = smov (!%p238_p2), 9  }
   0x6   : > { %241 = sbr.rel (%p238_p2) target bundleno = 1467 (0x5bb), region = 48  ;;  %vm338_vm3 = vsmask.f32 (!%p238_p2), 7440  ;;  %vm6423_vm4 = vmor (!%p238_p2), %vm772_vm0, %vm773_vm1  ;;  %s6330_s8 = smov (!%p238_p2), 15   ;;  %vm1703_vm6 = vcmask (!%p238_p2), 1044480   ;;  %vm1704_vm7 = vcmask (!%p238_p2), 1045504  }
   0x7   : > { %vm6458_vm5 = vmor (!%p238_p2), %vm337_vm2, %vm338_vm3  ;;  %s6331_s9 = smov (!%p238_p2), 6   ;;  %s6332_s10 = smov (!%p238_p2), 3   ;;  %vm1373_vm8 = vcmask (!%p238_p2), 23552   ;;  %vm1422_vm9 = vcmask (!%p238_p2), 48128   ;;  %vm1455_vm10 = vcmask (!%p238_p2), 72704   ;;  %vm1488_vm11 = vcmask (!%p238_p2), 97280  }
   0x8   : > { %s6333_s13 = smov (!%p238_p2), 12   ;;  %s6334_s14 = smov (!%p238_p2), 18   ;;  %vm1521_vm12 = vcmask (!%p238_p2), 121856   ;;  %vm1554_vm13 = vcmask (!%p238_p2), 146432   ;;  %vm1587_vm14 = vcmask (!%p238_p2), 171008   ;;  %vm1620_vm15 = vcmask (!%p238_p2), 195584  }
   0x9   : > { %s6335_s15 = smov (!%p238_p2), 21   ;;  %s6336_s16 = smov (!%p238_p2), 24   ;;  %vm1670_vm0 = vcmask (!%p238_p2), 220160   ;;  %vm2993_vm1 = vcmask (!%p238_p2), 253952   ;;  %vm2991_vm2 = vcmask (!%p238_p2), 257024  }
   0xa   : > { %vm3483_vm3 = vsmask.f32 (!%p238_p2), 256  ;;  %s6340_s21 = smov (!%p238_p2), 64   ;;  %s6341_s22 = smov (!%p238_p2), 96  }
   0xd   : > { %s8299_s25 = smov (!%p268_p3, %s5564_s25), 1 }
   0xe   : > { %s6203_s26 = smul.u32 216, %s8299_s25  ;;  %s5570_s18 = sshll.u32 %s8299_s25, 1 }
   0xf   : > { %s276_s23 = scalar_lea.vmem %s8283_s7, %s5570_s18 }
  0x10   : > { %s6401_s29 = scalar_lea.vmem %s8276_s0, %s6203_s26 }
  0x11   : > { %v6404_v0 = vld [vmem:[%s6401_s29 + $0x18] sm:$0xf]  ;;  %v6407_v1 = vld [vmem:[%s6401_s29 + $0x1c] sm:$0xf]  ;;  %v281_v2 = vld [vmem:[%s6401_s29 + $0xc] sm:$0xf] }
  0x12   : > { %v402_v3 = vshrl.u32 %v6407_v1, 16  ;;  %v6413_v4 = vcombine.low %v6404_v0, %v6407_v1  ;;  %v389_v5 = vshrl.u32 %v6404_v0, 16  ;;  %v392_v6 = vshll.u32 %v6404_v0, 16  ;;  %v282_v7 = vld [vmem:[%s6401_s29 + $0x10] sm:$0xf] }
  0x13   : > { %v374_v8 = vshll.u32 %v282_v7, 16  ;;  %v378_v9 = vshrl.u32 %v282_v7, 16  ;;  %v6418_v10 = vcombine.low %v281_v2, %v282_v7  ;;  %v365_v11 = vshrl.u32 %v281_v2, 16  ;;  %v283_v12 = vld [vmem:[%s6401_s29 + $0x14] sm:$0x1] }
  0x14   : > { %1168 = vrot.lane.b32.xlu1 %v6413_v4, %s6329_s30  ;;  %v368_v14 = vshll.u32 %v281_v2, 16  ;;  %v5572_v15 = vrot.slane %v281_v2, 9  ;;  %v784_v16 = vrot.slane %v282_v7, 5  ;;  %v787_v17 = vrot.slane %v283_v12, 5  ;;  %v6430_v18 = vld [vmem:[%s6401_s29] sm:$0xf] }
  0x15   : > { %v380_v19 = vrot.slane %v378_v9, 4  ;;  %1166 = vrot.lane.b32.xlu0 %v6418_v10, %s6329_s30  ;;  %v367_v20 = vrot.slane %v365_v11, 4  ;;  %v6435_v21 = vld [vmem:[%s6401_s29 + $0x4] sm:$0xf]  ;;  %v280_v22 = vld [vmem:[%s6401_s29 + $0x8] sm:$0x1] }
  0x16   : > { %v370_v23 = vrot.slane %v368_v14, 5  ;;  %v785_v24 = vsel %vm6423_vm4, %v5572_v15, %v784_v16  ;;  %v786_v25 = vrot.slane %v784_v16, 4  ;;  %v5571_v26 = vrot.slane %v6430_v18, 9  ;;  %v286_v35 = vld [vmem:[%s6401_s29 + $0x20] sm:$0x1] }
  0x17   : > { %v777_v27 = vrot.slane %v6435_v21, 5  ;;  %v780_v28 = vrot.slane %v280_v22, 5  ;;  %v341_v29 = vshrl.u32 %v6430_v18, 16  ;;  %v344_v30 = vshll.u32 %v6430_v18, 16  ;;  %v6472_v7 = vld [vmem:[%s6401_s29 + $0x24] sm:$0xf] }
  0x18   : > { %v788_v31 = vsel %vm6423_vm4, %v786_v25, %v787_v17  ;;  %v350_v32 = vshll.u32 %v6435_v21, 16  ;;  %v354_v33 = vshrl.u32 %v6435_v21, 16  ;;  %v360_v34 = vshll.u32 %v280_v22, 16 }
  0x19   : > { %v5622_v36 = vcombine.low %v785_v24, %v788_v31  ;;  %v778_v37 = vsel %vm6423_vm4, %v5571_v26, %v777_v27  ;;  %v779_v38 = vrot.slane %v777_v27, 4  ;;  %v343_v39 = vrot.slane %v341_v29, 4  ;;  %v289_v26 = vld [vmem:[%s6401_s29 + $0x2c] sm:$0x1] }
  0x1a   : > { %v346_v40 = vrot.slane %v344_v30, 5  ;;  %v352_v41 = vrot.slane %v350_v32, 5  ;;  %v356_v42 = vrot.slane %v354_v33, 4  ;;  %v362_v43 = vrot.slane %v360_v34, 5  ;;  %v6241_v33 = vld [vmem:[%s8277_s1] sm:$0xff]  }
  0x1b   : > { %1236 = vrot.lane.b32.xlu0 %v5622_v36, %s6330_s8  ;;  %v781_v44 = vsel %vm6423_vm4, %v779_v38, %v780_v28  ;;  %v5573_v45 = vrot.slane %v6404_v0, 9  ;;  %v791_v46 = vrot.slane %v6407_v1, 5  ;;  %v794_v47 = vrot.slane %v286_v35, 5  ;;  %6143 = vmatprep.subr.bf16.mxu0 %v6241_v33 }
  0x1c   : > { %v5621_v48 = vcombine.low %v778_v37, %v781_v44  ;;  %v347_v49 = vor.u32 %v346_v40, %v343_v39  ;;  %v357_v50 = vor.u32 %v356_v42, %v352_v41  ;;  %v371_v51 = vor.u32 %v370_v23, %v367_v20  ;;  %6144 = vmatpush3.bf16.msra.mxu0 %v6241_v33 }
  0x1d   : > { %v792_v53 = vsel %vm6423_vm4, %v5573_v45, %v791_v46  ;;  %v793_v54 = vrot.slane %v791_v46, 4  ;;  %v376_v55 = vrot.slane %v374_v8, 5  ;;  %v384_v56 = vshll.u32 %v283_v12, 16  ;;  %v6483_v12 = vld [vmem:[%s6401_s29 + $0x28] sm:$0xf] }
  0x1e   : > { %1131 = vrot.lane.b32.xlu1 %v5621_v48, %s6331_s9  ;;  %v348_v57 = vrot.slane %v347_v49, 4  ;;  %v358_v58 = vrot.slane %v357_v50, 4  ;;  %v372_v59 = vrot.slane %v371_v51, 4  ;;  %v391_v60 = vrot.slane %v389_v5, 4  ;;  %v290_v48 = vld [vmem:[%s6401_s29 + $0x30] sm:$0xf] }
  0x1f   : > { %v795_v61 = vsel %vm6423_vm4, %v793_v54, %v794_v47  ;;  %v381_v62 = vor.u32 %v380_v19, %v376_v55  ;;  %v386_v63 = vrot.slane %v384_v56, 5  ;;  %v394_v2 = vrot.slane %v392_v6, 5  ;;  %v291_v49 = vld [vmem:[%s6401_s29 + $0x34] sm:$0xf] }
  0x20   : > { %v353_v8 = vsel %vm6458_vm5, %v348_v57, %v352_v41  ;;  %v363_v9 = vsel %vm6458_vm5, %v358_v58, %v362_v43  ;;  %v6478_v11 = vcombine.low %v792_v53, %v795_v61  ;;  %v377_v5 = vsel %vm6458_vm5, %v372_v59, %v376_v55  ;;  %v292_v61 = vld [vmem:[%s6401_s29 + $0x38] sm:$0x1] }
  0x21   : > { %v5605_v14 = vcombine.low %v353_v8, %v363_v9  ;;  %v382_v15 = vrot.slane %v381_v62, 4  ;;  %v395_v0 = vor.u32 %v394_v2, %v391_v60  ;;  %v398_v6 = vshll.u32 %v6407_v1, 16 }
  0x22   : > { %1133 = vrot.lane.b32.xlu1 %v5622_v36, %s6331_s9  ;;  %v404_v16 = vrot.slane %v402_v3, 4  ;;  %v408_v17 = vshll.u32 %v286_v35, 16  ;;  %v413_v19 = vshrl.u32 %v6472_v7, 16  ;;  %v416_v20 = vshll.u32 %v6472_v7, 16 }
  0x23   : > { %1051 = vrot.lane.b32.xlu0 %v5605_v14, %s6332_s10  ;;  %v387_v22 = vsel %vm6458_vm5, %v382_v15, %v386_v63  ;;  %v396_v23 = vrot.slane %v395_v0, 4  ;;  %v400_v24 = vrot.slane %v398_v6, 5  ;;  %v426_v25 = vshrl.u32 %v6483_v12, 16  ;;  %v293_v14 = vld [vmem:[%s6401_s29 + $0x3c] sm:$0xf] }
  0x24   : > { %v5606_v27 = vcombine.low %v377_v5, %v387_v22  ;;  %v415_v28 = vrot.slane %v413_v19, 4  ;;  %v410_v3 = vrot.slane %v408_v17, 5  ;;  %v418_v29 = vrot.slane %v416_v20, 5  ;;  %v294_v15 = vld [vmem:[%s6401_s29 + $0x40] sm:$0xf] }
  0x25   : > { %v405_v1 = vor.u32 %v404_v16, %v400_v24  ;;  %v422_v30 = vshll.u32 %v6483_v12, 16  ;;  %v428_v31 = vrot.slane %v426_v25, 4  ;;  %v432_v32 = vshll.u32 %v289_v26, 16 }
  0x26   : > { %1238 = vrot.lane.b32.xlu1 %v6478_v11, %s6330_s8  ;;  %v401_v34 = vsel %vm6458_vm5, %v396_v23, %v400_v24  ;;  %v419_v36 = vor.u32 %v418_v29, %v415_v28  ;;  %v798_v44 = vrot.slane %v6483_v12, 5  ;;  %v6512_v45 = vcombine.low %v6472_v7, %v6483_v12 }
  0x27   : > { %1053 = vrot.lane.b32.xlu0 %v5606_v27, %s6332_s10  ;;  %v406_v35 = vrot.slane %v405_v1, 4  ;;  %v424_v37 = vrot.slane %v422_v30, 5  ;;  %v434_v41 = vrot.slane %v432_v32, 5  ;;  %v5574_v50 = vrot.slane %v6472_v7, 9  ;;  %v295_v32 = vld [vmem:[%s6401_s29 + $0x44] sm:$0x1] }
  0x28   : > { %v420_v39 = vrot.slane %v419_v36, 4  ;;  %v800_v51 = vrot.slane %v798_v44, 4  ;;  %v801_v53 = vrot.slane %v289_v26, 5  ;;  %v437_v55 = vshrl.u32 %v290_v48, 16 }
  0x29   : > { %v411_v38 = vsel %vm6458_vm5, %v406_v35, %v410_v3  ;;  %v429_v40 = vor.u32 %v428_v31, %v424_v37  ;;  %v440_v56 = vshll.u32 %v290_v48, 16  ;;  %v450_v57 = vshrl.u32 %v291_v49, 16 }
  0x2a   : > { %v5607_v42 = vcombine.low %v401_v34, %v411_v38  ;;  %v425_v46 = vsel %vm6458_vm5, %v420_v39, %v424_v37  ;;  %v446_v58 = vshll.u32 %v291_v49, 16  ;;  %v799_v59 = vsel %vm6423_vm4, %v5574_v50, %v798_v44  ;;  %v6564_v44 = vld [vmem:[%s6401_s29 + $0x48] sm:$0xf] }
  0x2b   : > { %1201 = vrot.lane.b32.xlu0 %v5606_v27, %s6333_s13  ;;  %v430_v43 = vrot.slane %v429_v40, 4  ;;  %v802_v60 = vsel %vm6423_vm4, %v800_v51, %v801_v53  ;;  %v439_v62 = vrot.slane %v437_v55, 4  ;;  %v442_v63 = vrot.slane %v440_v56, 5 }
  0x2c   : > { %1203 = vrot.lane.b32.xlu1 %v5607_v42, %s6333_s13  ;;  %v448_v2 = vrot.slane %v446_v58, 5  ;;  %v452_v7 = vrot.slane %v450_v57, 4  ;;  %v5624_v8 = vcombine.low %v799_v59, %v802_v60  ;;  %v456_v9 = vshll.u32 %v292_v61, 16  ;;  %v298_v59 = vld [vmem:[%s6401_s29 + $0x50] sm:$0x1] }
  0x2d   : > { %v435_v47 = vsel %vm6458_vm5, %v430_v43, %v434_v41  ;;  %v443_v5 = vor.u32 %v442_v63, %v439_v62  ;;  %v805_v6 = vrot.slane %v291_v49, 5  ;;  %v461_v16 = vshrl.u32 %v293_v14, 16 }
  0x2e   : > { %v5608_v54 = vcombine.low %v425_v46, %v435_v47  ;;  %v453_v12 = vor.u32 %v452_v7, %v448_v2  ;;  %v458_v0 = vrot.slane %v456_v9, 5  ;;  %v464_v17 = vshll.u32 %v293_v14, 16 }
  0x2f   : > { %1271 = vrot.lane.b32.xlu0 %v6413_v4, %s6334_s14  ;;  %v444_v19 = vrot.slane %v443_v5, 4  ;;  %v474_v22 = vshrl.u32 %v294_v15, 16  ;;  %v470_v23 = vshll.u32 %v294_v15, 16  ;;  %v6541_v24 = vcombine.low %v290_v48, %v291_v49  ;;  %v6573_v49 = vld [vmem:[%s6401_s29 + $0x4c] sm:$0xf] }
  0x30   : > { %1273 = vrot.lane.b32.xlu1 %v6512_v45, %s6334_s14  ;;  %v454_v20 = vrot.slane %v453_v12, 4  ;;  %v5575_v25 = vrot.slane %v290_v48, 9  ;;  %v807_v26 = vrot.slane %v805_v6, 4  ;;  %v808_v27 = vrot.slane %v292_v61, 5  ;;  %v6242_v61 = vld [vmem:[%s8277_s1 + $0x8] sm:$0x3f]  }
  0x31   : > { %v463_v28 = vrot.slane %v461_v16, 4  ;;  %v466_v1 = vrot.slane %v464_v17, 5  ;;  %v449_v3 = vsel %vm6458_vm5, %v444_v19, %v448_v2  ;;  %v472_v30 = vrot.slane %v470_v23, 5  ;;  %v6596_v17 = vld [vmem:[%s6401_s29 + $0x54] sm:$0xf] }
  0x32   : > { %v459_v29 = vsel %vm6458_vm5, %v454_v20, %v458_v0  ;;  %v476_v31 = vrot.slane %v474_v22, 4  ;;  %v806_v33 = vsel %vm6423_vm4, %v5575_v25, %v805_v6  ;;  %v809_v34 = vsel %vm6423_vm4, %v807_v26, %v808_v27  ;;  %v300_v19 = vld [vmem:[%s6401_s29 + $0x58] sm:$0xf] }
  0x33   : > { %1306 = vrot.lane.b32.xlu0 %v5607_v42, %s6335_s15  ;;  %v467_v35 = vor.u32 %v466_v1, %v463_v28  ;;  %v480_v37 = vshll.u32 %v295_v32, 16  ;;  %v5625_v38 = vcombine.low %v806_v33, %v809_v34  ;;  %v812_v43 = vrot.slane %v294_v15, 5 }
  0x34   : > { %1308 = vrot.lane.b32.xlu1 %v5608_v54, %s6335_s15  ;;  %v477_v36 = vor.u32 %v476_v31, %v472_v30  ;;  %v5589_v46 = vcombine.low %v6430_v18, %v6435_v21  ;;  %v5576_v50 = vrot.slane %v293_v14, 9  ;;  %v815_v51 = vrot.slane %v295_v32, 5 }
  0x35   : > { %v468_v39 = vrot.slane %v467_v35, 4  ;;  %v482_v41 = vrot.slane %v480_v37, 5  ;;  %v485_v53 = vshrl.u32 %v6564_v44, 16  ;;  %v814_v55 = vrot.slane %v812_v43, 4  ;;  %v301_v37 = vld [vmem:[%s6401_s29 + $0x5c] sm:$0x1] }
  0x36   : > { %v478_v40 = vrot.slane %v477_v36, 4  ;;  %v488_v56 = vshll.u32 %v6564_v44, 16  ;;  %v498_v57 = vshrl.u32 %v6573_v49, 16  ;;  %v494_v58 = vshll.u32 %v6573_v49, 16 }
  0x37   : > { %1341 = vrot.lane.b32.xlu0 %v6478_v11, %s6336_s16  ;;  %v473_v47 = vsel %vm6458_vm5, %v468_v39, %v472_v30  ;;  %v813_v60 = vsel %vm6423_vm4, %v5576_v50, %v812_v43  ;;  %v816_v62 = vsel %vm6423_vm4, %v814_v55, %v815_v51  ;;  %v487_v63 = vrot.slane %v485_v53, 4 }
  0x38   : > { %1055 = vrot.lane.b32.xlu1 %v5607_v42, %s6332_s10  ;;  %v6561_v42 = vcombine.low %v293_v14, %v294_v15  ;;  %v483_v48 = vsel %vm6458_vm5, %v478_v40, %v482_v41  ;;  %v490_v2 = vrot.slane %v488_v56, 5  ;;  %v500_v7 = vrot.slane %v498_v57, 4  ;;  %v302_v56 = vld [vmem:[%s6401_s29 + $0x60] sm:$0xf]  ;;  %v303_v57 = vld [vmem:[%s6401_s29 + $0x64] sm:$0xf] }
  0x39   : > { %v6337_v9 = vmov 65535   ;;  %v5626_v12 = vcombine.low %v813_v60, %v816_v62  ;;  %v504_v14 = vshll.u32 %v298_v59, 16  ;;  %v819_v22 = vrot.slane %v6573_v49, 5 }
  0x3a   : > { %v1705_v5 = vsel %vm1703_vm6, 4294967295, %v6337_v9  ;;  %v491_v0 = vor.u32 %v490_v2, %v487_v63  ;;  %v509_v25 = vshrl.u32 %v6596_v17, 16  ;;  %v512_v26 = vshll.u32 %v6596_v17, 16 }
  0x3b   : > { %1343 = vrot.lane.b32.xlu0 %v5624_v8, %s6336_s16  ;;  %v1706_v15 = vsel %vm1704_vm7, %v1705_v5, 0  ;;  %v506_v20 = vrot.slane %v504_v14, 5  ;;  %v522_v27 = vshrl.u32 %v300_v19, 16  ;;  %v518_v1 = vshll.u32 %v300_v19, 16  ;;  %v304_v14 = vld [vmem:[%s6401_s29 + $0x68] sm:$0x1] }
  0x3c   : > { %1057 = vrot.lane.b32.xlu1 %v5608_v54, %s6332_s10  ;;  %v1708_v6 = vand.u32 %v6242_v61, %v1706_v15  ;;  %v492_v23 = vrot.slane %v491_v0, 4  ;;  %v821_v30 = vrot.slane %v819_v22, 4  ;;  %v822_v31 = vrot.slane %v298_v59, 5 }
  0x3d   : > { %v511_v32 = vrot.slane %v509_v25, 4  ;;  %v520_v35 = vrot.slane %v518_v1, 5  ;;  %v524_v36 = vrot.slane %v522_v27, 4  ;;  %v6629_v51 = vcombine.low %v6596_v17, %v300_v19 }
  0x3e   : > { %6145 = vmatprep.subr.bf16.mxu0 %v1708_v6  ;;  %v823_v40 = vsel %vm6423_vm4, %v821_v30, %v822_v31  ;;  %v826_v53 = vrot.slane %v300_v19, 5  ;;  %v829_v59 = vrot.slane %v301_v37, 5  ;;  %v533_v62 = vshrl.u32 %v302_v56, 16 }
  0x3f   : > { %1135 = vrot.lane.b32.xlu0 %v6478_v11, %s6331_s9  ;;  %v5609_v11 = vcombine.low %v449_v3, %v459_v29  ;;  %6146 = vmatpush3.bf16.msra.mxu0 %v1708_v6  ;;  %v6607_v3 = vcombine.low %v6564_v44, %v6573_v49  ;;  %v5577_v29 = vrot.slane %v6564_v44, 9  ;;  %v525_v43 = vor.u32 %v524_v36, %v520_v35 }
  0x40   : > { %1137 = vrot.lane.b32.xlu1 %v5624_v8, %s6331_s9  ;;  %v528_v44 = vshll.u32 %v301_v37, 16  ;;  %v828_v61 = vrot.slane %v826_v53, 4  ;;  %v536_v63 = vshll.u32 %v302_v56, 16  ;;  %v546_v2 = vshrl.u32 %v303_v57, 16 }
  0x41   : > { %v820_v39 = vsel %vm6423_vm4, %v5577_v29, %v819_v22  ;;  %v526_v49 = vrot.slane %v525_v43, 4  ;;  %v535_v5 = vrot.slane %v533_v62, 4  ;;  %v6655_v22 = vld [vmem:[%s6401_s29 + $0x70] sm:$0xf]  ;;  %v6664_v31 = vcombine.low %v302_v56, %v303_v57  ;;  %v6701_v62 = vld [vmem:[%s6401_s29 + $0x78] sm:$0xf] }
  0x42   : > { %v530_v50 = vrot.slane %v528_v44, 5  ;;  %v830_v9 = vsel %vm6423_vm4, %v828_v61, %v829_v59  ;;  %v548_v0 = vrot.slane %v546_v2, 4  ;;  %v570_v29 = vshrl.u32 %v6655_v22, 16 }
  0x43   : > { %1170 = vrot.lane.b32.xlu0 %v6512_v45, %s6329_s30  ;;  %v566_v30 = vshll.u32 %v6655_v22, 16  ;;  %v840_v59 = vrot.slane %v6655_v22, 5  ;;  %v5581_v21 = vrot.slane %v6701_v62, 9  ;;  %vm3335_vm6 = vcmask 1042434  }
  0x44   : > { %1172 = vrot.lane.b32.xlu1 %v6541_v24, %s6329_s30  ;;  %vm3338_vm7 = vcmask 1043459  }
  0x47   : > { %1205 = vrot.lane.b32.xlu0 %v5608_v54, %s6333_s13  ;;  %v5610_v54 = vcombine.low %v473_v47, %v483_v48  ;;  %v5627_v47 = vcombine.low %v820_v39, %v823_v40  ;;  %v572_v39 = vrot.slane %v570_v29, 4  ;;  %v307_v40 = vld [vmem:[%s6401_s29 + $0x74] sm:$0x1] }
  0x48   : > { %1207 = vrot.lane.b32.xlu1 %v5609_v11, %s6333_s13 }
  0x4b   : > { %1240 = vrot.lane.b32.xlu0 %v5624_v8, %s6330_s8  ;;  %v496_v8 = vrot.slane %v494_v58, 5  ;;  %v5578_v58 = vrot.slane %v6596_v17, 9  ;;  %v552_v17 = vshll.u32 %v304_v14, 16 }
  0x4c   : > { %1242 = vrot.lane.b32.xlu1 %v5625_v38, %s6330_s8 }
  0x4d   : > { %v501_v16 = vor.u32 %v500_v7, %v496_v8  ;;  %v497_v33 = vsel %vm6458_vm5, %v492_v23, %v496_v8  ;;  %v542_v7 = vshll.u32 %v303_v57, 16  ;;  %v827_v8 = vsel %vm6423_vm4, %v5578_v58, %v826_v53 }
  0x4e   : > { %v5628_v6 = vcombine.low %v827_v8, %v830_v9  ;;  %v554_v25 = vrot.slane %v552_v17, 5  ;;  %v843_v8 = vrot.slane %v307_v40, 5 }
  0x4f   : > { %1275 = vrot.lane.b32.xlu0 %v6541_v24, %s6334_s14  ;;  %v502_v28 = vrot.slane %v501_v16, 4  ;;  %v544_v15 = vrot.slane %v542_v7, 5 }
  0x50   : > { %1277 = vrot.lane.b32.xlu1 %v6561_v42, %s6334_s14 }
  0x51   : > { %v507_v34 = vsel %vm6458_vm5, %v502_v28, %v506_v20  ;;  %v549_v19 = vor.u32 %v548_v0, %v544_v15  ;;  %v6652_v20 = vld [vmem:[%s6401_s29 + $0x6c] sm:$0xf] }
  0x52   : > { %v557_v27 = vshrl.u32 %v6652_v20, 16  ;;  %v560_v1 = vshll.u32 %v6652_v20, 16  ;;  %v6693_v58 = vcombine.low %v6652_v20, %v6655_v22  ;;  %v5580_v7 = vrot.slane %v6652_v20, 9  ;;  %v310_v20 = vld [vmem:[%s6401_s29 + $0x80] sm:$0x1] }
  0x53   : > { %1310 = vrot.lane.b32.xlu0 %v5609_v11, %s6335_s15  ;;  %v550_v28 = vrot.slane %v549_v19, 4 }
  0x54   : > { %1312 = vrot.lane.b32.xlu1 %v5610_v54, %s6335_s15  ;;  %v562_v37 = vrot.slane %v560_v1, 5  ;;  %v841_v17 = vsel %vm6423_vm4, %v5580_v7, %v840_v59  ;;  %v600_v1 = vshll.u32 %v310_v20, 16 }
  0x55   : > { %v555_v36 = vsel %vm6458_vm5, %v550_v28, %v554_v25 }
  0x57   : > { %1345 = vrot.lane.b32.xlu0 %v5625_v38, %s6336_s16 }
  0x58   : > { %1059 = vrot.lane.b32.xlu1 %v5609_v11, %s6332_s10  ;;  %v514_v11 = vrot.slane %v512_v26, 5  ;;  %v833_v26 = vrot.slane %v303_v57, 5 }
  0x5a   : > { %v515_v41 = vor.u32 %v514_v11, %v511_v32  ;;  %v5579_v32 = vrot.slane %v302_v56, 9 }
  0x5b   : > { %1347 = vrot.lane.b32.xlu0 %v5626_v12, %s6336_s16 }
  0x5c   : > { %1061 = vrot.lane.b32.xlu1 %v5610_v54, %s6332_s10  ;;  %v516_v48 = vrot.slane %v515_v41, 4  ;;  %v834_v43 = vsel %vm6423_vm4, %v5579_v32, %v833_v26 }
  0x5e   : > { %v521_v55 = vsel %vm6458_vm5, %v516_v48, %v520_v35  ;;  %v559_v35 = vrot.slane %v557_v27, 4 }
  0x5f   : > { %1139 = vrot.lane.b32.xlu0 %v5625_v38, %s6331_s9  ;;  %v5611_v38 = vcombine.low %v497_v33, %v507_v34  ;;  %v835_v33 = vrot.slane %v833_v26, 4  ;;  %v836_v34 = vrot.slane %v304_v14, 5  ;;  %v581_v14 = vshrl.u32 %v6701_v62, 16 }
  0x60   : > { %1141 = vrot.lane.b32.xlu1 %v5626_v12, %s6331_s9 }
  0x61   : > { %v837_v44 = vsel %vm6423_vm4, %v835_v33, %v836_v34  ;;  %v583_v22 = vrot.slane %v581_v14, 4  ;;  %v6735_v33 = vld [vmem:[%s6401_s29 + $0x84] sm:$0xf]  ;;  %v6738_v34 = vld [vmem:[%s6401_s29 + $0x88] sm:$0xf] }
  0x63   : > { %1174 = vrot.lane.b32.xlu0 %v6561_v42, %s6329_s30 }
  0x64   : > { %1176 = vrot.lane.b32.xlu1 %v6607_v3, %s6329_s30 }
  0x67   : > { %1209 = vrot.lane.b32.xlu0 %v5610_v54, %s6333_s13  ;;  %v531_v54 = vsel %vm6458_vm5, %v526_v49, %v530_v50  ;;  %v576_v49 = vshll.u32 %v307_v40, 16  ;;  %v6682_v50 = vcombine.low %v834_v43, %v837_v44  ;;  %v618_v44 = vshrl.u32 %v6738_v34, 16 }
  0x68   : > { %1211 = vrot.lane.b32.xlu1 %v5611_v38, %s6333_s13  ;;  %v5612_v60 = vcombine.low %v521_v55, %v531_v54 }
  0x69   : > { %v578_v56 = vrot.slane %v576_v49, 5 }
  0x6b   : > { %1244 = vrot.lane.b32.xlu0 %v5626_v12, %s6330_s8  ;;  %v538_v12 = vrot.slane %v536_v63, 5  ;;  %v6704_v63 = vld [vmem:[%s6401_s29 + $0x7c] sm:$0xf] }
  0x6c   : > { %1246 = vrot.lane.b32.xlu1 %v5627_v47, %s6330_s8  ;;  %v594_v0 = vshrl.u32 %v6704_v63, 16  ;;  %v6759_v18 = vcombine.low %v6701_v62, %v6704_v63 }
  0x6d   : > { %v539_v16 = vor.u32 %v538_v12, %v535_v5  ;;  %v842_v12 = vrot.slane %v840_v59, 4 }
  0x6e   : > { %v596_v27 = vrot.slane %v594_v0, 4 }
  0x6f   : > { %1279 = vrot.lane.b32.xlu0 %v6607_v3, %s6334_s14  ;;  %v540_v23 = vrot.slane %v539_v16, 4  ;;  %v844_v19 = vsel %vm6423_vm4, %v842_v12, %v843_v8  ;;  %v6771_v8 = vld [vmem:[%s6401_s29 + $0x8c] sm:$0x1] }
  0x70   : > { %1281 = vrot.lane.b32.xlu1 %v6629_v51, %s6334_s14  ;;  %v6729_v28 = vcombine.low %v841_v17, %v844_v19  ;;  %v624_v19 = vshll.u32 %v6771_v8, 16 }
  0x71   : > { %v545_v11 = vsel %vm6458_vm5, %v540_v23, %v544_v15  ;;  %v584_v15 = vshll.u32 %v6701_v62, 16 }
  0x72   : > { %v5613_v41 = vcombine.low %v545_v11, %v555_v36 }
  0x73   : > { %1314 = vrot.lane.b32.xlu0 %v5611_v38, %s6335_s15  ;;  %v586_v23 = vrot.slane %v584_v15, 5 }
  0x74   : > { %1316 = vrot.lane.b32.xlu1 %v5612_v60, %s6335_s15 }
  0x77   : > { %1349 = vrot.lane.b32.xlu0 %v5627_v47, %s6336_s16 }
  0x78   : > { %1063 = vrot.lane.b32.xlu1 %v5611_v38, %s6332_s10  ;;  %v568_v38 = vrot.slane %v566_v30, 5  ;;  %v587_v30 = vor.u32 %v586_v23, %v583_v22 }
  0x7a   : > { %v573_v48 = vor.u32 %v572_v39, %v568_v38  ;;  %v588_v36 = vrot.slane %v587_v30, 4  ;;  %v608_v39 = vshll.u32 %v6735_v33, 16  ;;  %v626_v30 = vrot.slane %v624_v19, 5 }
  0x7b   : > { %1351 = vrot.lane.b32.xlu0 %v5628_v6, %s6336_s16 }
  0x7c   : > { %1065 = vrot.lane.b32.xlu1 %v5612_v60, %s6332_s10  ;;  %v574_v54 = vrot.slane %v573_v48, 4 }
  0x7e   : > { %v579_v61 = vsel %vm6458_vm5, %v574_v54, %v578_v56 }
  0x7f   : > { %1143 = vrot.lane.b32.xlu0 %v5627_v47, %s6331_s9  ;;  %v563_v47 = vor.u32 %v562_v37, %v559_v35  ;;  %v602_v35 = vrot.slane %v600_v1, 5  ;;  %v847_v37 = vrot.slane %v6704_v63, 5 }
  0x80   : > { %1145 = vrot.lane.b32.xlu1 %v5628_v6, %s6331_s9 }
  0x81   : > { %v564_v55 = vrot.slane %v563_v47, 4  ;;  %v614_v47 = vshll.u32 %v6738_v34, 16  ;;  %v848_v15 = vsel %vm6423_vm4, %v5581_v21, %v847_v37 }
  0x83   : > { %1178 = vrot.lane.b32.xlu0 %v6629_v51, %s6329_s30 }
  0x84   : > { %1180 = vrot.lane.b32.xlu1 %v6664_v31, %s6329_s30 }
  0x86   : > { %v6686_v57 = vpop.permute.xlu1 %1168 }
  0x87   : > { %1213 = vrot.lane.b32.xlu0 %v5612_v60, %s6333_s13  ;;  %v6684_v53 = vpop.permute.xlu0 %1166  ;;  %v569_v60 = vsel %vm6458_vm5, %v564_v55, %v568_v38  ;;  %v605_v38 = vshrl.u32 %v6735_v33, 16 }
  0x88   : > { %1215 = vrot.lane.b32.xlu1 %v5613_v41, %s6333_s13  ;;  %v6713_v5 = vcombine.low %v569_v60, %v579_v61  ;;  %v610_v60 = vrot.slane %v608_v39, 5  ;;  %v616_v61 = vrot.slane %v614_v47, 5  ;;  %v857_v47 = vrot.slane %v6771_v8, 5 }
  0x89   : > { %v607_v56 = vrot.slane %v605_v38, 4 }
  0x8b   : > { %1248 = vrot.lane.b32.xlu0 %v5628_v6, %s6330_s8  ;;  %v590_v6 = vshll.u32 %v6704_v63, 16  ;;  %v620_v63 = vrot.slane %v618_v44, 4  ;;  %v6828_v44 = vld [vmem:[%s6401_s29 + $0x94] sm:$0xf] }
  0x8c   : > { %1250 = vrot.lane.b32.xlu1 %v6682_v50, %s6330_s8 }
  0x8d   : > { %v6708_v2 = vpop.permute.xlu0 %1236  ;;  %v592_v26 = vrot.slane %v590_v6, 5  ;;  %v621_v17 = vor.u32 %v620_v63, %v616_v61  ;;  %v316_v63 = vld [vmem:[%s6401_s29 + $0x98] sm:$0x1] }
  0x8f   : > { %1283 = vrot.lane.b32.xlu0 %v6664_v31, %s6334_s14  ;;  %v597_v11 = vor.u32 %v596_v27, %v592_v26  ;;  %v593_v54 = vsel %vm6458_vm5, %v588_v36, %v592_v26  ;;  %v6813_v36 = vcombine.low %v6735_v33, %v6738_v34 }
  0x90   : > { %1285 = vrot.lane.b32.xlu1 %v6693_v58, %s6334_s14  ;;  %v1132_v9 = vpop.permute.xlu1 %1131 }
  0x91   : > { %v598_v43 = vrot.slane %v597_v11, 4 }
  0x93   : > { %1318 = vrot.lane.b32.xlu0 %v5613_v41, %s6335_s15 }
  0x94   : > { %1320 = vrot.lane.b32.xlu1 %v6713_v5, %s6335_s15  ;;  %v1134_v16 = vpop.permute.xlu1 %1133 }
  0x95   : > { %v1052_v25 = vpop.permute.xlu0 %1051 }
  0x96   : > { %v1376_v40 = vsel %vm1373_vm8, %v5589_v46, %v1052_v25  ;;  %v850_v46 = vrot.slane %v310_v20, 5 }
  0x97   : > { %1353 = vrot.lane.b32.xlu0 %v6682_v50, %s6336_s16  ;;  %v1424_v55 = vsel %vm1422_vm9, %v1376_v40, %v1132_v9  ;;  %v6822_v40 = vld [vmem:[%s6401_s29 + $0x90] sm:$0xf] }
  0x98   : > { %1067 = vrot.lane.b32.xlu1 %v5613_v41, %s6332_s10  ;;  %v6732_v29 = vpop.permute.xlu1 %1238  ;;  %v1457_v9 = vsel %vm1455_vm10, %v1424_v55, %v6684_v53  ;;  %v629_v21 = vshrl.u32 %v6822_v40, 16 }
  0x99   : > { %v1054_v32 = vpop.permute.xlu0 %1053 }
  0x9a   : > { %v1379_v49 = vsel %vm1373_vm8, %v6418_v10, %v1054_v32  ;;  %v849_v10 = vrot.slane %v847_v37, 4  ;;  %v854_v37 = vrot.slane %v6738_v34, 5  ;;  %v5582_v34 = vrot.slane %v6735_v33, 9 }
  0x9b   : > { %1355 = vrot.lane.b32.xlu0 %v6729_v28, %s6336_s16  ;;  %v1426_v62 = vsel %vm1422_vm9, %v1379_v49, %v1134_v16  ;;  %v611_v16 = vor.u32 %v610_v60, %v607_v56 }
  0x9c   : > { %1069 = vrot.lane.b32.xlu1 %v6713_v5, %s6332_s10  ;;  %v851_v0 = vsel %vm6423_vm4, %v849_v10, %v850_v46  ;;  %v1459_v53 = vsel %vm1455_vm10, %v1426_v62, %v6686_v57  ;;  %v856_v49 = vrot.slane %v854_v37, 4  ;;  %v632_v46 = vshll.u32 %v6822_v40, 16 }
  0x9d   : > { %v1202_v41 = vpop.permute.xlu0 %1201  ;;  %v6797_v57 = vcombine.low %v848_v15, %v851_v0  ;;  %v612_v1 = vrot.slane %v611_v16, 4  ;;  %v638_v10 = vshll.u32 %v6828_v44, 16  ;;  %v855_v33 = vsel %vm6423_vm4, %v5582_v34, %v854_v37 }
  0x9e   : > { %v1204_v48 = vpop.permute.xlu1 %1203  ;;  %v1490_v12 = vsel %vm1488_vm11, %v1457_v9, %v1202_v41  ;;  %v634_v60 = vrot.slane %v632_v46, 5  ;;  %v648_v15 = vshll.u32 %v316_v63, 16  ;;  %v864_v37 = vrot.slane %v316_v63, 5 }
  0x9f   : > { %1147 = vrot.lane.b32.xlu0 %v6682_v50, %s6331_s9  ;;  %v603_v50 = vsel %vm6458_vm5, %v598_v43, %v602_v35  ;;  %v1523_v22 = vsel %vm1521_vm12, %v1490_v12, %v6708_v2  ;;  %v1492_v23 = vsel %vm1488_vm11, %v1459_v53, %v1204_v48  ;;  %v622_v2 = vrot.slane %v621_v17, 4  ;;  %v6864_v17 = vld [vmem:[%s6401_s29 + $0xa0] sm:$0xf] }
  0xa0   : > { %1149 = vrot.lane.b32.xlu1 %v6729_v28, %s6331_s9  ;;  %v6780_v14 = vcombine.low %v593_v54, %v603_v50  ;;  %v1525_v11 = vsel %vm1521_vm12, %v1492_v23, %v6732_v29  ;;  %v617_v29 = vsel %vm6458_vm5, %v612_v1, %v616_v61  ;;  %v642_v54 = vshrl.u32 %v6828_v44, 16 }
  0xa1   : > { %v1272_v59 = vpop.permute.xlu0 %1271  ;;  %v631_v50 = vrot.slane %v629_v21, 4  ;;  %v640_v62 = vrot.slane %v638_v10, 5  ;;  %v662_v1 = vshll.u32 %v6864_v17, 16 }
  0xa2   : > { %v1274_v7 = vpop.permute.xlu1 %1273  ;;  %v1556_v25 = vsel %vm1554_vm13, %v1523_v22, %v1272_v59  ;;  %v858_v59 = vsel %vm6423_vm4, %v856_v49, %v857_v47  ;;  %v861_v22 = vrot.slane %v6828_v44, 5 }
  0xa3   : > { %1182 = vrot.lane.b32.xlu0 %v6693_v58, %s6329_s30  ;;  %v1558_v35 = vsel %vm1554_vm13, %v1525_v11, %v1274_v7  ;;  %v644_v7 = vrot.slane %v642_v54, 4  ;;  %v6856_v9 = vcombine.low %v855_v33, %v858_v59  ;;  %v635_v12 = vor.u32 %v634_v60, %v631_v50 }
  0xa4   : > { %1184 = vrot.lane.b32.xlu1 %v6759_v18, %s6329_s30 }
  0xa5   : > { %v1307_v6 = vpop.permute.xlu0 %1306  ;;  %v645_v53 = vor.u32 %v644_v7, %v640_v62  ;;  %v636_v19 = vrot.slane %v635_v12, 4 }
  0xa6   : > { %v1309_v20 = vpop.permute.xlu1 %1308  ;;  %v1589_v26 = vsel %vm1587_vm14, %v1556_v25, %v1307_v6  ;;  %v6861_v6 = vld [vmem:[%s6401_s29 + $0x9c] sm:$0xf] }
  0xa7   : > { %1217 = vrot.lane.b32.xlu0 %v6713_v5, %s6333_s13  ;;  %v1591_v38 = vsel %vm1587_vm14, %v1558_v35, %v1309_v20  ;;  %v650_v20 = vrot.slane %v648_v15, 5  ;;  %v646_v25 = vrot.slane %v645_v53, 4  ;;  %v641_v11 = vsel %vm6458_vm5, %v636_v19, %v640_v62 }
  0xa8   : > { %1219 = vrot.lane.b32.xlu1 %v6780_v14, %s6333_s13  ;;  %v863_v35 = vrot.slane %v861_v22, 4 }
  0xa9   : > { %v1342_v27 = vpop.permute.xlu0 %1341 }
  0xaa   : > { %v6800_v32 = vpop.permute.xlu1 %1055  ;;  %v1622_v5 = vsel %vm1620_vm15, %v1589_v26, %v1342_v27  ;;  %v656_v26 = vshll.u32 %v6861_v6, 16  ;;  %v666_v27 = vshrl.u32 %v6864_v17, 16 }
  0xab   : > { %1252 = vrot.lane.b32.xlu0 %v6729_v28, %s6330_s8  ;;  %6147 = vmatprep.mubr.msk.bf16.mxu0 %vm1670_vm0, %v1622_v5  ;;  %v627_v28 = vsel %vm6458_vm5, %v622_v2, %v626_v30  ;;  %v6879_v30 = vcombine.low %v6822_v40, %v6828_v44  ;;  %v5583_v5 = vrot.slane %v6822_v40, 9  ;;  %v1382_v40 = vsel %vm1373_vm8, %v6413_v4, %v6800_v32 }
  0xac   : > { %1254 = vrot.lane.b32.xlu1 %v6797_v57, %s6330_s8  ;;  %v6837_v48 = vcombine.low %v617_v29, %v627_v28  ;;  %v651_v29 = vsel %vm6458_vm5, %v646_v25, %v650_v20  ;;  %v658_v28 = vrot.slane %v656_v26, 5  ;;  %v668_v44 = vrot.slane %v666_v27, 4  ;;  %v6945_v25 = vld [vmem:[%s6401_s29 + $0xa8] sm:$0xf] }
  0xad   : > { %v1344_v39 = vpop.permute.xlu0 %1343  ;;  %v6899_v49 = vcombine.low %v641_v11, %v651_v29  ;;  %v862_v21 = vsel %vm6423_vm4, %v5583_v5, %v861_v22  ;;  %v865_v4 = vsel %vm6423_vm4, %v863_v35, %v864_v37  ;;  %v868_v20 = vrot.slane %v6864_v17, 5 }
  0xae   : > { %v6824_v41 = vpop.permute.xlu1 %1057  ;;  %v1624_v43 = vsel %vm1620_vm15, %v1591_v38, %v1344_v39  ;;  %v6919_v62 = vcombine.low %v862_v21, %v865_v4  ;;  %v677_v35 = vshrl.u32 %v6945_v25, 16  ;;  %v680_v37 = vshll.u32 %v6945_v25, 16 }
  0xaf   : > { %1287 = vrot.lane.b32.xlu0 %v6759_v18, %s6334_s14  ;;  %6148 = vmatmul.mubr.msk.bf16.vlgmr.msra.gmra.mrb[0].mxu0 %vm1670_vm0, %v1624_v43  ;;  %v664_v43 = vrot.slane %v662_v1, 5  ;;  %v1385_v50 = vsel %vm1373_vm8, %v6512_v45, %v6824_v41  ;;  %v6951_v1 = vld [vmem:[%s6401_s29 + $0xac] sm:$0xf]  ;;  %v870_v11 = vrot.slane %v868_v20, 4 }
  0xb0   : > { %1289 = vrot.lane.b32.xlu1 %v6813_v36, %s6334_s14  ;;  %v686_v29 = vshll.u32 %v6951_v1, 16 }
  0xb1   : > { %v1136_v55 = vpop.permute.xlu0 %1135  ;;  %v669_v33 = vor.u32 %v668_v44, %v664_v43  ;;  %v682_v44 = vrot.slane %v680_v37, 5 }
  0xb2   : > { %v6843_v56 = vpop.permute.xlu1 %1137  ;;  %v1428_v47 = vsel %vm1422_vm9, %v1382_v40, %v1136_v55  ;;  %v322_v40 = vld [vmem:[%s6401_s29 + $0xb0] sm:$0x1] }
  0xb3   : > { %1322 = vrot.lane.b32.xlu0 %v6780_v14, %s6335_s15  ;;  %v696_v4 = vshll.u32 %v322_v40, 16 }
  0xb4   : > { %1324 = vrot.lane.b32.xlu1 %v6837_v48, %s6335_s15 }
  0xb5   : > { %v1171_v61 = vpop.permute.xlu0 %1170 }
  0xb6   : > { %v1173_v8 = vpop.permute.xlu1 %1172  ;;  %v1461_v54 = vsel %vm1455_vm10, %v1428_v47, %v1171_v61  ;;  %v1430_v61 = vsel %vm1422_vm9, %v1385_v50, %v6843_v56  ;;  %v688_v47 = vrot.slane %v686_v29, 5  ;;  %v6987_v50 = vld [vmem:[%s6401_s29 + $0xb8] sm:$0xf] }
  0xb7   : > { %1357 = vrot.lane.b32.xlu0 %v6797_v57, %s6336_s16  ;;  %v1463_v12 = vsel %vm1455_vm10, %v1430_v61, %v1173_v8  ;;  %v698_v61 = vrot.slane %v696_v4, 5 }
  0xb8   : > { %1071 = vrot.lane.b32.xlu1 %v6780_v14, %s6332_s10  ;;  %v653_v14 = vshrl.u32 %v6861_v6, 16 }
  0xb9   : > { %v1206_v0 = vpop.permute.xlu0 %1205 }
  0xba   : > { %v1208_v16 = vpop.permute.xlu1 %1207  ;;  %v655_v38 = vrot.slane %v653_v14, 4  ;;  %v1494_v55 = vsel %vm1488_vm11, %v1461_v54, %v1206_v0  ;;  %v670_v0 = vrot.slane %v669_v33, 4 }
  0xbb   : > { %1359 = vrot.lane.b32.xlu0 %v6856_v9, %s6336_s16 }
  0xbc   : > { %1073 = vrot.lane.b32.xlu1 %v6837_v48, %s6332_s10  ;;  %v659_v32 = vor.u32 %v658_v28, %v655_v38 }
  0xbd   : > { %v1241_v23 = vpop.permute.xlu0 %1240 }
  0xbe   : > { %v1243_v2 = vpop.permute.xlu1 %1242  ;;  %v1527_v60 = vsel %vm1521_vm12, %v1494_v55, %v1241_v23  ;;  %v660_v15 = vrot.slane %v659_v32, 4  ;;  %v6984_v55 = vld [vmem:[%s6401_s29 + $0xb4] sm:$0xf] }
  0xbf   : > { %1151 = vrot.lane.b32.xlu0 %v6797_v57, %s6331_s9  ;;  %v6889_v57 = vld [vmem:[%s6401_s29 + $0xa4] sm:$0x1] }
  0xc0   : > { %1153 = vrot.lane.b32.xlu1 %v6856_v9, %s6331_s9  ;;  %v672_v46 = vshll.u32 %v6889_v57, 16  ;;  %v665_v23 = vsel %vm6458_vm5, %v660_v15, %v664_v43  ;;  %v679_v43 = vrot.slane %v677_v35, 4  ;;  %v710_v15 = vshll.u32 %v6987_v50, 16 }
  0xc1   : > { %v1276_v39 = vpop.permute.xlu0 %1275 }
  0xc2   : > { %v1278_v34 = vpop.permute.xlu1 %1277  ;;  %v1560_v63 = vsel %vm1554_vm13, %v1527_v60, %v1276_v39  ;;  %v674_v7 = vrot.slane %v672_v46, 5  ;;  %v690_v39 = vshrl.u32 %v6951_v1, 16 }
  0xc3   : > { %1186 = vrot.lane.b32.xlu0 %v6813_v36, %s6329_s30 }
  0xc4   : > { %1188 = vrot.lane.b32.xlu1 %v6879_v30, %s6329_s30  ;;  %v692_v21 = vrot.slane %v690_v39, 4 }
  0xc5   : > { %v1311_v10 = vpop.permute.xlu0 %1310 }
  0xc6   : > { %v1313_v59 = vpop.permute.xlu1 %1312  ;;  %v1593_v45 = vsel %vm1587_vm14, %v1560_v63, %v1311_v10  ;;  %v683_v10 = vor.u32 %v682_v44, %v679_v43  ;;  %v693_v33 = vor.u32 %v692_v21, %v688_v47  ;;  %v875_v63 = vrot.slane %v6951_v1, 5 }
  0xc7   : > { %1221 = vrot.lane.b32.xlu0 %v6837_v48, %s6333_s13  ;;  %v1496_v48 = vsel %vm1488_vm11, %v1463_v12, %v1208_v16  ;;  %v6936_v16 = vcombine.low %v6861_v6, %v6864_v17  ;;  %v5584_v17 = vrot.slane %v6861_v6, 9 }
  0xc8   : > { %1223 = vrot.lane.b32.xlu1 %v6899_v49, %s6333_s13  ;;  %v1529_v19 = vsel %vm1521_vm12, %v1496_v48, %v1243_v2  ;;  %v871_v2 = vrot.slane %v6889_v57, 5  ;;  %v684_v60 = vrot.slane %v683_v10, 4  ;;  %v694_v12 = vrot.slane %v693_v33, 4 }
  0xc9   : > { %v1346_v41 = vpop.permute.xlu0 %1345  ;;  %v1562_v8 = vsel %vm1554_vm13, %v1529_v19, %v1278_v34  ;;  %v869_v6 = vsel %vm6423_vm4, %v5584_v17, %v868_v20  ;;  %v7002_v48 = vcombine.low %v6945_v25, %v6951_v1  ;;  %v878_v20 = vrot.slane %v322_v40, 5 }
  0xca   : > { %v6924_v53 = vpop.permute.xlu1 %1059  ;;  %v1626_v56 = vsel %vm1620_vm15, %v1593_v45, %v1346_v41  ;;  %v1595_v22 = vsel %vm1587_vm14, %v1562_v8, %v1313_v59  ;;  %v872_v57 = vsel %vm6423_vm4, %v870_v11, %v871_v2  ;;  %v704_v45 = vshll.u32 %v6984_v55, 16 }
  0xcb   : > { %1256 = vrot.lane.b32.xlu0 %v6856_v9, %s6330_s8  ;;  %6151 = vmatprep.mubr.msk.bf16.mxu0 %vm1670_vm0, %v1626_v56  ;;  %v675_v9 = vsel %vm6458_vm5, %v670_v0, %v674_v7  ;;  %v6979_v54 = vcombine.low %v869_v6, %v872_v57  ;;  %v714_v41 = vshrl.u32 %v6987_v50, 16  ;;  %v5585_v56 = vrot.slane %v6945_v25, 9 }
  0xcc   : > { %1258 = vrot.lane.b32.xlu1 %v6919_v62, %s6330_s8  ;;  %v6960_v5 = vcombine.low %v665_v23, %v675_v9  ;;  %v689_v19 = vsel %vm6458_vm5, %v684_v60, %v688_v47  ;;  %v877_v8 = vrot.slane %v875_v63, 4  ;;  %v699_v23 = vsel %vm6458_vm5, %v694_v12, %v698_v61 }
  0xcd   : > { %v1348_v14 = vpop.permute.xlu0 %1347  ;;  %v706_v9 = vrot.slane %v704_v45, 5  ;;  %v716_v1 = vrot.slane %v714_v41, 4  ;;  %v1388_v25 = vsel %vm1373_vm8, %v6541_v24, %v6924_v53  ;;  %v7022_v11 = vcombine.low %v689_v19, %v699_v23 }
  0xce   : > { %v6947_v26 = vpop.permute.xlu1 %1061  ;;  %v1628_v27 = vsel %vm1620_vm15, %v1595_v22, %v1348_v14  ;;  %v876_v35 = vsel %vm6423_vm4, %v5585_v56, %v875_v63  ;;  %v879_v24 = vsel %vm6423_vm4, %v877_v8, %v878_v20  ;;  %v882_v63 = vrot.slane %v6987_v50, 5 }
  0xcf   : > { %1291 = vrot.lane.b32.xlu0 %v6879_v30, %s6334_s14  ;;  %6152 = vmatmul.mubr.msk.bf16.gmra.mrb[4].mxu0 %vm1670_vm0, %v1628_v27  ;;  %v712_v27 = vrot.slane %v710_v15, 5  ;;  %v1391_v43 = vsel %vm1373_vm8, %v6561_v42, %v6947_v26  ;;  %v7042_v47 = vcombine.low %v876_v35, %v879_v24  ;;  %v5586_v20 = vrot.slane %v6984_v55, 9 }
  0xd0   : > { %1293 = vrot.lane.b32.xlu1 %v6936_v16, %s6334_s14 }
  0xd1   : > { %v1140_v38 = vpop.permute.xlu0 %1139  ;;  %v717_v6 = vor.u32 %v716_v1, %v712_v27 }
  0xd2   : > { %v6966_v28 = vpop.permute.xlu1 %1141  ;;  %v1432_v2 = vsel %vm1422_vm9, %v1388_v25, %v1140_v38 }
  0xd3   : > { %1326 = vrot.lane.b32.xlu0 %v6899_v49, %s6335_s15 }
  0xd4   : > { %1328 = vrot.lane.b32.xlu1 %v6960_v5, %s6335_s15 }
  0xd5   : > { %v1175_v34 = vpop.permute.xlu0 %1174 }
  0xd6   : > { %v1177_v46 = vpop.permute.xlu1 %1176  ;;  %v1465_v39 = vsel %vm1455_vm10, %v1432_v2, %v1175_v34  ;;  %v1434_v34 = vsel %vm1422_vm9, %v1391_v43, %v6966_v28  ;;  %v328_v2 = vld [vmem:[%s6401_s29 + $0xc8] sm:$0x1] }
  0xd7   : > { %1361 = vrot.lane.b32.xlu0 %v6919_v62, %s6336_s16  ;;  %v1467_v10 = vsel %vm1455_vm10, %v1434_v34, %v1177_v46  ;;  %v7055_v46 = vld [vmem:[%s6401_s29 + $0xc0] sm:$0xf] }
  0xd8   : > { %1075 = vrot.lane.b32.xlu1 %v6899_v49, %s6332_s10  ;;  %v701_v49 = vshrl.u32 %v6984_v55, 16  ;;  %v891_v56 = vshll.u32 %v7055_v46, 16 }
  0xd9   : > { %v1210_v32 = vpop.permute.xlu0 %1209 }
  0xda   : > { %v1212_v59 = vpop.permute.xlu1 %1211  ;;  %v703_v22 = vrot.slane %v701_v49, 4  ;;  %v1498_v38 = vsel %vm1488_vm11, %v1465_v39, %v1210_v32  ;;  %v7066_v49 = vld [vmem:[%s6401_s29 + $0xc4] sm:$0xf]  ;;  %v893_v1 = vrot.slane %v891_v56, 5 }
  0xdb   : > { %1363 = vrot.lane.b32.xlu0 %v6979_v54, %s6336_s16  ;;  %v1500_v32 = vsel %vm1488_vm11, %v1467_v10, %v1212_v59  ;;  %v7062_v59 = vcombine.low %v6984_v55, %v6987_v50  ;;  %v901_v50 = vshrl.u32 %v7066_v49, 16  ;;  %v897_v19 = vshll.u32 %v7066_v49, 16 }
  0xdc   : > { %1077 = vrot.lane.b32.xlu1 %v6960_v5, %s6332_s10  ;;  %v707_v53 = vor.u32 %v706_v9, %v703_v22  ;;  %v884_v22 = vrot.slane %v882_v63, 4  ;;  %v883_v55 = vsel %vm6423_vm4, %v5586_v20, %v882_v63 }
  0xdd   : > { %v1245_v7 = vpop.permute.xlu0 %1244  ;;  %v903_v25 = vrot.slane %v901_v50, 4 }
  0xde   : > { %v1247_v0 = vpop.permute.xlu1 %1246  ;;  %v1531_v44 = vsel %vm1521_vm12, %v1498_v38, %v1245_v7  ;;  %v708_v4 = vrot.slane %v707_v53, 4  ;;  %v907_v53 = vshll.u32 %v328_v2, 16 }
  0xdf   : > { %1155 = vrot.lane.b32.xlu0 %v6919_v62, %s6331_s9  ;;  %v7012_v62 = vld [vmem:[%s6401_s29 + $0xbc] sm:$0x1]  ;;  %v1533_v60 = vsel %vm1521_vm12, %v1500_v32, %v1247_v0  ;;  %v888_v0 = vshrl.u32 %v7055_v46, 16  ;;  %v5637_v32 = vcombine.low %v7055_v46, %v7066_v49 }
  0xe0   : > { %1157 = vrot.lane.b32.xlu1 %v6979_v54, %s6331_s9  ;;  %v720_v37 = vshll.u32 %v7012_v62, 16  ;;  %v713_v12 = vsel %vm6458_vm5, %v708_v4, %v712_v27 }
  0xe1   : > { %v1280_v14 = vpop.permute.xlu0 %1279  ;;  %v890_v27 = vrot.slane %v888_v0, 4  ;;  %v331_v0 = vld [vmem:[%s6401_s29 + $0xd4] sm:$0x1] }
  0xe2   : > { %v1282_v17 = vpop.permute.xlu1 %1281  ;;  %v1564_v40 = vsel %vm1554_vm13, %v1531_v44, %v1280_v14  ;;  %v722_v21 = vrot.slane %v720_v37, 5  ;;  %v885_v14 = vrot.slane %v7012_v62, 5 }
  0xe3   : > { %1190 = vrot.lane.b32.xlu0 %v6936_v16, %s6329_s30  ;;  %v1566_v61 = vsel %vm1554_vm13, %v1533_v60, %v1282_v17  ;;  %v899_v17 = vrot.slane %v897_v19, 5  ;;  %v894_v39 = vor.u32 %v893_v1, %v890_v27  ;;  %v941_v27 = vshll.u32 %v331_v0, 16 }
  0xe4   : > { %1192 = vrot.lane.b32.xlu1 %v7002_v48, %s6329_s30  ;;  %v886_v62 = vsel %vm6423_vm4, %v884_v22, %v885_v14 }
  0xe5   : > { %v1315_v29 = vpop.permute.xlu0 %1314  ;;  %v904_v24 = vor.u32 %v903_v25, %v899_v17  ;;  %v895_v44 = vrot.slane %v894_v39, 4 }
  0xe6   : > { %v1317_v57 = vpop.permute.xlu1 %1316  ;;  %v1597_v42 = vsel %vm1587_vm14, %v1564_v40, %v1315_v29  ;;  %v7104_v29 = vcombine.low %v883_v55, %v886_v62  ;;  %v909_v40 = vrot.slane %v907_v53, 5 }
  0xe7   : > { %1225 = vrot.lane.b32.xlu0 %v6960_v5, %s6333_s13  ;;  %v718_v5 = vrot.slane %v717_v6, 4  ;;  %v1599_v7 = vsel %vm1587_vm14, %v1566_v61, %v1317_v57  ;;  %v7109_v6 = vld [vmem:[%s6401_s29 + $0xcc] sm:$0xf]  ;;  %v7112_v57 = vld [vmem:[%s6401_s29 + $0xd0] sm:$0xf]  ;;  %v905_v34 = vrot.slane %v904_v24, 4 }
  0xe8   : > { %1227 = vrot.lane.b32.xlu1 %v7022_v11, %s6333_s13  ;;  %v925_v10 = vshll.u32 %v7109_v6, 16  ;;  %v5587_v61 = vrot.slane %v7055_v46, 9  ;;  %v943_v24 = vrot.slane %v941_v27, 5  ;;  %s6342_s29 = smov 32  }
  0xe9   : > { %v1350_v26 = vpop.permute.xlu0 %1349  ;;  %v723_v45 = vsel %vm6458_vm5, %v718_v5, %v722_v21  ;;  %v922_v21 = vshrl.u32 %v7109_v6, 16  ;;  %v910_v60 = vsel %vm6458_vm5, %v905_v34, %v909_v40 }
  0xea   : > { %v7047_v28 = vpop.permute.xlu1 %1063  ;;  %v1630_v33 = vsel %vm1620_vm15, %v1597_v42, %v1350_v26  ;;  %v7085_v8 = vcombine.low %v713_v12, %v723_v45  ;;  %v935_v42 = vshrl.u32 %v7112_v57, 16  ;;  %v931_v26 = vshll.u32 %v7112_v57, 16 }
  0xeb   : > { %1260 = vrot.lane.b32.xlu0 %v6979_v54, %s6330_s8  ;;  %6155 = vmatprep.mubr.msk.bf16.mxu0 %vm1670_vm0, %v1630_v33  ;;  %v900_v33 = vsel %vm6458_vm5, %v895_v44, %v899_v17  ;;  %v924_v63 = vrot.slane %v922_v21, 4  ;;  %v919_v12 = vrot.slane %v328_v2, 5 }
  0xec   : > { %1262 = vrot.lane.b32.xlu1 %v7042_v47, %s6330_s8  ;;  %v933_v45 = vrot.slane %v931_v26, 5  ;;  %v7140_v46 = vcombine.low %v900_v33, %v910_v60  ;;  %v953_v26 = vrot.slane %v331_v0, 5 }
  0xed   : > { %v1352_v54 = vpop.permute.xlu0 %1351 }
  0xee   : > { %v7073_v41 = vpop.permute.xlu1 %1065  ;;  %v1632_v15 = vsel %vm1620_vm15, %v1599_v7, %v1352_v54  ;;  %v927_v7 = vrot.slane %v925_v10, 5 }
  0xef   : > { %1295 = vrot.lane.b32.xlu0 %v7002_v48, %s6334_s14  ;;  %6156 = vmatmul.mubr.msk.bf16.gmra.mrb[8].mxu0 %vm1670_vm0, %v1632_v15  ;;  %v1397_v25 = vsel %vm1373_vm8, %v6629_v51, %v7073_v41 }
  0xf0   : > { %1297 = vrot.lane.b32.xlu1 %v7062_v59, %s6334_s14  ;;  %v928_v19 = vor.u32 %v927_v7, %v924_v63 }
  0xf1   : > { %v1144_v23 = vpop.permute.xlu0 %1143 }
  0xf2   : > { %v7089_v9 = vpop.permute.xlu1 %1145  ;;  %v929_v62 = vrot.slane %v928_v19, 4 }
  0xf3   : > { %1330 = vrot.lane.b32.xlu0 %v7022_v11, %s6335_s15  ;;  %v1438_v2 = vsel %vm1422_vm9, %v1397_v25, %v7089_v9 }
  0xf4   : > { %1332 = vrot.lane.b32.xlu1 %v7085_v8, %s6335_s15 }
  0xf5   : > { %v1179_v35 = vpop.permute.xlu0 %1178 }
  0xf6   : > { %v7100_v37 = vpop.permute.xlu1 %1180 }
  0xf7   : > { %1365 = vrot.lane.b32.xlu0 %v7042_v47, %s6336_s16  ;;  %v1471_v51 = vsel %vm1455_vm10, %v1438_v2, %v7100_v37  ;;  %v5640_v37 = vcombine.low %v7109_v6, %v7112_v57 }
  0xf8   : > { %1079 = vrot.lane.b32.xlu1 %v7022_v11, %s6332_s10  ;;  %v916_v11 = vrot.slane %v7066_v49, 5  ;;  %v937_v49 = vrot.slane %v935_v42, 4 }
  0xf9   : > { %v1214_v38 = vpop.permute.xlu0 %1213 }
  0xfa   : > { %v1216_v43 = vpop.permute.xlu1 %1215  ;;  %v918_v54 = vrot.slane %v916_v11, 4  ;;  %v917_v50 = vsel %vm6423_vm4, %v5587_v61, %v916_v11  ;;  %v938_v14 = vor.u32 %v937_v49, %v933_v45  ;;  %v6338_v61 = vmov 0  }
  0xfb   : > { %1367 = vrot.lane.b32.xlu0 %v7104_v29, %s6336_s16  ;;  %2996 = vst.msk [vmem:[#allocation2 + $0xc] sm:$0x1] %vm2993_vm1, %v6338_v61  ;;  %2994 = vst.msk [vmem:[#allocation2 + $0x4] sm:$0x1] %vm2993_vm1, %v6338_v61 }
  0xfc   : > { %1081 = vrot.lane.b32.xlu1 %v7085_v8, %s6332_s10  ;;  %v920_v22 = vsel %vm6423_vm4, %v918_v54, %v919_v12  ;;  %v939_v39 = vrot.slane %v938_v14, 4  ;;  %2998 = vst.msk [vmem:[#allocation2 + $0x14] sm:$0x1] %vm2993_vm1, %v6338_v61  ;;  %3000 = vst.msk [vmem:[#allocation2 + $0x1c] sm:$0x1] %vm2993_vm1, %v6338_v61 }
  0xfd   : > { %v1249_v4 = vpop.permute.xlu0 %1248  ;;  %3002 = vst.msk [vmem:[#allocation2 + $0x24] sm:$0x1] %vm2993_vm1, %v6338_v61  ;;  %3004 = vst.msk [vmem:[#allocation2 + $0x2c] sm:$0x1] %vm2993_vm1, %v6338_v61 }
  0xfe   : > { %v1251_v5 = vpop.permute.xlu1 %1250  ;;  %v944_v21 = vsel %vm6458_vm5, %v939_v39, %v943_v24  ;;  %3006 = vst.msk [vmem:[#allocation2 + $0x34] sm:$0x1] %vm2993_vm1, %v6338_v61  ;;  %3008 = vst.msk [vmem:[#allocation2 + $0x3c] sm:$0x1] %vm2993_vm1, %v6338_v61 }
  0xff   : > { %1159 = vrot.lane.b32.xlu0 %v7042_v47, %s6331_s9  ;;  %v1394_v47 = vsel %vm1373_vm8, %v6607_v3, %v7047_v28  ;;  %3010 = vst.msk [vmem:[#allocation2 + $0x44] sm:$0x1] %vm2993_vm1, %v6338_v61  ;;  %3012 = vst.msk [vmem:[#allocation2 + $0x4c] sm:$0x1] %vm2993_vm1, %v6338_v61 }
 0x100   : > { %1161 = vrot.lane.b32.xlu1 %v7104_v29, %s6331_s9  ;;  %v1436_v20 = vsel %vm1422_vm9, %v1394_v47, %v1144_v23  ;;  %v5639_v23 = vcombine.low %v917_v50, %v920_v22  ;;  %2995 = vst.msk [vmem:[#allocation2 + $0x8] sm:$0xf] %vm2991_vm2, %v6338_v61  ;;  %2992 = vst.msk [vmem:[#allocation2] sm:$0xf] %vm2991_vm2, %v6338_v61 }
 0x101   : > { %v1284_v15 = vpop.permute.xlu0 %1283  ;;  %v1469_v3 = vsel %vm1455_vm10, %v1436_v20, %v1179_v35  ;;  %2997 = vst.msk [vmem:[#allocation2 + $0x10] sm:$0xf] %vm2991_vm2, %v6338_v61  ;;  %2999 = vst.msk [vmem:[#allocation2 + $0x18] sm:$0xf] %vm2991_vm2, %v6338_v61 }
 0x102   : > { %v1286_v56 = vpop.permute.xlu1 %1285  ;;  %v1502_v1 = vsel %vm1488_vm11, %v1469_v3, %v1214_v38  ;;  %v1504_v38 = vsel %vm1488_vm11, %v1471_v51, %v1216_v43  ;;  %v934_v43 = vsel %vm6458_vm5, %v929_v62, %v933_v45  ;;  %3001 = vst.msk [vmem:[#allocation2 + $0x20] sm:$0xf] %vm2991_vm2, %v6338_v61  ;;  %3003 = vst.msk [vmem:[#allocation2 + $0x28] sm:$0xf] %vm2991_vm2, %v6338_v61 }
 0x103   : > { %1194 = vrot.lane.b32.xlu0 %v7062_v59, %s6329_s30  ;;  %v1535_v55 = vsel %vm1521_vm12, %v1502_v1, %v1249_v4  ;;  %v1537_v34 = vsel %vm1521_vm12, %v1504_v38, %v1251_v5  ;;  %3005 = vst.msk [vmem:[#allocation2 + $0x30] sm:$0xf] %vm2991_vm2, %v6338_v61  ;;  %3007 = vst.msk [vmem:[#allocation2 + $0x38] sm:$0xf] %vm2991_vm2, %v6338_v61 }
 0x104   : > { %1196 = vrot.lane.b32.xlu1 %v5637_v32, %s6329_s30  ;;  %v1568_v35 = vsel %vm1554_vm13, %v1535_v55, %v1284_v15  ;;  %v1570_v40 = vsel %vm1554_vm13, %v1537_v34, %v1286_v56  ;;  %3009 = vst.msk [vmem:[#allocation2 + $0x40] sm:$0xf] %vm2991_vm2, %v6338_v61  ;;  %3011 = vst.msk [vmem:[#allocation2 + $0x48] sm:$0xf] %vm2991_vm2, %v6338_v61 }
 0x105   : > { %v1319_v28 = vpop.permute.xlu0 %1318 }
 0x106   : > { %v1321_v17 = vpop.permute.xlu1 %1320  ;;  %v1601_v41 = vsel %vm1587_vm14, %v1568_v35, %v1319_v28 }
 0x107   : > { %1229 = vrot.lane.b32.xlu0 %v7085_v8, %s6333_s13  ;;  %v950_v8 = vrot.slane %v7112_v57, 5  ;;  %v1603_v10 = vsel %vm1587_vm14, %v1570_v40, %v1321_v17  ;;  %v5641_v57 = vcombine.low %v934_v43, %v944_v21 }
 0x108   : > { %1231 = vrot.lane.b32.xlu1 %v7140_v46, %s6333_s13 }
 0x109   : > { %v1354_v53 = vpop.permute.xlu0 %1353  ;;  %v952_v42 = vrot.slane %v950_v8, 4 }
 0x10a   : > { %v1068_v44 = vpop.permute.xlu1 %1067  ;;  %v1634_v9 = vsel %vm1620_vm15, %v1601_v41, %v1354_v53 }
 0x10b   : > { %1264 = vrot.lane.b32.xlu0 %v7104_v29, %s6330_s8  ;;  %6159 = vmatprep.mubr.msk.bf16.mxu0 %vm1670_vm0, %v1634_v9  ;;  %v5588_v29 = vrot.slane %v7109_v6, 9  ;;  %v954_v6 = vsel %vm6423_vm4, %v952_v42, %v953_v26  ;;  %v1400_v47 = vsel %vm1373_vm8, %v6664_v31, %v1068_v44 }
 0x10c   : > { %1266 = vrot.lane.b32.xlu1 %v5639_v23, %s6330_s8 }
 0x10d   : > { %v1356_v11 = vpop.permute.xlu0 %1355  ;;  %v951_v60 = vsel %vm6423_vm4, %v5588_v29, %v950_v8 }
 0x10e   : > { %v1070_v4 = vpop.permute.xlu1 %1069  ;;  %v1636_v5 = vsel %vm1620_vm15, %v1603_v10, %v1356_v11  ;;  %v5642_v63 = vcombine.low %v951_v60, %v954_v6 }
 0x10f   : > { %1299 = vrot.lane.b32.xlu0 %v5637_v32, %s6334_s14  ;;  %6160 = vmatmul.mubr.msk.bf16.gmra.mrb[12].mxu0 %vm1670_vm0, %v1636_v5  ;;  %v1403_v14 = vsel %vm1373_vm8, %v6693_v58, %v1070_v4 }
 0x110   : > { %1301 = vrot.lane.b32.xlu1 %v5640_v37, %s6334_s14 }
 0x111   : > { %v1148_v33 = vpop.permute.xlu0 %1147 }
 0x112   : > { %v1150_v32 = vpop.permute.xlu1 %1149 }
 0x113   : > { %1334 = vrot.lane.b32.xlu0 %v7140_v46, %s6335_s15  ;;  %v1440_v46 = vsel %vm1422_vm9, %v1400_v47, %v1148_v33  ;;  %v1442_v3 = vsel %vm1422_vm9, %v1403_v14, %v1150_v32 }
 0x114   : > { %1336 = vrot.lane.b32.xlu1 %v5641_v57, %s6335_s15 }
 0x115   : > { %v1183_v7 = vpop.permute.xlu0 %1182 }
 0x116   : > { %v1185_v54 = vpop.permute.xlu1 %1184  ;;  %v1473_v50 = vsel %vm1455_vm10, %v1440_v46, %v1183_v7 }
 0x117   : > { %1369 = vrot.lane.b32.xlu0 %v5639_v23, %s6336_s16  ;;  %v1475_v1 = vsel %vm1455_vm10, %v1442_v3, %v1185_v54 }
 0x118   : > { %1371 = vrot.lane.b32.xlu1 %v5642_v63, %s6336_s16 }
 0x119   : > { %v1218_v12 = vpop.permute.xlu0 %1217 }
 0x11a   : > { %v1220_v45 = vpop.permute.xlu1 %1219  ;;  %v1506_v20 = vsel %vm1488_vm11, %v1473_v50, %v1218_v12 }
 0x11b   : > { %v1508_v25 = vsel %vm1488_vm11, %v1475_v1, %v1220_v45 }
 0x11d   : > { %v1253_v49 = vpop.permute.xlu0 %1252 }
 0x11e   : > { %v1255_v15 = vpop.permute.xlu1 %1254  ;;  %v1539_v27 = vsel %vm1521_vm12, %v1506_v20, %v1253_v49 }
 0x11f   : > { %v1541_v62 = vsel %vm1521_vm12, %v1508_v25, %v1255_v15 }
 0x121   : > { %v1288_v0 = vpop.permute.xlu0 %1287 }
 0x122   : > { %v1290_v56 = vpop.permute.xlu1 %1289  ;;  %v1572_v28 = vsel %vm1554_vm13, %v1539_v27, %v1288_v0 }
 0x123   : > { %v1574_v58 = vsel %vm1554_vm13, %v1541_v62, %v1290_v56 }
 0x125   : > { %v1323_v19 = vpop.permute.xlu0 %1322 }
 0x126   : > { %v1325_v22 = vpop.permute.xlu1 %1324  ;;  %v1605_v31 = vsel %vm1587_vm14, %v1572_v28, %v1323_v19 }
 0x127   : > { %v1607_v2 = vsel %vm1587_vm14, %v1574_v58, %v1325_v22 }
 0x129   : > { %v1358_v17 = vpop.permute.xlu0 %1357 }
 0x12a   : > { %v1072_v55 = vpop.permute.xlu1 %1071  ;;  %v1638_v23 = vsel %vm1620_vm15, %v1605_v31, %v1358_v17 }
 0x12b   : > { %6163 = vmatprep.mubr.msk.bf16.mxu0 %vm1670_vm0, %v1638_v23  ;;  %v1406_v43 = vsel %vm1373_vm8, %v6759_v18, %v1072_v55 }
 0x12d   : > { %v1360_v35 = vpop.permute.xlu0 %1359 }
 0x12e   : > { %v1074_v39 = vpop.permute.xlu1 %1073  ;;  %v1640_v24 = vsel %vm1620_vm15, %v1607_v2, %v1360_v35 }
 0x12f   : > { %6164 = vmatmul.mubr.msk.bf16.gmra.mrb[16].mxu0 %vm1670_vm0, %v1640_v24  ;;  %v1409_v26 = vsel %vm1373_vm8, %v6813_v36, %v1074_v39 }
 0x131   : > { %v1152_v51 = vpop.permute.xlu0 %1151 }
 0x132   : > { %v1154_v41 = vpop.permute.xlu1 %1153  ;;  %v1444_v21 = vsel %vm1422_vm9, %v1406_v43, %v1152_v51 }
 0x133   : > { %v1446_v5 = vsel %vm1422_vm9, %v1409_v26, %v1154_v41 }
 0x135   : > { %v1187_v53 = vpop.permute.xlu0 %1186 }
 0x136   : > { %v1189_v8 = vpop.permute.xlu1 %1188  ;;  %v1477_v10 = vsel %vm1455_vm10, %v1444_v21, %v1187_v53  ;;  %v6339_v21 = vmov 1983009808  }
 0x137   : > { %v1479_v33 = vsel %vm1455_vm10, %v1446_v5, %v1189_v8  ;;  %v7299_v5 = vld [vmem:[%s8278_s2] ss:$0 sm:$0xff] }
 0x139   : > { %v1222_v38 = vpop.permute.xlu0 %1221 }
 0x13a   : > { %v1224_v44 = vpop.permute.xlu1 %1223  ;;  %v1510_v29 = vsel %vm1488_vm11, %v1477_v10, %v1222_v38  ;;  %v1937_v10 = vunpack.c.l.s4 %v6339_v21 }
 0x13b   : > { %v1512_v6 = vsel %vm1488_vm11, %v1479_v33, %v1224_v44 }
 0x13c   : > { %v1938_v26 = vunpack.c.0.s8 %v1937_v10 }
 0x13d   : > { %v1257_v9 = vpop.permute.xlu0 %1256 }
 0x13e   : > { %v1259_v34 = vpop.permute.xlu1 %1258  ;;  %v1543_v4 = vsel %vm1521_vm12, %v1510_v29, %v1257_v9 }
 0x13f   : > { %v1545_v7 = vsel %vm1521_vm12, %v1512_v6, %v1259_v34 }
 0x141   : > { %v1292_v40 = vpop.permute.xlu0 %1291 }
 0x142   : > { %v1294_v37 = vpop.permute.xlu1 %1293  ;;  %v1576_v57 = vsel %vm1554_vm13, %v1543_v4, %v1292_v40 }
 0x143   : > { %v1578_v36 = vsel %vm1554_vm13, %v1545_v7, %v1294_v37 }
 0x145   : > { %v1327_v11 = vpop.permute.xlu0 %1326 }
 0x146   : > { %v1329_v42 = vpop.permute.xlu1 %1328  ;;  %v1609_v18 = vsel %vm1587_vm14, %v1576_v57, %v1327_v11  ;;  %v1939_v11 = vlaneseq }
 0x147   : > { %v1611_v54 = vsel %vm1587_vm14, %v1578_v36, %v1329_v42 }
 0x148   : > { %v7294_v4 = vshrl.u32 %v1939_v11, 7 }
 0x149   : > { %v1362_v60 = vpop.permute.xlu0 %1361 }
 0x14a   : > { %v1076_v32 = vpop.permute.xlu1 %1075  ;;  %v1642_v63 = vsel %vm1620_vm15, %v1609_v18, %v1362_v60  ;;  %v7310_v36 = vsub.s32 %v1938_v26, %v7294_v4 }
 0x14b   : > { %6167 = vmatprep.mubr.msk.bf16.mxu0 %vm1670_vm0, %v1642_v63  ;;  %v1412_v27 = vsel %vm1373_vm8, %v6879_v30, %v1076_v32 }
 0x14d   : > { %v1364_v12 = vpop.permute.xlu0 %1363 }
 0x14e   : > { %v1078_v45 = vpop.permute.xlu1 %1077  ;;  %v1644_v49 = vsel %vm1620_vm15, %v1611_v54, %v1364_v12 }
 0x14f   : > { %6168 = vmatmul.mubr.msk.bf16.gmra.mrb[20].mxu0 %vm1670_vm0, %v1644_v49  ;;  %v1415_v25 = vsel %vm1373_vm8, %v6936_v16, %v1078_v45 }
 0x151   : > { %v1156_v15 = vpop.permute.xlu0 %1155 }
 0x152   : > { %v1158_v0 = vpop.permute.xlu1 %1157  ;;  %v1448_v3 = vsel %vm1422_vm9, %v1412_v27, %v1156_v15 }
 0x153   : > { %v1450_v23 = vsel %vm1422_vm9, %v1415_v25, %v1158_v0 }
 0x155   : > { %v1191_v56 = vpop.permute.xlu0 %1190 }
 0x156   : > { %v1193_v47 = vpop.permute.xlu1 %1192  ;;  %v1481_v28 = vsel %vm1455_vm10, %v1448_v3, %v1191_v56 }
 0x157   : > { %v1483_v58 = vsel %vm1455_vm10, %v1450_v23, %v1193_v47 }
 0x159   : > { %v1226_v46 = vpop.permute.xlu0 %1225 }
 0x15a   : > { %v1228_v50 = vpop.permute.xlu1 %1227  ;;  %v1514_v31 = vsel %vm1488_vm11, %v1481_v28, %v1226_v46 }
 0x15b   : > { %v1516_v35 = vsel %vm1488_vm11, %v1483_v58, %v1228_v50 }
 0x15d   : > { %v1261_v19 = vpop.permute.xlu0 %1260 }
 0x15e   : > { %v1263_v20 = vpop.permute.xlu1 %1262  ;;  %v1547_v55 = vsel %vm1521_vm12, %v1514_v31, %v1261_v19 }
 0x15f   : > { %v1549_v51 = vsel %vm1521_vm12, %v1516_v35, %v1263_v20 }
 0x161   : > { %v1296_v22 = vpop.permute.xlu0 %1295 }
 0x162   : > { %v1298_v14 = vpop.permute.xlu1 %1297  ;;  %v1580_v62 = vsel %vm1554_vm13, %v1547_v55, %v1296_v22 }
 0x163   : > { %v1582_v16 = vsel %vm1554_vm13, %v1549_v51, %v1298_v14 }
 0x165   : > { %v1331_v1 = vpop.permute.xlu0 %1330 }
 0x166   : > { %v1333_v17 = vpop.permute.xlu1 %1332  ;;  %v1613_v30 = vsel %vm1587_vm14, %v1580_v62, %v1331_v1 }
 0x167   : > { %v1615_v41 = vsel %vm1587_vm14, %v1582_v16, %v1333_v17 }
 0x169   : > { %v1366_v2 = vpop.permute.xlu0 %1365 }
 0x16a   : > { %v1080_v39 = vpop.permute.xlu1 %1079  ;;  %v1646_v24 = vsel %vm1620_vm15, %v1613_v30, %v1366_v2 }
 0x16b   : > { %6171 = vmatprep.mubr.msk.bf16.mxu0 %vm1670_vm0, %v1646_v24  ;;  %v1418_v57 = vsel %vm1373_vm8, %v7002_v48, %v1080_v39 }
 0x16d   : > { %v1368_v53 = vpop.permute.xlu0 %1367 }
 0x16e   : > { %v1082_v8 = vpop.permute.xlu1 %1081  ;;  %v1648_v38 = vsel %vm1620_vm15, %v1615_v41, %v1368_v53 }
 0x16f   : > { %6172 = vmatmul.mubr.msk.bf16.gmra.mrb[24].mxu0 %vm1670_vm0, %v1648_v38  ;;  %v1421_v18 = vsel %vm1373_vm8, %v7062_v59, %v1082_v8  ;;  %vm3341_vm8 = vcmask 1044484  }
 0x171   : > { %v1160_v44 = vpop.permute.xlu0 %1159 }
 0x172   : > { %v1162_v9 = vpop.permute.xlu1 %1161  ;;  %v1452_v60 = vsel %vm1422_vm9, %v1418_v57, %v1160_v44 }
 0x173   : > { %v1454_v32 = vsel %vm1422_vm9, %v1421_v18, %v1162_v9  ;;  %vm7336_vm9 = vmand %vm2993_vm1, %vm3483_vm3  ;;  %vm3914_vm1 = vcmask 785408  }
 0x175   : > { %v1195_v34 = vpop.permute.xlu0 %1194 }
 0x176   : > { %v1197_v40 = vpop.permute.xlu1 %1196  ;;  %v1485_v63 = vsel %vm1455_vm10, %v1452_v60, %v1195_v34 }
 0x177   : > { %v1487_v12 = vsel %vm1455_vm10, %v1454_v32, %v1197_v40  ;;  %vm3344_vm10 = vcmask 1045509  }
 0x179   : > { %v1230_v37 = vpop.permute.xlu0 %1229 }
 0x17a   : > { %v1232_v43 = vpop.permute.xlu1 %1231  ;;  %v1518_v48 = vsel %vm1488_vm11, %v1485_v63, %v1230_v37 }
 0x17b   : > { %v1520_v15 = vsel %vm1488_vm11, %v1487_v12, %v1232_v43  ;;  %vm3347_vm11 = vcmask 1046534  }
 0x17d   : > { %v1265_v29 = vpop.permute.xlu0 %1264 }
 0x17e   : > { %v1267_v42 = vpop.permute.xlu1 %1266  ;;  %v1551_v0 = vsel %vm1521_vm12, %v1518_v48, %v1265_v29 }
 0x17f   : > { %v1553_v19 = vsel %vm1521_vm12, %v1520_v15, %v1267_v42  ;;  %vm3350_vm12 = vcmask 1047559  }
 0x181   : > { %v1300_v33 = vpop.permute.xlu0 %1299 }
 0x182   : > { %v6149_v6 = vpop.f32.mrb[0].mxu0  ;;  %v1302_v45 = vpop.permute.xlu1 %1301  ;;  %v1584_v20 = vsel %vm1554_vm13, %v1551_v0, %v1300_v33 }
 0x183   : > { %v1753_v7 = vadd.f32 %v6149_v6, %v7299_v5  ;;  %v1744_v54 = vpop.f32.mrb[1].mxu0  ;;  %v1586_v27 = vsel %vm1554_vm13, %v1553_v19, %v1302_v45  ;;  %vm3477_vm13 = vsmask.f32 7938 }
 0x184   : > { %v1745_v59 = vadd.f32 %v7299_v5, %v1744_v54  ;;  %v6150_v49 = vpop.f32.mrb[2].mxu0 }
 0x185   : > { %v1873_v56 = vmax.f32 %v1753_v7, 0.0  ;;  %v1756_v47 = vadd.f32 %v6150_v49, %v7299_v5  ;;  %v1747_v46 = vpop.f32.mrb[3].mxu0  ;;  %v1335_v50 = vpop.permute.xlu0 %1334 }
 0x186   : > { %v1871_v22 = vmax.f32 %v1745_v59, 0.0  ;;  %v1748_v14 = vadd.f32 %v7299_v5, %v1747_v46  ;;  %v7325_v55 = vsel %vm1587_vm14, %v1584_v20, %v1335_v50  ;;  %v1337_v42 = vpop.permute.xlu1 %1336 }
 0x187   : > { %v1969_v3 = vcombine.high %v1873_v56, %v1873_v56  ;;  %v1976_v28 = vrot.slane %v1873_v56, %v7310_v36  ;;  %v1874_v1 = vmax.f32 %v1756_v47, 0.0 }
 0x188   : > { %v1935_v31 = vcombine.high %v1871_v22, %v1871_v22  ;;  %v1942_v17 = vrot.slane %v1871_v22, %v7310_v36  ;;  %v1872_v25 = vmax.f32 %v1748_v14, 0.0  ;;  %v1619_v22 = vsel %vm1587_vm14, %v1586_v27, %v1337_v42  ;;  %vm7354_vm14 = vmand %vm2991_vm2, %vm3477_vm13  ;;  %v7362_v42 = vld [vmem:[#allocation2 + $0x4] sm:$0x1] }
 0x189   : > { %v1983_v23 = vrot.slane %v1969_v3, %v7310_v36  ;;  %v1984_v62 = vcombine.high %v1976_v28, %v1976_v28  ;;  %v1986_v58 = vcombine.high %v1874_v1, %v1874_v1  ;;  %v1993_v30 = vrot.slane %v1874_v1, %v7310_v36 }
 0x18a   : > { %v1949_v2 = vrot.slane %v1935_v31, %v7310_v36  ;;  %v1950_v35 = vcombine.high %v1942_v17, %v1942_v17  ;;  %v2607_v39 = vmax.f32 %v1942_v17, %v1976_v28  ;;  %v1952_v24 = vcombine.high %v1872_v25, %v1872_v25  ;;  %v1372_v14 = vpop.permute.xlu1 %1371  ;;  %v1370_v17 = vpop.permute.xlu0 %1369 }
 0x18b   : > { %v1985_v51 = vcombine.high %v1983_v23, %v1983_v23  ;;  %v2000_v16 = vrot.slane %v1986_v58, %v7310_v36  ;;  %v2001_v41 = vcombine.high %v1993_v30, %v1993_v30  ;;  %v1959_v53 = vrot.slane %v1872_v25, %v7310_v36 }
 0x18c   : > { %v1951_v8 = vcombine.high %v1949_v2, %v1949_v2  ;;  %v2608_v38 = vmax.f32 %v1950_v35, %v1984_v62  ;;  %v2609_v44 = vmax.f32 %v1949_v2, %v1983_v23  ;;  %v5662_v9 = vrot.slane %v2607_v39, 9  ;;  %v3485_v2 = vld [vmem:[#allocation2 + $0xc] sm:$0x1] }
 0x18d   : > { %v2002_v34 = vcombine.high %v2000_v16, %v2000_v16  ;;  %v1966_v40 = vrot.slane %v1952_v24, %v7310_v36  ;;  %v1967_v37 = vcombine.high %v1959_v53, %v1959_v53  ;;  %v2611_v43 = vmax.f32 %v1959_v53, %v1993_v30 }
 0x18e   : > { %v2610_v21 = vmax.f32 %v1951_v8, %v1985_v51  ;;  %v5663_v10 = vrot.slane %v2608_v38, 9  ;;  %v5664_v11 = vrot.slane %v2609_v44, 9  ;;  %v2927_v29 = vmax.f32 %v2607_v39, %v5662_v9 }
 0x18f   : > { %v1968_v26 = vcombine.high %v1966_v40, %v1966_v40  ;;  %v2612_v57 = vmax.f32 %v1967_v37, %v2001_v41  ;;  %v2613_v33 = vmax.f32 %v1966_v40, %v2000_v16  ;;  %v5666_v18 = vrot.slane %v2611_v43, 9 }
 0x190   : > { %v5665_v60 = vrot.slane %v2610_v21, 9  ;;  %v2928_v6 = vmax.f32 %v2608_v38, %v5663_v10  ;;  %v2929_v32 = vmax.f32 %v2609_v44, %v5664_v11  ;;  %v5942_v63 = vpack.c.bf16 %v2927_v29, %v2927_v29  ;;  %v7360_v29 = vld [vmem:[#allocation2] sm:$0xf] }
 0x191   : > { %v2614_v7 = vmax.f32 %v1968_v26, %v2002_v34  ;;  %v5667_v54 = vrot.slane %v2612_v57, 9  ;;  %v5668_v12 = vrot.slane %v2613_v33, 9  ;;  %v2931_v48 = vmax.f32 %v2611_v43, %v5666_v18 }
 0x192   : > { %v2930_v45 = vmax.f32 %v2610_v21, %v5665_v60  ;;  %v5943_v59 = vpack.c.bf16 %v2928_v6, %v2928_v6  ;;  %v5944_v49 = vpack.c.bf16 %v2929_v32, %v2929_v32  ;;  %v3269_v15 = vunpack.c.l.b16 %v5942_v63  ;;  %v3479_v21 = vld [vmem:[#allocation2 + $0x8] sm:$0xf] }
 0x193   : > { %v5669_v0 = vrot.slane %v2614_v7, 9  ;;  %v2932_v56 = vmax.f32 %v2612_v57, %v5667_v54  ;;  %v2933_v47 = vmax.f32 %v2613_v33, %v5668_v12  ;;  %v5946_v46 = vpack.c.bf16 %v2931_v48, %v2931_v48 }
 0x194   : > { %v5945_v50 = vpack.c.bf16 %v2930_v45, %v2930_v45  ;;  %v3270_v19 = vunpack.c.l.b16 %v5943_v59  ;;  %v3271_v20 = vunpack.c.l.b16 %v5944_v49  ;;  %v3333_v23 = vrot.slane %v3269_v15, 7 }
 0x195   : > { %v2934_v3 = vmax.f32 %v2614_v7, %v5669_v0  ;;  %v5947_v28 = vpack.c.bf16 %v2932_v56, %v2932_v56  ;;  %v5948_v1 = vpack.c.bf16 %v2933_v47, %v2933_v47  ;;  %v3273_v31 = vunpack.c.l.b16 %v5946_v46 }
 0x196   : > { %v3272_v25 = vunpack.c.l.b16 %v5945_v50  ;;  %v3334_v62 = vrot.slane %v3270_v19, 6  ;;  %v3337_v58 = vrot.slane %v3271_v20, 5  ;;  %v1652_v24 = vsel %vm1620_vm15, %v1619_v22, %v1372_v14 }
 0x197   : > { %v3274_v35 = vunpack.c.l.b16 %v5947_v28  ;;  %v3275_v39 = vunpack.c.l.b16 %v5948_v1  ;;  %v6006_v27 = vpack.c.bf16 %v2934_v3, %v2934_v3  ;;  %v1650_v41 = vsel %vm1620_vm15, %v7325_v55, %v1370_v17 }
 0x198   : > { %v3336_v51 = vsel %vm3335_vm6, %v3334_v62, %v3333_v23  ;;  %v3340_v16 = vrot.slane %v3272_v25, 4  ;;  %v3343_v8 = vrot.slane %v3273_v31, 3  ;;  %6175 = vmatprep.mubr.msk.bf16.mxu0 %vm1670_vm0, %v1650_v41  ;;  %v5798_v18 = vrot.slane %v7360_v29, 9 }
 0x199   : > { %v3339_v53 = vsel %vm3338_vm7, %v3337_v58, %v3336_v51  ;;  %v3486_v38 = vsel %vm7336_vm9, %v6006_v27, %v3485_v2  ;;  %v3346_v9 = vrot.slane %v3274_v35, 2  ;;  %6176 = vmatmul.mubr.msk.bf16.gmra.mrb[28].mxu0 %vm1670_vm0, %v1652_v24  ;;  %v3349_v55 = vrot.slane %v3275_v39, 1 }
 0x19a   : > { %v3342_v44 = vsel %vm3341_vm8, %v3340_v16, %v3339_v53  ;;  %3487 = vst [vmem:[#allocation2 + $0xc] sm:$0x1] %v3486_v38  ;;  %v3717_v60 = vrot.slane %v7362_v42, 5  ;;  %v3588_v59 = vshrl.u32 %v7360_v29, 16  ;;  %v3591_v49 = vshll.u32 %v7360_v29, 16 }
 0x19b   : > { %v3345_v34 = vsel %vm3344_vm10, %v3343_v8, %v3342_v44  ;;  %vm3892_vm15 = vcmask 261120   ;;  %vm3905_vm0 = vcmask 523264  }
 0x19c   : > { %v3348_v40 = vsel %vm3347_vm11, %v3346_v9, %v3345_v34  ;;  %v7377_v47 = vsel %vm6423_vm4, %v5798_v18, %v3717_v60 }
 0x19d   : > { %v3351_v37 = vsel %vm3350_vm12, %v3349_v55, %v3348_v40 }
 0x19e   : > { %v3443_v10 = vpack.c.b16 %v3351_v37, %v3351_v37 }
 0x1a0   : > { %v3480_v11 = vsel %vm7354_vm14, %v3443_v10, %v3479_v21 }
 0x1a1   : > { %3481 = vst [vmem:[#allocation2 + $0x8] sm:$0xf] %v3480_v11  ;;  %v7369_v12 = vld [vmem:[#allocation2 + $0xc] sm:$0x1] }
 0x1a2   : > { %v6153_v26 = vpop.f32.mrb[4].mxu0  ;;  %v3721_v20 = vrot.slane %v7369_v12, 5 }
 0x1a3   : > { %v1769_v57 = vadd.f32 %v6153_v26, %v7299_v5  ;;  %v1760_v33 = vpop.f32.mrb[5].mxu0 }
 0x1a4   : > { %v1761_v6 = vadd.f32 %v7299_v5, %v1760_v33  ;;  %v6154_v32 = vpop.f32.mrb[6].mxu0 }
 0x1a5   : > { %v1877_v63 = vmax.f32 %v1769_v57, 0.0  ;;  %v1772_v7 = vadd.f32 %v6154_v32, %v7299_v5  ;;  %v1763_v54 = vpop.f32.mrb[7].mxu0 }
 0x1a6   : > { %v1875_v48 = vmax.f32 %v1761_v6, 0.0  ;;  %v1764_v45 = vadd.f32 %v7299_v5, %v1763_v54 }
 0x1a7   : > { %v2037_v15 = vcombine.high %v1877_v63, %v1877_v63  ;;  %v2044_v0 = vrot.slane %v1877_v63, %v7310_v36  ;;  %v1878_v56 = vmax.f32 %v1772_v7, 0.0 }
 0x1a8   : > { %v2003_v46 = vcombine.high %v1875_v48, %v1875_v48  ;;  %v2010_v50 = vrot.slane %v1875_v48, %v7310_v36  ;;  %v1876_v19 = vmax.f32 %v1764_v45, 0.0 }
 0x1a9   : > { %v2051_v22 = vrot.slane %v2037_v15, %v7310_v36  ;;  %v2052_v14 = vcombine.high %v2044_v0, %v2044_v0  ;;  %v2054_v3 = vcombine.high %v1878_v56, %v1878_v56  ;;  %v2061_v28 = vrot.slane %v1878_v56, %v7310_v36 }
 0x1aa   : > { %v2017_v1 = vrot.slane %v2003_v46, %v7310_v36  ;;  %v2018_v31 = vcombine.high %v2010_v50, %v2010_v50  ;;  %v2615_v17 = vmax.f32 %v2010_v50, %v2044_v0  ;;  %v2020_v25 = vcombine.high %v1876_v19, %v1876_v19  ;;  %v7387_v0 = vld [vmem:[#allocation2 + $0x8] sm:$0xf] }
 0x1ab   : > { %v2053_v23 = vcombine.high %v2051_v22, %v2051_v22  ;;  %v2068_v62 = vrot.slane %v2054_v3, %v7310_v36  ;;  %v2069_v58 = vcombine.high %v2061_v28, %v2061_v28  ;;  %v2027_v2 = vrot.slane %v1876_v19, %v7310_v36 }
 0x1ac   : > { %v2019_v35 = vcombine.high %v2017_v1, %v2017_v1  ;;  %v2616_v39 = vmax.f32 %v2018_v31, %v2052_v14  ;;  %v2617_v27 = vmax.f32 %v2017_v1, %v2051_v22  ;;  %v5670_v24 = vrot.slane %v2615_v17, 9 }
 0x1ad   : > { %v2070_v51 = vcombine.high %v2068_v62, %v2068_v62  ;;  %v2034_v16 = vrot.slane %v2020_v25, %v7310_v36  ;;  %v2035_v41 = vcombine.high %v2027_v2, %v2027_v2  ;;  %v2619_v53 = vmax.f32 %v2027_v2, %v2061_v28  ;;  %v3491_v25 = vld [vmem:[#allocation2 + $0x14] sm:$0x1] }
 0x1ae   : > { %v2618_v8 = vmax.f32 %v2019_v35, %v2053_v23  ;;  %v5671_v38 = vrot.slane %v2616_v39, 9  ;;  %v5672_v44 = vrot.slane %v2617_v27, 9  ;;  %v2935_v9 = vmax.f32 %v2615_v17, %v5670_v24 }
 0x1af   : > { %v2036_v34 = vcombine.high %v2034_v16, %v2034_v16  ;;  %v2620_v55 = vmax.f32 %v2035_v41, %v2069_v58  ;;  %v2621_v40 = vmax.f32 %v2034_v16, %v2068_v62  ;;  %v5674_v37 = vrot.slane %v2619_v53, 9 }
 0x1b0   : > { %v5673_v21 = vrot.slane %v2618_v8, 9  ;;  %v2936_v10 = vmax.f32 %v2616_v39, %v5671_v38  ;;  %v2937_v11 = vmax.f32 %v2617_v27, %v5672_v44  ;;  %v5950_v26 = vpack.c.bf16 %v2935_v9, %v2935_v9 }
 0x1b1   : > { %v2622_v57 = vmax.f32 %v2036_v34, %v2070_v51  ;;  %v5675_v33 = vrot.slane %v2620_v55, 9  ;;  %v5676_v18 = vrot.slane %v2621_v40, 9  ;;  %v2939_v60 = vmax.f32 %v2619_v53, %v5674_v37  ;;  %v3488_v37 = vld [vmem:[#allocation2 + $0x10] sm:$0xf] }
 0x1b2   : > { %v2938_v6 = vmax.f32 %v2618_v8, %v5673_v21  ;;  %v5951_v32 = vpack.c.bf16 %v2936_v10, %v2936_v10  ;;  %v5952_v63 = vpack.c.bf16 %v2937_v11, %v2937_v11  ;;  %v3277_v7 = vunpack.c.l.b16 %v5950_v26 }
 0x1b3   : > { %v5677_v54 = vrot.slane %v2622_v57, 9  ;;  %v2940_v48 = vmax.f32 %v2620_v55, %v5675_v33  ;;  %v2941_v45 = vmax.f32 %v2621_v40, %v5676_v18  ;;  %v5954_v15 = vpack.c.bf16 %v2939_v60, %v2939_v60 }
 0x1b4   : > { %v5953_v56 = vpack.c.bf16 %v2938_v6, %v2938_v6  ;;  %v3278_v46 = vunpack.c.l.b16 %v5951_v32  ;;  %v3279_v50 = vunpack.c.l.b16 %v5952_v63  ;;  %v3352_v19 = vrot.slane %v3277_v7, 7 }
 0x1b5   : > { %v2942_v22 = vmax.f32 %v2622_v57, %v5677_v54  ;;  %v5955_v14 = vpack.c.bf16 %v2940_v48, %v2940_v48  ;;  %v5956_v3 = vpack.c.bf16 %v2941_v45, %v2941_v45  ;;  %v3281_v28 = vunpack.c.l.b16 %v5954_v15 }
 0x1b6   : > { %v3280_v1 = vunpack.c.l.b16 %v5953_v56  ;;  %v3353_v31 = vrot.slane %v3278_v46, 6  ;;  %v3355_v17 = vrot.slane %v3279_v50, 5  ;;  %v5799_v23 = vrot.slane %v7387_v0, 9 }
 0x1b7   : > { %v3282_v62 = vunpack.c.l.b16 %v5955_v14  ;;  %v3283_v58 = vunpack.c.l.b16 %v5956_v3  ;;  %v6007_v2 = vpack.c.bf16 %v2942_v22, %v2942_v22  ;;  %v3590_v35 = vrot.slane %v3588_v59, 4 }
 0x1b8   : > { %v3354_v39 = vsel %vm3335_vm6, %v3353_v31, %v3352_v19  ;;  %v3357_v27 = vrot.slane %v3280_v1, 4  ;;  %v7397_v24 = vsel %vm6423_vm4, %v5799_v23, %v3721_v20  ;;  %v3602_v51 = vshrl.u32 %v7387_v0, 16 }
 0x1b9   : > { %v3356_v16 = vsel %vm3338_vm7, %v3355_v17, %v3354_v39  ;;  %v3359_v41 = vrot.slane %v3281_v28, 3  ;;  %v3492_v53 = vsel %vm7336_vm9, %v6007_v2, %v3491_v25  ;;  %v3593_v59 = vrot.slane %v3591_v49, 5 }
 0x1ba   : > { %v3358_v8 = vsel %vm3341_vm8, %v3357_v27, %v3356_v16  ;;  %v3361_v38 = vrot.slane %v3282_v62, 2  ;;  %3493 = vst [vmem:[#allocation2 + $0x14] sm:$0x1] %v3492_v53  ;;  %v5816_v44 = vcombine.low %v7377_v47, %v7397_v24  ;;  %v3605_v20 = vshll.u32 %v7387_v0, 16 }
 0x1bb   : > { %v3360_v9 = vsel %vm3344_vm10, %v3359_v41, %v3358_v8  ;;  %v3363_v34 = vrot.slane %v3283_v58, 1  ;;  %v3604_v40 = vrot.slane %v3602_v51, 4  ;;  %v3594_v10 = vor.u32 %v3593_v59, %v3590_v35 }
 0x1bc   : > { %v3362_v55 = vsel %vm3347_vm11, %v3361_v38, %v3360_v9  ;;  %3831 = vrot.lane.b32.xlu1 %v5816_v44, %s6340_s21  ;;  %v3607_v29 = vrot.slane %v3605_v20, 5  ;;  %v3597_v11 = vshll.u32 %v7362_v42, 16  ;;  %v3611_v60 = vshll.u32 %v7369_v12, 16 }
 0x1bd   : > { %v3364_v49 = vsel %vm3350_vm12, %v3363_v34, %v3362_v55  ;;  %v7416_v33 = vrot.slane %v3594_v10, 4 }
 0x1be   : > { %v3445_v21 = vpack.c.b16 %v3364_v49, %v3364_v49  ;;  %v3608_v26 = vor.u32 %v3607_v29, %v3604_v40  ;;  %v7418_v18 = vrot.slane %v3597_v11, 5  ;;  %v3613_v50 = vrot.slane %v3611_v60, 5 }
 0x1c0   : > { %v3489_v47 = vsel %vm7354_vm14, %v3445_v21, %v3488_v37  ;;  %v3609_v42 = vrot.slane %v3608_v26, 4  ;;  %v3600_v12 = vsel %vm6458_vm5, %v7416_v33, %v7418_v18  ;;  %v6255_v33 = vld [vmem:[%s8279_s3 + $0x40] sm:$0xff]  }
 0x1c1   : > { %3490 = vst [vmem:[#allocation2 + $0x10] sm:$0xf] %v3489_v47  ;;  %v7423_v54 = vld [vmem:[#allocation2 + $0x14] sm:$0x1]  ;;  %6048 = vmatprep.subr.bf16.mxu1 %v6255_v33 }
 0x1c2   : > { %v6157_v57 = vpop.f32.mrb[8].mxu0  ;;  %v3725_v3 = vrot.slane %v7423_v54, 5  ;;  %v7436_v17 = vsel %vm6458_vm5, %v3609_v42, %v3613_v50 }
 0x1c3   : > { %v1785_v6 = vadd.f32 %v6157_v57, %v7299_v5  ;;  %v1776_v32 = vpop.f32.mrb[9].mxu0 }
 0x1c4   : > { %v1777_v63 = vadd.f32 %v7299_v5, %v1776_v32  ;;  %v6158_v7 = vpop.f32.mrb[10].mxu0 }
 0x1c5   : > { %v1881_v48 = vmax.f32 %v1785_v6, 0.0  ;;  %v1788_v45 = vadd.f32 %v6158_v7, %v7299_v5  ;;  %v1779_v15 = vpop.f32.mrb[11].mxu0 }
 0x1c6   : > { %v1879_v56 = vmax.f32 %v1777_v63, 0.0  ;;  %v1780_v46 = vadd.f32 %v7299_v5, %v1779_v15 }
 0x1c7   : > { %v2105_v19 = vcombine.high %v1881_v48, %v1881_v48  ;;  %v2112_v22 = vrot.slane %v1881_v48, %v7310_v36  ;;  %v1882_v14 = vmax.f32 %v1788_v45, 0.0 }
 0x1c8   : > { %v2071_v28 = vcombine.high %v1879_v56, %v1879_v56  ;;  %v2078_v1 = vrot.slane %v1879_v56, %v7310_v36  ;;  %v1880_v31 = vmax.f32 %v1780_v46, 0.0 }
 0x1c9   : > { %v2119_v25 = vrot.slane %v2105_v19, %v7310_v36  ;;  %v2120_v23 = vcombine.high %v2112_v22, %v2112_v22  ;;  %v2122_v62 = vcombine.high %v1882_v14, %v1882_v14  ;;  %v2129_v58 = vrot.slane %v1882_v14, %v7310_v36  ;;  %v7444_v14 = vld [vmem:[#allocation2 + $0x10] sm:$0xf] }
 0x1ca   : > { %v2085_v2 = vrot.slane %v2071_v28, %v7310_v36  ;;  %v2086_v35 = vcombine.high %v2078_v1, %v2078_v1  ;;  %v2623_v39 = vmax.f32 %v2078_v1, %v2112_v22  ;;  %v2088_v27 = vcombine.high %v1880_v31, %v1880_v31 }
 0x1cb   : > { %v2121_v51 = vcombine.high %v2119_v25, %v2119_v25  ;;  %v2136_v16 = vrot.slane %v2122_v62, %v7310_v36  ;;  %v2137_v41 = vcombine.high %v2129_v58, %v2129_v58  ;;  %v2095_v53 = vrot.slane %v1880_v31, %v7310_v36 }
 0x1cc   : > { %v2087_v59 = vcombine.high %v2085_v2, %v2085_v2  ;;  %v2624_v8 = vmax.f32 %v2086_v35, %v2120_v23  ;;  %v2625_v38 = vmax.f32 %v2085_v2, %v2119_v25  ;;  %v5678_v44 = vrot.slane %v2623_v39, 9 }
 0x1cd   : > { %v2138_v20 = vcombine.high %v2136_v16, %v2136_v16  ;;  %v2102_v9 = vrot.slane %v2088_v27, %v7310_v36  ;;  %v2103_v34 = vcombine.high %v2095_v53, %v2095_v53  ;;  %v2627_v55 = vmax.f32 %v2095_v53, %v2129_v58 }
 0x1ce   : > { %v2626_v40 = vmax.f32 %v2087_v59, %v2121_v51  ;;  %v5679_v29 = vrot.slane %v2624_v8, 9  ;;  %v5680_v49 = vrot.slane %v2625_v38, 9  ;;  %v2943_v37 = vmax.f32 %v2623_v39, %v5678_v44  ;;  %v3497_v51 = vld [vmem:[#allocation2 + $0x1c] sm:$0x1] }
 0x1cf   : > { %v2104_v21 = vcombine.high %v2102_v9, %v2102_v9  ;;  %v2628_v10 = vmax.f32 %v2103_v34, %v2137_v41  ;;  %v2629_v11 = vmax.f32 %v2102_v9, %v2136_v16  ;;  %v5682_v47 = vrot.slane %v2627_v55, 9 }
 0x1d0   : > { %v5681_v26 = vrot.slane %v2626_v40, 9  ;;  %v2944_v57 = vmax.f32 %v2624_v8, %v5679_v29  ;;  %v2945_v60 = vmax.f32 %v2625_v38, %v5680_v49  ;;  %v5958_v6 = vpack.c.bf16 %v2943_v37, %v2943_v37  ;;  %v6256_v37 = vld [vmem:[%s8279_s3] sm:$0xff]  }
 0x1d1   : > { %v2630_v32 = vmax.f32 %v2104_v21, %v2138_v20  ;;  %v5683_v63 = vrot.slane %v2628_v10, 9  ;;  %v5684_v7 = vrot.slane %v2629_v11, 9  ;;  %v2947_v42 = vmax.f32 %v2627_v55, %v5682_v47  ;;  %6049 = vmatpush3.bf16.msra.mxu1 %v6256_v37 }
 0x1d2   : > { %v2946_v48 = vmax.f32 %v2626_v40, %v5681_v26  ;;  %v5959_v45 = vpack.c.bf16 %v2944_v57, %v2944_v57  ;;  %v5960_v15 = vpack.c.bf16 %v2945_v60, %v2945_v60  ;;  %v3285_v56 = vunpack.c.l.b16 %v5958_v6  ;;  %v3494_v60 = vld [vmem:[#allocation2 + $0x18] sm:$0xf]  ;;  %v6258_v6 = vld [vmem:[%s8279_s3 + $0x48] sm:$0xff]  }
 0x1d3   : > { %v5685_v46 = vrot.slane %v2630_v32, 9  ;;  %v2948_v50 = vmax.f32 %v2628_v10, %v5683_v63  ;;  %v2949_v19 = vmax.f32 %v2629_v11, %v5684_v7  ;;  %v5962_v22 = vpack.c.bf16 %v2947_v42, %v2947_v42  ;;  %v6259_v63 = vld [vmem:[%s8279_s3 + $0x8] sm:$0xff]   ;;  %6050 = vmatprep.subr.bf16.mxu1 %v6258_v6 }
 0x1d4   : > { %v5961_v28 = vpack.c.bf16 %v2946_v48, %v2946_v48  ;;  %v3286_v1 = vunpack.c.l.b16 %v5959_v45  ;;  %v3287_v31 = vunpack.c.l.b16 %v5960_v15  ;;  %v3365_v25 = vrot.slane %v3285_v56, 7  ;;  %v6260_v48 = vld [vmem:[%s8279_s3 + $0x50] sm:$0xff]  }
 0x1d5   : > { %v2950_v23 = vmax.f32 %v2630_v32, %v5685_v46  ;;  %v5963_v62 = vpack.c.bf16 %v2948_v50, %v2948_v50  ;;  %v5964_v58 = vpack.c.bf16 %v2949_v19, %v2949_v19  ;;  %v3289_v2 = vunpack.c.l.b16 %v5962_v22  ;;  %6051 = vmatpush3.bf16.msra.mxu1 %v6259_v63  ;;  %v6261_v56 = vld [vmem:[%s8279_s3 + $0x10] sm:$0xff]   ;;  %v6262_v46 = vld [vmem:[%s8279_s3 + $0x58] sm:$0xff]  }
 0x1d6   : > { %v3288_v35 = vunpack.c.l.b16 %v5961_v28  ;;  %v3366_v39 = vrot.slane %v3286_v1, 6  ;;  %v3368_v27 = vrot.slane %v3287_v31, 5  ;;  %v5820_v16 = vcombine.low %v7387_v0, %v7444_v14  ;;  %6052 = vmatprep.subr.bf16.mxu1 %v6260_v48  ;;  %v6263_v31 = vld [vmem:[%s8279_s3 + $0x18] sm:$0xff]  }
 0x1d7   : > { %v3290_v41 = vunpack.c.l.b16 %v5963_v62  ;;  %v3291_v53 = vunpack.c.l.b16 %v5964_v58  ;;  %v6008_v59 = vpack.c.bf16 %v2950_v23, %v2950_v23  ;;  %v5812_v8 = vcombine.low %v3600_v12, %v7436_v17  ;;  %v6264_v58 = vld [vmem:[%s8279_s3 + $0x60] sm:$0xff]  }
 0x1d8   : > { %v3367_v38 = vsel %vm3335_vm6, %v3366_v39, %v3365_v25  ;;  %v3370_v44 = vrot.slane %v3288_v35, 4  ;;  %3844 = vrot.lane.b32.xlu1 %v5820_v16, %s6341_s22  ;;  %v5800_v20 = vrot.slane %v7444_v14, 9  ;;  %v3616_v0 = vshrl.u32 %v7444_v14, 16 }
 0x1d9   : > { %v3369_v9 = vsel %vm3338_vm7, %v3368_v27, %v3367_v38  ;;  %v3372_v34 = vrot.slane %v3289_v2, 3  ;;  %v3374_v55 = vrot.slane %v3290_v41, 2  ;;  %v3498_v40 = vsel %vm7336_vm9, %v6008_v59, %v3497_v51  ;;  %6053 = vmatpush3.bf16.msra.mxu1 %v6261_v56  ;;  %v6265_v59 = vld [vmem:[%s8279_s3 + $0x20] sm:$0xff]  }
 0x1da   : > { %v3371_v18 = vsel %vm3341_vm8, %v3370_v44, %v3369_v9  ;;  %3499 = vst [vmem:[#allocation2 + $0x1c] sm:$0x1] %v3498_v40  ;;  %v7469_v12 = vsel %vm6423_vm4, %v5800_v20, %v3725_v3  ;;  %v3618_v29 = vrot.slane %v3616_v0, 4  ;;  %v3619_v49 = vshll.u32 %v7444_v14, 16  ;;  %6054 = vmatprep.subr.bf16.mxu1 %v6262_v46  ;;  %v6266_v0 = vld [vmem:[%s8279_s3 + $0x68] sm:$0xff]  }
 0x1db   : > { %v3373_v21 = vsel %vm3344_vm10, %v3372_v34, %v3371_v18  ;;  %v3376_v10 = vrot.slane %v3291_v53, 1  ;;  %v5828_v11 = vcombine.low %v7397_v24, %v7469_v12  ;;  %v3625_v26 = vshll.u32 %v7423_v54, 16 }
 0x1dc   : > { %v3375_v47 = vsel %vm3347_vm11, %v3374_v55, %v3373_v21  ;;  %3811 = vrot.lane.b32.xlu1 %v5812_v8, %s6342_s29  ;;  %v3621_v3 = vrot.slane %v3619_v49, 5 }
 0x1dd   : > { %v3377_v57 = vsel %vm3350_vm12, %v3376_v10, %v3375_v47  ;;  %3862 = vrot.lane.b32.xlu0 %v5828_v11, %s6342_s29  ;;  %v3627_v42 = vrot.slane %v3625_v26, 5  ;;  %6055 = vmatpush3.bf16.msra.mxu1 %v6263_v31  ;;  %v6267_v47 = vld [vmem:[%s8279_s3 + $0x28] sm:$0xff]  }
 0x1de   : > { %v3447_v24 = vpack.c.b16 %v3377_v57, %v3377_v57  ;;  %v3622_v32 = vor.u32 %v3621_v3, %v3618_v29  ;;  %6056 = vmatprep.subr.bf16.mxu1 %v6264_v58 }
 0x1e0   : > { %v3495_v54 = vsel %vm7354_vm14, %v3447_v24, %v3494_v60  ;;  %v3623_v7 = vrot.slane %v3622_v32, 4 }
 0x1e1   : > { %3496 = vst [vmem:[#allocation2 + $0x18] sm:$0xf] %v3495_v54  ;;  %6057 = vmatpush3.bf16.msra.mxu1 %v6265_v59 }
 0x1e2   : > { %v6161_v45 = vpop.f32.mrb[12].mxu0  ;;  %v7496_v15 = vsel %vm6458_vm5, %v3623_v7, %v3627_v42  ;;  %6058 = vmatprep.subr.bf16.mxu1 %v6266_v0 }
 0x1e3   : > { %v1801_v50 = vadd.f32 %v6161_v45, %v7299_v5  ;;  %v1792_v19 = vpop.f32.mrb[13].mxu0  ;;  %v5824_v22 = vcombine.low %v7436_v17, %v7496_v15 }
 0x1e4   : > { %v1793_v28 = vadd.f32 %v7299_v5, %v1792_v19  ;;  %v6162_v1 = vpop.f32.mrb[14].mxu0 }
 0x1e5   : > { %v1885_v25 = vmax.f32 %v1801_v50, 0.0  ;;  %v1804_v23 = vadd.f32 %v6162_v1, %v7299_v5  ;;  %v1795_v62 = vpop.f32.mrb[15].mxu0  ;;  %6059 = vmatpush3.bf16.msra.mxu1 %v6267_v47 }
 0x1e6   : > { %v1883_v2 = vmax.f32 %v1793_v28, 0.0  ;;  %v1796_v35 = vadd.f32 %v7299_v5, %v1795_v62 }
 0x1e7   : > { %v2173_v39 = vcombine.high %v1885_v25, %v1885_v25  ;;  %v2180_v27 = vrot.slane %v1885_v25, %v7310_v36  ;;  %v1886_v51 = vmax.f32 %v1804_v23, 0.0  ;;  %v6268_v25 = vld [vmem:[%s8279_s3 + $0x70] sm:$0xff]  }
 0x1e8   : > { %v2139_v16 = vcombine.high %v1883_v2, %v1883_v2  ;;  %v2146_v41 = vrot.slane %v1883_v2, %v7310_v36  ;;  %v1884_v53 = vmax.f32 %v1796_v35, 0.0  ;;  %v6269_v35 = vld [vmem:[%s8279_s3 + $0x30] sm:$0xff]   ;;  %6060 = vmatprep.subr.bf16.mxu1 %v6268_v25 }
 0x1e9   : > { %v2187_v8 = vrot.slane %v2173_v39, %v7310_v36  ;;  %v2188_v38 = vcombine.high %v2180_v27, %v2180_v27  ;;  %v2190_v44 = vcombine.high %v1886_v51, %v1886_v51  ;;  %v2197_v20 = vrot.slane %v1886_v51, %v7310_v36  ;;  %6061 = vmatpush3.bf16.msra.mxu1 %v6269_v35 }
 0x1ea   : > { %v2153_v9 = vrot.slane %v2139_v16, %v7310_v36  ;;  %v2154_v34 = vcombine.high %v2146_v41, %v2146_v41  ;;  %v2631_v55 = vmax.f32 %v2146_v41, %v2180_v27  ;;  %v2156_v40 = vcombine.high %v1884_v53, %v1884_v53  ;;  %v7539_v41 = vld [vmem:[#allocation2 + $0x18] sm:$0xf] }
 0x1eb   : > { %v2189_v33 = vcombine.high %v2187_v8, %v2187_v8  ;;  %v2204_v18 = vrot.slane %v2190_v44, %v7310_v36  ;;  %v2205_v29 = vcombine.high %v2197_v20, %v2197_v20  ;;  %v2163_v49 = vrot.slane %v1884_v53, %v7310_v36  ;;  %v3537_v44 = vld [vmem:[#allocation2 + $0x1c] sm:$0x1] }
 0x1ec   : > { %v2155_v37 = vcombine.high %v2153_v9, %v2153_v9  ;;  %v2632_v21 = vmax.f32 %v2154_v34, %v2188_v38  ;;  %v2633_v10 = vmax.f32 %v2153_v9, %v2187_v8  ;;  %v5686_v11 = vrot.slane %v2631_v55, 9 }
 0x1ed   : > { %v2206_v3 = vcombine.high %v2204_v18, %v2204_v18  ;;  %v2170_v26 = vrot.slane %v2156_v40, %v7310_v36  ;;  %v2171_v57 = vcombine.high %v2163_v49, %v2163_v49  ;;  %v2635_v60 = vmax.f32 %v2163_v49, %v2197_v20 }
 0x1ee   : > { %v2634_v6 = vmax.f32 %v2155_v37, %v2189_v33  ;;  %v5687_v24 = vrot.slane %v2632_v21, 9  ;;  %v5688_v32 = vrot.slane %v2633_v10, 9  ;;  %v2951_v63 = vmax.f32 %v2631_v55, %v5686_v11  ;;  %v6270_v55 = vld [vmem:[%s8279_s3 + $0x78] sm:$0xff]  }
 0x1ef   : > { %v2172_v54 = vcombine.high %v2170_v26, %v2170_v26  ;;  %v2636_v7 = vmax.f32 %v2171_v57, %v2205_v29  ;;  %v2637_v42 = vmax.f32 %v2170_v26, %v2204_v18  ;;  %v5690_v48 = vrot.slane %v2635_v60, 9  ;;  %v3503_v29 = vld [vmem:[#allocation2 + $0x24] sm:$0x1]  ;;  %v6271_v37 = vld [vmem:[%s8279_s3 + $0x38] sm:$0xff]   ;;  %6062 = vmatprep.subr.bf16.mxu1 %v6270_v55 }
 0x1f0   : > { %v5689_v45 = vrot.slane %v2634_v6, 9  ;;  %v2952_v56 = vmax.f32 %v2632_v21, %v5687_v24  ;;  %v2953_v46 = vmax.f32 %v2633_v10, %v5688_v32  ;;  %v5966_v50 = vpack.c.bf16 %v2951_v63, %v2951_v63  ;;  %6063 = vmatpush3.bf16.msra.mxu1 %v6271_v37 }
 0x1f1   : > { %v2638_v19 = vmax.f32 %v2172_v54, %v2206_v3  ;;  %v5691_v28 = vrot.slane %v2636_v7, 9  ;;  %v5692_v1 = vrot.slane %v2637_v42, 9  ;;  %v2955_v31 = vmax.f32 %v2635_v60, %v5690_v48 }
 0x1f2   : > { %v2954_v23 = vmax.f32 %v2634_v6, %v5689_v45  ;;  %v5967_v62 = vpack.c.bf16 %v2952_v56, %v2952_v56  ;;  %v5968_v58 = vpack.c.bf16 %v2953_v46, %v2953_v46  ;;  %v3293_v2 = vunpack.c.l.b16 %v5966_v50 }
 0x1f3   : > { %v5693_v39 = vrot.slane %v2638_v19, 9  ;;  %v2956_v27 = vmax.f32 %v2636_v7, %v5691_v28  ;;  %v2957_v51 = vmax.f32 %v2637_v42, %v5692_v1  ;;  %v5970_v16 = vpack.c.bf16 %v2955_v31, %v2955_v31  ;;  %v3500_v1 = vld [vmem:[#allocation2 + $0x20] sm:$0xf] }
 0x1f4   : > { %v5969_v53 = vpack.c.bf16 %v2954_v23, %v2954_v23  ;;  %v3294_v59 = vunpack.c.l.b16 %v5967_v62  ;;  %v3295_v8 = vunpack.c.l.b16 %v5968_v58  ;;  %v3378_v38 = vrot.slane %v3293_v2, 7 }
 0x1f5   : > { %v2958_v20 = vmax.f32 %v2638_v19, %v5693_v39  ;;  %v5971_v0 = vpack.c.bf16 %v2956_v27, %v2956_v27  ;;  %v5972_v9 = vpack.c.bf16 %v2957_v51, %v2957_v51  ;;  %v3297_v34 = vunpack.c.l.b16 %v5970_v16 }
 0x1f6   : > { %v3296_v40 = vunpack.c.l.b16 %v5969_v53  ;;  %v3379_v33 = vrot.slane %v3294_v59, 6  ;;  %v3381_v18 = vrot.slane %v3295_v8, 5  ;;  %v7546_v49 = vcombine.low %v7444_v14, %v7539_v41  ;;  %v7591_v59 = vld [vmem:[%s8278_s2] ss:$0 sm:$0xff] }
 0x1f7   : > { %v3298_v21 = vunpack.c.l.b16 %v5971_v0  ;;  %v3299_v10 = vunpack.c.l.b16 %v5972_v9  ;;  %v6009_v11 = vpack.c.bf16 %v2958_v20, %v2958_v20  ;;  %v3729_v47 = vrot.slane %v3537_v44, 5 }
 0x1f8   : > { %v3380_v3 = vsel %vm3335_vm6, %v3379_v33, %v3378_v38  ;;  %v3383_v26 = vrot.slane %v3296_v40, 4  ;;  %3872 = vrot.lane.b32.xlu0 %v7546_v49, %s6340_s21  ;;  %v5801_v57 = vrot.slane %v7539_v41, 9  ;;  %v3630_v14 = vshrl.u32 %v7539_v41, 16 }
 0x1f9   : > { %v3382_v60 = vsel %vm3338_vm7, %v3381_v18, %v3380_v3  ;;  %v3385_v6 = vrot.slane %v3297_v34, 3  ;;  %v3387_v24 = vrot.slane %v3298_v21, 2  ;;  %v3504_v32 = vsel %vm7336_vm9, %v6009_v11, %v3503_v29 }
 0x1fa   : > { %v3384_v63 = vsel %vm3341_vm8, %v3383_v26, %v3382_v60  ;;  %3505 = vst [vmem:[#allocation2 + $0x24] sm:$0x1] %v3504_v32  ;;  %v7562_v54 = vsel %vm6423_vm4, %v5801_v57, %v3729_v47  ;;  %v3632_v7 = vrot.slane %v3630_v14, 4  ;;  %v3633_v42 = vshll.u32 %v7539_v41, 16 }
 0x1fb   : > { %v3386_v48 = vsel %vm3344_vm10, %v3385_v6, %v3384_v63  ;;  %v3389_v45 = vrot.slane %v3299_v10, 1  ;;  %v7568_v56 = vcombine.low %v7469_v12, %v7562_v54  ;;  %v3639_v19 = vshll.u32 %v3537_v44, 16 }
 0x1fc   : > { %v3388_v46 = vsel %vm3347_vm11, %v3387_v24, %v3386_v48  ;;  %v3635_v50 = vrot.slane %v3633_v42, 5 }
 0x1fd   : > { %v3390_v28 = vsel %vm3350_vm12, %v3389_v45, %v3388_v46  ;;  %3833 = vrot.lane.b32.xlu1 %v7568_v56, %s6340_s21  ;;  %v3641_v58 = vrot.slane %v3639_v19, 5 }
 0x1fe   : > { %v3449_v31 = vpack.c.b16 %v3390_v28, %v3390_v28  ;;  %v3636_v25 = vor.u32 %v3635_v50, %v3632_v7 }
 0x200   : > { %v3501_v23 = vsel %vm7354_vm14, %v3449_v31, %v3500_v1  ;;  %v3637_v62 = vrot.slane %v3636_v25, 4 }
 0x201   : > { %3502 = vst [vmem:[#allocation2 + $0x20] sm:$0xf] %v3501_v23 }
 0x202   : > { %v7578_v12 = vsel %vm6458_vm5, %v3637_v62, %v3641_v58  ;;  %v6165_v2 = vpop.f32.mrb[16].mxu0 }
 0x203   : > { %v7582_v35 = vcombine.low %v7496_v15, %v7578_v12  ;;  %v1817_v39 = vadd.f32 %v6165_v2, %v7299_v5  ;;  %v1808_v27 = vpop.f32.mrb[17].mxu0 }
 0x204   : > { %v1809_v51 = vadd.f32 %v7299_v5, %v1808_v27  ;;  %v6166_v16 = vpop.f32.mrb[18].mxu0 }
 0x205   : > { %3882 = vrot.lane.b32.xlu0 %v7582_v35, %s6341_s22  ;;  %v1889_v53 = vmax.f32 %v1817_v39, 0.0  ;;  %v1820_v8 = vadd.f32 %v7591_v59, %v6166_v16  ;;  %v1811_v38 = vpop.f32.mrb[19].mxu0 }
 0x206   : > { %v1887_v44 = vmax.f32 %v1809_v51, 0.0  ;;  %v1812_v20 = vadd.f32 %v7591_v59, %v1811_v38 }
 0x207   : > { %v2241_v0 = vcombine.high %v1889_v53, %v1889_v53  ;;  %v2248_v9 = vrot.slane %v1889_v53, %v7310_v36  ;;  %v1890_v5 = vmax.f32 %v1820_v8, 0.0 }
 0x208   : > { %v2207_v34 = vcombine.high %v1887_v44, %v1887_v44  ;;  %v2214_v55 = vrot.slane %v1887_v44, %v7310_v36  ;;  %v1888_v40 = vmax.f32 %v1812_v20, 0.0 }
 0x209   : > { %v2255_v33 = vrot.slane %v2241_v0, %v7310_v36  ;;  %v2256_v18 = vcombine.high %v2248_v9, %v2248_v9  ;;  %v2258_v29 = vcombine.high %v1890_v5, %v1890_v5  ;;  %v2265_v37 = vrot.slane %v1890_v5, %v7310_v36 }
 0x20a   : > { %v2221_v21 = vrot.slane %v2207_v34, %v7310_v36  ;;  %v2222_v10 = vcombine.high %v2214_v55, %v2214_v55  ;;  %v2639_v11 = vmax.f32 %v2214_v55, %v2248_v9  ;;  %v2224_v47 = vcombine.high %v1888_v40, %v1888_v40  ;;  %v7603_v34 = vld [vmem:[#allocation2 + $0x20] sm:$0xf] }
 0x20b   : > { %v2257_v3 = vcombine.high %v2255_v33, %v2255_v33  ;;  %v2272_v26 = vrot.slane %v2258_v29, %v7310_v36  ;;  %v2273_v57 = vcombine.high %v2265_v37, %v2265_v37  ;;  %v2231_v14 = vrot.slane %v1888_v40, %v7310_v36  ;;  %v3539_v29 = vld [vmem:[#allocation2 + $0x24] sm:$0x1] }
 0x20c   : > { %v2223_v60 = vcombine.high %v2221_v21, %v2221_v21  ;;  %v2640_v6 = vmax.f32 %v2222_v10, %v2256_v18  ;;  %v2641_v24 = vmax.f32 %v2221_v21, %v2255_v33  ;;  %v5694_v32 = vrot.slane %v2639_v11, 9 }
 0x20d   : > { %v2274_v63 = vcombine.high %v2272_v26, %v2272_v26  ;;  %v2238_v7 = vrot.slane %v2224_v47, %v7310_v36  ;;  %v2239_v42 = vcombine.high %v2231_v14, %v2231_v14  ;;  %v2643_v48 = vmax.f32 %v2231_v14, %v2265_v37 }
 0x20e   : > { %v2642_v45 = vmax.f32 %v2223_v60, %v2257_v3  ;;  %v5695_v46 = vrot.slane %v2640_v6, 9  ;;  %v5696_v50 = vrot.slane %v2641_v24, 9  ;;  %v2959_v19 = vmax.f32 %v2639_v11, %v5694_v32 }
 0x20f   : > { %v2240_v28 = vcombine.high %v2238_v7, %v2238_v7  ;;  %v2644_v1 = vmax.f32 %v2239_v42, %v2273_v57  ;;  %v2645_v31 = vmax.f32 %v2238_v7, %v2272_v26  ;;  %v5698_v25 = vrot.slane %v2643_v48, 9  ;;  %v3509_v57 = vld [vmem:[#allocation2 + $0x2c] sm:$0x1] }
 0x210   : > { %v5697_v23 = vrot.slane %v2642_v45, 9  ;;  %v2960_v62 = vmax.f32 %v2640_v6, %v5695_v46  ;;  %v2961_v58 = vmax.f32 %v2641_v24, %v5696_v50  ;;  %v5974_v2 = vpack.c.bf16 %v2959_v19, %v2959_v19 }
 0x211   : > { %v2646_v39 = vmax.f32 %v2240_v28, %v2274_v63  ;;  %v5699_v27 = vrot.slane %v2644_v1, 9  ;;  %v5700_v51 = vrot.slane %v2645_v31, 9  ;;  %v2963_v16 = vmax.f32 %v2643_v48, %v5698_v25 }
 0x212   : > { %v2962_v53 = vmax.f32 %v2642_v45, %v5697_v23  ;;  %v5975_v8 = vpack.c.bf16 %v2960_v62, %v2960_v62  ;;  %v5976_v38 = vpack.c.bf16 %v2961_v58, %v2961_v58  ;;  %v3301_v44 = vunpack.c.l.b16 %v5974_v2 }
 0x213   : > { %v5701_v20 = vrot.slane %v2646_v39, 9  ;;  %v2964_v0 = vmax.f32 %v2644_v1, %v5699_v27  ;;  %v2965_v9 = vmax.f32 %v2645_v31, %v5700_v51  ;;  %v5978_v5 = vpack.c.bf16 %v2963_v16, %v2963_v16  ;;  %v3506_v51 = vld [vmem:[#allocation2 + $0x28] sm:$0xf] }
 0x214   : > { %v5977_v55 = vpack.c.bf16 %v2962_v53, %v2962_v53  ;;  %v3302_v40 = vunpack.c.l.b16 %v5975_v8  ;;  %v3303_v33 = vunpack.c.l.b16 %v5976_v38  ;;  %v3391_v18 = vrot.slane %v3301_v44, 7 }
 0x215   : > { %v2966_v37 = vmax.f32 %v2646_v39, %v5701_v20  ;;  %v5979_v21 = vpack.c.bf16 %v2964_v0, %v2964_v0  ;;  %v5980_v10 = vpack.c.bf16 %v2965_v9, %v2965_v9  ;;  %v3305_v11 = vunpack.c.l.b16 %v5978_v5 }
 0x216   : > { %v3304_v47 = vunpack.c.l.b16 %v5977_v55  ;;  %v3392_v3 = vrot.slane %v3302_v40, 6  ;;  %v3394_v26 = vrot.slane %v3303_v33, 5  ;;  %v5821_v14 = vcombine.low %v7539_v41, %v7603_v34 }
 0x217   : > { %v3306_v60 = vunpack.c.l.b16 %v5979_v21  ;;  %v3307_v6 = vunpack.c.l.b16 %v5980_v10  ;;  %v6010_v24 = vpack.c.bf16 %v2966_v37, %v2966_v37  ;;  %v3733_v32 = vrot.slane %v3539_v29, 5 }
 0x218   : > { %v3393_v63 = vsel %vm3335_vm6, %v3392_v3, %v3391_v18  ;;  %v3396_v7 = vrot.slane %v3304_v47, 4  ;;  %3846 = vrot.lane.b32.xlu1 %v5821_v14, %s6341_s22  ;;  %v5802_v42 = vrot.slane %v7603_v34, 9  ;;  %v3644_v48 = vshrl.u32 %v7603_v34, 16 }
 0x219   : > { %v3395_v45 = vsel %vm3338_vm7, %v3394_v26, %v3393_v63  ;;  %v3398_v46 = vrot.slane %v3305_v11, 3  ;;  %v3400_v50 = vrot.slane %v3306_v60, 2  ;;  %v3510_v41 = vsel %vm7336_vm9, %v6010_v24, %v3509_v57 }
 0x21a   : > { %v3397_v19 = vsel %vm3341_vm8, %v3396_v7, %v3395_v45  ;;  %3511 = vst [vmem:[#allocation2 + $0x2c] sm:$0x1] %v3510_v41  ;;  %v7617_v28 = vsel %vm6423_vm4, %v5802_v42, %v3733_v32  ;;  %v3646_v1 = vrot.slane %v3644_v48, 4  ;;  %v3647_v31 = vshll.u32 %v7603_v34, 16 }
 0x21b   : > { %v3399_v25 = vsel %vm3344_vm10, %v3398_v46, %v3397_v19  ;;  %v3402_v23 = vrot.slane %v3307_v6, 1  ;;  %v5829_v62 = vcombine.low %v7562_v54, %v7617_v28  ;;  %v3653_v39 = vshll.u32 %v3539_v29, 16 }
 0x21c   : > { %v3401_v58 = vsel %vm3347_vm11, %v3400_v50, %v3399_v25  ;;  %3813 = vrot.lane.b32.xlu1 %v7582_v35, %s6342_s29  ;;  %v3649_v2 = vrot.slane %v3647_v31, 5 }
 0x21d   : > { %v3403_v27 = vsel %vm3350_vm12, %v3402_v23, %v3401_v58  ;;  %3864 = vrot.lane.b32.xlu0 %v5829_v62, %s6342_s29  ;;  %v3655_v44 = vrot.slane %v3653_v39, 5 }
 0x21e   : > { %v3451_v16 = vpack.c.b16 %v3403_v27, %v3403_v27  ;;  %v3650_v53 = vor.u32 %v3649_v2, %v3646_v1 }
 0x220   : > { %v3507_v8 = vsel %vm7354_vm14, %v3451_v16, %v3506_v51  ;;  %v3651_v38 = vrot.slane %v3650_v53, 4 }
 0x221   : > { %3508 = vst [vmem:[#allocation2 + $0x28] sm:$0xf] %v3507_v8 }
 0x222   : > { %v6169_v54 = vpop.f32.mrb[20].mxu0  ;;  %v7632_v20 = vsel %vm6458_vm5, %v3651_v38, %v3655_v44 }
 0x223   : > { %v1833_v35 = vadd.f32 %v7591_v59, %v6169_v54  ;;  %v1824_v0 = vpop.f32.mrb[21].mxu0  ;;  %v5825_v9 = vcombine.low %v7578_v12, %v7632_v20 }
 0x224   : > { %v1825_v5 = vadd.f32 %v7591_v59, %v1824_v0  ;;  %v6170_v55 = vpop.f32.mrb[22].mxu0 }
 0x225   : > { %v1893_v40 = vmax.f32 %v1833_v35, 0.0  ;;  %v1836_v33 = vadd.f32 %v7591_v59, %v6170_v55  ;;  %v1827_v18 = vpop.f32.mrb[23].mxu0 }
 0x226   : > { %v1891_v29 = vmax.f32 %v1825_v5, 0.0  ;;  %v1828_v37 = vadd.f32 %v7591_v59, %v1827_v18 }
 0x227   : > { %v2309_v21 = vcombine.high %v1893_v40, %v1893_v40  ;;  %v2316_v10 = vrot.slane %v1893_v40, %v7310_v36  ;;  %v1894_v11 = vmax.f32 %v1836_v33, 0.0 }
 0x228   : > { %v2275_v47 = vcombine.high %v1891_v29, %v1891_v29  ;;  %v2282_v3 = vrot.slane %v1891_v29, %v7310_v36  ;;  %v1892_v26 = vmax.f32 %v1828_v37, 0.0 }
 0x229   : > { %v2323_v57 = vrot.slane %v2309_v21, %v7310_v36  ;;  %v2324_v14 = vcombine.high %v2316_v10, %v2316_v10  ;;  %v2326_v60 = vcombine.high %v1894_v11, %v1894_v11  ;;  %v2333_v6 = vrot.slane %v1894_v11, %v7310_v36 }
 0x22a   : > { %v2289_v24 = vrot.slane %v2275_v47, %v7310_v36  ;;  %v2290_v32 = vcombine.high %v2282_v3, %v2282_v3  ;;  %v2647_v63 = vmax.f32 %v2282_v3, %v2316_v10  ;;  %v2292_v7 = vcombine.high %v1892_v26, %v1892_v26  ;;  %v7648_v3 = vld [vmem:[#allocation2 + $0x28] sm:$0xf] }
 0x22b   : > { %v2325_v42 = vcombine.high %v2323_v57, %v2323_v57  ;;  %v2340_v48 = vrot.slane %v2326_v60, %v7310_v36  ;;  %v2341_v45 = vcombine.high %v2333_v6, %v2333_v6  ;;  %v2299_v46 = vrot.slane %v1892_v26, %v7310_v36 }
 0x22c   : > { %v2291_v50 = vcombine.high %v2289_v24, %v2289_v24  ;;  %v2648_v41 = vmax.f32 %v2290_v32, %v2324_v14  ;;  %v2649_v19 = vmax.f32 %v2289_v24, %v2323_v57  ;;  %v5702_v1 = vrot.slane %v2647_v63, 9 }
 0x22d   : > { %v2342_v31 = vcombine.high %v2340_v48, %v2340_v48  ;;  %v2306_v25 = vrot.slane %v2292_v7, %v7310_v36  ;;  %v2307_v23 = vcombine.high %v2299_v46, %v2299_v46  ;;  %v2651_v62 = vmax.f32 %v2299_v46, %v2333_v6  ;;  %v3541_v6 = vld [vmem:[#allocation2 + $0x2c] sm:$0x1]  ;;  %v3515_v46 = vld [vmem:[#allocation2 + $0x34] sm:$0x1] }
 0x22e   : > { %v2650_v58 = vmax.f32 %v2291_v50, %v2325_v42  ;;  %v5703_v2 = vrot.slane %v2648_v41, 9  ;;  %v5704_v39 = vrot.slane %v2649_v19, 9  ;;  %v2967_v27 = vmax.f32 %v2647_v63, %v5702_v1 }
 0x22f   : > { %v2308_v51 = vcombine.high %v2306_v25, %v2306_v25  ;;  %v2652_v16 = vmax.f32 %v2307_v23, %v2341_v45  ;;  %v2653_v53 = vmax.f32 %v2306_v25, %v2340_v48  ;;  %v5706_v8 = vrot.slane %v2651_v62, 9 }
 0x230   : > { %v5705_v38 = vrot.slane %v2650_v58, 9  ;;  %v2968_v44 = vmax.f32 %v2648_v41, %v5703_v2  ;;  %v2969_v54 = vmax.f32 %v2649_v19, %v5704_v39  ;;  %v5982_v35 = vpack.c.bf16 %v2967_v27, %v2967_v27 }
 0x231   : > { %v2654_v0 = vmax.f32 %v2308_v51, %v2342_v31  ;;  %v5707_v5 = vrot.slane %v2652_v16, 9  ;;  %v5708_v55 = vrot.slane %v2653_v53, 9  ;;  %v2971_v40 = vmax.f32 %v2651_v62, %v5706_v8 }
 0x232   : > { %v2970_v33 = vmax.f32 %v2650_v58, %v5705_v38  ;;  %v5983_v18 = vpack.c.bf16 %v2968_v44, %v2968_v44  ;;  %v5984_v29 = vpack.c.bf16 %v2969_v54, %v2969_v54  ;;  %v3309_v37 = vunpack.c.l.b16 %v5982_v35 }
 0x233   : > { %v5709_v21 = vrot.slane %v2654_v0, 9  ;;  %v2972_v10 = vmax.f32 %v2652_v16, %v5707_v5  ;;  %v2973_v11 = vmax.f32 %v2653_v53, %v5708_v55  ;;  %v5986_v47 = vpack.c.bf16 %v2971_v40, %v2971_v40  ;;  %v3512_v40 = vld [vmem:[#allocation2 + $0x30] sm:$0xf] }
 0x234   : > { %v5985_v26 = vpack.c.bf16 %v2970_v33, %v2970_v33  ;;  %v3310_v57 = vunpack.c.l.b16 %v5983_v18  ;;  %v3311_v14 = vunpack.c.l.b16 %v5984_v29  ;;  %v3404_v60 = vrot.slane %v3309_v37, 7 }
 0x235   : > { %v2974_v24 = vmax.f32 %v2654_v0, %v5709_v21  ;;  %v5987_v32 = vpack.c.bf16 %v2972_v10, %v2972_v10  ;;  %v5988_v63 = vpack.c.bf16 %v2973_v11, %v2973_v11  ;;  %v3313_v7 = vunpack.c.l.b16 %v5986_v47 }
 0x236   : > { %v3312_v42 = vunpack.c.l.b16 %v5985_v26  ;;  %v3405_v48 = vrot.slane %v3310_v57, 6  ;;  %v3407_v45 = vrot.slane %v3311_v14, 5  ;;  %v7652_v50 = vcombine.low %v7603_v34, %v7648_v3 }
 0x237   : > { %v3314_v41 = vunpack.c.l.b16 %v5987_v32  ;;  %v3315_v19 = vunpack.c.l.b16 %v5988_v63  ;;  %v6011_v1 = vpack.c.bf16 %v2974_v24, %v2974_v24  ;;  %v3737_v31 = vrot.slane %v3541_v6, 5 }
 0x238   : > { %v3406_v25 = vsel %vm3335_vm6, %v3405_v48, %v3404_v60  ;;  %v3409_v23 = vrot.slane %v3312_v42, 4  ;;  %3874 = vrot.lane.b32.xlu0 %v7652_v50, %s6340_s21  ;;  %v5803_v62 = vrot.slane %v7648_v3, 9  ;;  %v3658_v58 = vshrl.u32 %v7648_v3, 16 }
 0x239   : > { %v3408_v2 = vsel %vm3338_vm7, %v3407_v45, %v3406_v25  ;;  %v3411_v39 = vrot.slane %v3313_v7, 3  ;;  %v3413_v27 = vrot.slane %v3314_v41, 2  ;;  %v3516_v34 = vsel %vm7336_vm9, %v6011_v1, %v3515_v46 }
 0x23a   : > { %v3410_v51 = vsel %vm3341_vm8, %v3409_v23, %v3408_v2  ;;  %3517 = vst [vmem:[#allocation2 + $0x34] sm:$0x1] %v3516_v34  ;;  %v7665_v16 = vsel %vm6423_vm4, %v5803_v62, %v3737_v31  ;;  %v3660_v53 = vrot.slane %v3658_v58, 4  ;;  %v3661_v8 = vshll.u32 %v7648_v3, 16 }
 0x23b   : > { %v3412_v38 = vsel %vm3344_vm10, %v3411_v39, %v3410_v51  ;;  %v3415_v44 = vrot.slane %v3315_v19, 1  ;;  %v7671_v54 = vcombine.low %v7617_v28, %v7665_v16  ;;  %v3667_v5 = vshll.u32 %v3541_v6, 16 }
 0x23c   : > { %v3414_v35 = vsel %vm3347_vm11, %v3413_v27, %v3412_v38  ;;  %v3663_v0 = vrot.slane %v3661_v8, 5 }
 0x23d   : > { %v3416_v55 = vsel %vm3350_vm12, %v3415_v44, %v3414_v35  ;;  %3835 = vrot.lane.b32.xlu1 %v7671_v54, %s6340_s21  ;;  %v3669_v21 = vrot.slane %v3667_v5, 5 }
 0x23e   : > { %v3453_v33 = vpack.c.b16 %v3416_v55, %v3416_v55  ;;  %v3664_v18 = vor.u32 %v3663_v0, %v3660_v53 }
 0x240   : > { %v3513_v29 = vsel %vm7354_vm14, %v3453_v33, %v3512_v40  ;;  %v3665_v37 = vrot.slane %v3664_v18, 4 }
 0x241   : > { %3514 = vst [vmem:[#allocation2 + $0x30] sm:$0xf] %v3513_v29  ;;  %v7701_v40 = vld [vmem:[#allocation2 + $0x34] sm:$0x1] }
 0x242   : > { %v7681_v28 = vsel %vm6458_vm5, %v3665_v37, %v3669_v21  ;;  %v6173_v10 = vpop.f32.mrb[24].mxu0 }
 0x243   : > { %v7685_v11 = vcombine.low %v7632_v20, %v7681_v28  ;;  %v1849_v47 = vadd.f32 %v7591_v59, %v6173_v10  ;;  %v1840_v26 = vpop.f32.mrb[25].mxu0 }
 0x244   : > { %v1841_v57 = vadd.f32 %v7591_v59, %v1840_v26  ;;  %v6174_v14 = vpop.f32.mrb[26].mxu0 }
 0x245   : > { %3884 = vrot.lane.b32.xlu0 %v7685_v11, %s6341_s22  ;;  %v1897_v60 = vmax.f32 %v1849_v47, 0.0  ;;  %v1852_v6 = vadd.f32 %v7591_v59, %v6174_v14  ;;  %v1843_v24 = vpop.f32.mrb[27].mxu0 }
 0x246   : > { %v1895_v32 = vmax.f32 %v1841_v57, 0.0  ;;  %v1844_v63 = vadd.f32 %v7591_v59, %v1843_v24 }
 0x247   : > { %v2377_v7 = vcombine.high %v1897_v60, %v1897_v60  ;;  %v2384_v42 = vrot.slane %v1897_v60, %v7310_v36  ;;  %v1898_v48 = vmax.f32 %v1852_v6, 0.0  ;;  %v3741_v60 = vrot.slane %v7701_v40, 5 }
 0x248   : > { %v2343_v45 = vcombine.high %v1895_v32, %v1895_v32  ;;  %v2350_v46 = vrot.slane %v1895_v32, %v7310_v36  ;;  %v1896_v41 = vmax.f32 %v1844_v63, 0.0 }
 0x249   : > { %v2391_v19 = vrot.slane %v2377_v7, %v7310_v36  ;;  %v2392_v1 = vcombine.high %v2384_v42, %v2384_v42  ;;  %v2394_v31 = vcombine.high %v1898_v48, %v1898_v48  ;;  %v2401_v25 = vrot.slane %v1898_v48, %v7310_v36 }
 0x24a   : > { %v2357_v23 = vrot.slane %v2343_v45, %v7310_v36  ;;  %v2358_v62 = vcombine.high %v2350_v46, %v2350_v46  ;;  %v2655_v58 = vmax.f32 %v2350_v46, %v2384_v42  ;;  %v2360_v2 = vcombine.high %v1896_v41, %v1896_v41 }
 0x24b   : > { %v2393_v39 = vcombine.high %v2391_v19, %v2391_v19  ;;  %v2408_v27 = vrot.slane %v2394_v31, %v7310_v36  ;;  %v2409_v34 = vcombine.high %v2401_v25, %v2401_v25  ;;  %v2367_v51 = vrot.slane %v1896_v41, %v7310_v36 }
 0x24c   : > { %v2359_v53 = vcombine.high %v2357_v23, %v2357_v23  ;;  %v2656_v8 = vmax.f32 %v2358_v62, %v2392_v1  ;;  %v2657_v38 = vmax.f32 %v2357_v23, %v2391_v19  ;;  %v5710_v44 = vrot.slane %v2655_v58, 9 }
 0x24d   : > { %v2410_v35 = vcombine.high %v2408_v27, %v2408_v27  ;;  %v2374_v0 = vrot.slane %v2360_v2, %v7310_v36  ;;  %v2375_v5 = vcombine.high %v2367_v51, %v2367_v51  ;;  %v2659_v55 = vmax.f32 %v2367_v51, %v2401_v25 }
 0x24e   : > { %v2658_v33 = vmax.f32 %v2359_v53, %v2393_v39  ;;  %v5711_v18 = vrot.slane %v2656_v8, 9  ;;  %v5712_v29 = vrot.slane %v2657_v38, 9  ;;  %v2975_v37 = vmax.f32 %v2655_v58, %v5710_v44  ;;  %v3542_v58 = vld [vmem:[#allocation2 + $0x30] sm:$0xf]  ;;  %v3521_v44 = vld [vmem:[#allocation2 + $0x3c] sm:$0x1] }
 0x24f   : > { %v2376_v21 = vcombine.high %v2374_v0, %v2374_v0  ;;  %v2660_v10 = vmax.f32 %v2375_v5, %v2409_v34  ;;  %v2661_v47 = vmax.f32 %v2374_v0, %v2408_v27  ;;  %v5714_v32 = vrot.slane %v2659_v55, 9 }
 0x250   : > { %v5713_v26 = vrot.slane %v2658_v33, 9  ;;  %v2976_v57 = vmax.f32 %v2656_v8, %v5711_v18  ;;  %v2977_v14 = vmax.f32 %v2657_v38, %v5712_v29  ;;  %v5990_v6 = vpack.c.bf16 %v2975_v37, %v2975_v37 }
 0x251   : > { %v2662_v24 = vmax.f32 %v2376_v21, %v2410_v35  ;;  %v5715_v63 = vrot.slane %v2660_v10, 9  ;;  %v5716_v45 = vrot.slane %v2661_v47, 9  ;;  %v2979_v19 = vmax.f32 %v2659_v55, %v5714_v32 }
 0x252   : > { %v2978_v7 = vmax.f32 %v2658_v33, %v5713_v26  ;;  %v5991_v42 = vpack.c.bf16 %v2976_v57, %v2976_v57  ;;  %v5992_v48 = vpack.c.bf16 %v2977_v14, %v2977_v14  ;;  %v3317_v46 = vunpack.c.l.b16 %v5990_v6 }
 0x253   : > { %v5717_v41 = vrot.slane %v2662_v24, 9  ;;  %v2980_v1 = vmax.f32 %v2660_v10, %v5715_v63  ;;  %v2981_v62 = vmax.f32 %v2661_v47, %v5716_v45  ;;  %v5994_v27 = vpack.c.bf16 %v2979_v19, %v2979_v19 }
 0x254   : > { %v5993_v31 = vpack.c.bf16 %v2978_v7, %v2978_v7  ;;  %v3318_v25 = vunpack.c.l.b16 %v5991_v42  ;;  %v3319_v23 = vunpack.c.l.b16 %v5992_v48  ;;  %v3417_v2 = vrot.slane %v3317_v46, 7  ;;  %v3518_v48 = vld [vmem:[#allocation2 + $0x38] sm:$0xf] }
 0x255   : > { %v2982_v39 = vmax.f32 %v2662_v24, %v5717_v41  ;;  %v5995_v34 = vpack.c.bf16 %v2980_v1, %v2980_v1  ;;  %v5996_v38 = vpack.c.bf16 %v2981_v62, %v2981_v62  ;;  %v3321_v35 = vunpack.c.l.b16 %v5994_v27  ;;  %v3832_v1 = vpop.permute.xlu1 %3831 }
 0x256   : > { %v3320_v51 = vunpack.c.l.b16 %v5993_v31  ;;  %v3418_v53 = vrot.slane %v3318_v25, 6  ;;  %v3420_v8 = vrot.slane %v3319_v23, 5  ;;  %v5822_v55 = vcombine.low %v7648_v3, %v3542_v58 }
 0x257   : > { %v3322_v0 = vunpack.c.l.b16 %v5995_v34  ;;  %v6012_v5 = vpack.c.bf16 %v2982_v39, %v2982_v39  ;;  %v3323_v29 = vunpack.c.l.b16 %v5996_v38  ;;  %v5804_v37 = vrot.slane %v3542_v58, 9 }
 0x258   : > { %v3419_v33 = vsel %vm3335_vm6, %v3418_v53, %v3417_v2  ;;  %v3422_v18 = vrot.slane %v3320_v51, 4  ;;  %v3424_v10 = vrot.slane %v3321_v35, 3  ;;  %3848 = vrot.lane.b32.xlu1 %v5822_v55, %s6341_s22  ;;  %v3672_v32 = vshrl.u32 %v3542_v58, 16  ;;  %v6319_v55 = vld [vmem:[#allocation2] sm:$0xf] }
 0x259   : > { %v3421_v21 = vsel %vm3338_vm7, %v3420_v8, %v3419_v33  ;;  %v3522_v47 = vsel %vm7336_vm9, %v6012_v5, %v3521_v44  ;;  %v3426_v57 = vrot.slane %v3322_v0, 2  ;;  %v3742_v3 = vsel %vm6423_vm4, %v5804_v37, %v3741_v60  ;;  %v7727_v62 = vpop.permute.xlu1 %3844  ;;  %v3863_v5 = vpop.permute.xlu0 %3862  ;;  %v6320_v33 = vld [vmem:[#allocation2 + $0x8] sm:$0xf] }
 0x25a   : > { %v3423_v26 = vsel %vm3341_vm8, %v3422_v18, %v3421_v21  ;;  %3523 = vst [vmem:[#allocation2 + $0x3c] sm:$0x1] %v3522_v47  ;;  %v3428_v6 = vrot.slane %v3323_v29, 1  ;;  %v5830_v24 = vcombine.low %v7665_v16, %v3742_v3  ;;  %v3675_v7 = vshll.u32 %v3542_v58, 16 }
 0x25b   : > { %v3425_v14 = vsel %vm3344_vm10, %v3424_v10, %v3423_v26  ;;  %v3674_v45 = vrot.slane %v3672_v32, 4  ;;  %v3681_v41 = vshll.u32 %v7701_v40, 16  ;;  %v7734_v40 = vld [vmem:[%s8279_s3 + $0x80] sm:$0xff]   ;;  %v5808_v18 = vcombine.low %v6319_v55, %v6320_v33 }
 0x25c   : > { %v3427_v63 = vsel %vm3347_vm11, %v3426_v57, %v3425_v14  ;;  %3866 = vrot.lane.b32.xlu0 %v5830_v24, %s6342_s29  ;;  %3815 = vrot.lane.b32.xlu1 %v7685_v11, %s6342_s29  ;;  %v3677_v60 = vrot.slane %v3675_v7, 5 }
 0x25d   : > { %v3429_v42 = vsel %vm3350_vm12, %v3428_v6, %v3427_v63  ;;  %v3683_v25 = vrot.slane %v3681_v41, 5  ;;  %6179 = vmatprep.subr.bf16.mxu1 %v7734_v40  ;;  %v3812_v38 = vpop.permute.xlu1 %3811 }
 0x25e   : > { %v3455_v46 = vpack.c.b16 %v3429_v42, %v3429_v42  ;;  %v3678_v19 = vor.u32 %v3677_v60, %v3674_v45  ;;  %v3895_v10 = vsel %vm3892_vm15, %v5808_v18, %v3812_v38 }
 0x260   : > { %v3519_v16 = vsel %vm7354_vm14, %v3455_v46, %v3518_v48  ;;  %v3679_v31 = vrot.slane %v3678_v19, 4  ;;  %v7766_v46 = vsel %vm3905_vm0, %v3895_v10, %v3832_v1 }
 0x261   : > { %3520 = vst [vmem:[#allocation2 + $0x38] sm:$0xf] %v3519_v16  ;;  %v3545_v11 = vld [vmem:[#allocation2 + $0x3c] sm:$0x1] }
 0x262   : > { %v7725_v23 = vsel %vm6458_vm5, %v3679_v31, %v3683_v25  ;;  %v3745_v27 = vrot.slane %v3545_v11, 5  ;;  %v3695_v0 = vshll.u32 %v3545_v11, 16 }
 0x263   : > { %v5826_v2 = vcombine.low %v7681_v28, %v7725_v23 }
 0x264   : > { %v3697_v24 = vrot.slane %v3695_v0, 5 }
 0x268   : > { %v7736_v39 = vld [vmem:[#allocation2 + $0x38] sm:$0xf] }
 0x269   : > { %v7739_v34 = vcombine.low %v3542_v58, %v7736_v39  ;;  %v5805_v51 = vrot.slane %v7736_v39, 9  ;;  %v3686_v53 = vshrl.u32 %v7736_v39, 16  ;;  %v3689_v8 = vshll.u32 %v7736_v39, 16 }
 0x26a   : > { %v3873_v32 = vpop.permute.xlu0 %3872 }
 0x26b   : > { %3876 = vrot.lane.b32.xlu0 %v7739_v34, %s6340_s21  ;;  %v7749_v44 = vsel %vm6423_vm4, %v5805_v51, %v3745_v27  ;;  %v3688_v35 = vrot.slane %v3686_v53, 4  ;;  %v3691_v58 = vrot.slane %v3689_v8, 5 }
 0x26c   : > { %v7752_v29 = vcombine.low %v3742_v3, %v7749_v44  ;;  %v6177_v37 = vpop.f32.mrb[28].mxu0  ;;  %v3929_v3 = vsel %vm3892_vm15, %v5824_v22, %v3863_v5 }
 0x26d   : > { %v3692_v21 = vor.u32 %v3691_v58, %v3688_v35  ;;  %v1865_v47 = vadd.f32 %v7591_v59, %v6177_v37  ;;  %v1856_v26 = vpop.f32.mrb[29].mxu0  ;;  %v7778_v16 = vsel %vm3905_vm0, %v3929_v3, %v3873_v32 }
 0x26e   : > { %3837 = vrot.lane.b32.xlu1 %v7752_v29, %s6340_s21  ;;  %v1857_v57 = vadd.f32 %v7591_v59, %v1856_v26  ;;  %v6178_v14 = vpop.f32.mrb[30].mxu0 }
 0x26f   : > { %v3693_v6 = vrot.slane %v3692_v21, 4  ;;  %v1901_v63 = vmax.f32 %v1865_v47, 0.0  ;;  %v1868_v7 = vadd.f32 %v7591_v59, %v6178_v14  ;;  %v1859_v42 = vpop.f32.mrb[31].mxu0 }
 0x270   : > { %v1899_v48 = vmax.f32 %v1857_v57, 0.0  ;;  %v1860_v45 = vadd.f32 %v7591_v59, %v1859_v42 }
 0x271   : > { %v7770_v60 = vsel %vm6458_vm5, %v3693_v6, %v3697_v24  ;;  %v2445_v41 = vcombine.high %v1901_v63, %v1901_v63  ;;  %v2452_v17 = vrot.slane %v1901_v63, %v7310_v36  ;;  %v1902_v15 = vmax.f32 %v1868_v7, 0.0 }
 0x272   : > { %v7775_v22 = vcombine.low %v7725_v23, %v7770_v60  ;;  %v2411_v19 = vcombine.high %v1899_v48, %v1899_v48  ;;  %v2418_v59 = vrot.slane %v1899_v48, %v7310_v36  ;;  %v1900_v1 = vmax.f32 %v1860_v45, 0.0 }
 0x273   : > { %v2459_v31 = vrot.slane %v2445_v41, %v7310_v36  ;;  %v2460_v25 = vcombine.high %v2452_v17, %v2452_v17  ;;  %v2462_v11 = vcombine.high %v1902_v15, %v1902_v15  ;;  %v2469_v27 = vrot.slane %v1902_v15, %v7310_v36 }
 0x274   : > { %3817 = vrot.lane.b32.xlu1 %v7775_v22, %s6342_s29  ;;  %v2425_v51 = vrot.slane %v2411_v19, %v7310_v36  ;;  %v2426_v53 = vcombine.high %v2418_v59, %v2418_v59  ;;  %v2663_v8 = vmax.f32 %v2418_v59, %v2452_v17  ;;  %v2428_v38 = vcombine.high %v1900_v1, %v1900_v1 }
 0x275   : > { %v2461_v35 = vcombine.high %v2459_v31, %v2459_v31  ;;  %v2476_v58 = vrot.slane %v2462_v11, %v7310_v36  ;;  %v2477_v0 = vcombine.high %v2469_v27, %v2469_v27  ;;  %v2435_v5 = vrot.slane %v1900_v1, %v7310_v36 }
 0x276   : > { %v2427_v55 = vcombine.high %v2425_v51, %v2425_v51  ;;  %v2664_v33 = vmax.f32 %v2426_v53, %v2460_v25  ;;  %v2665_v18 = vmax.f32 %v2425_v51, %v2459_v31  ;;  %v5718_v37 = vrot.slane %v2663_v8, 9 }
 0x277   : > { %v2478_v21 = vcombine.high %v2476_v58, %v2476_v58  ;;  %v2442_v10 = vrot.slane %v2428_v38, %v7310_v36  ;;  %v2443_v47 = vcombine.high %v2435_v5, %v2435_v5  ;;  %v2667_v26 = vmax.f32 %v2435_v5, %v2469_v27  ;;  %v3883_v38 = vpop.permute.xlu0 %3882 }
 0x278   : > { %v2666_v57 = vmax.f32 %v2427_v55, %v2461_v35  ;;  %v5719_v14 = vrot.slane %v2664_v33, 9  ;;  %v5720_v6 = vrot.slane %v2665_v18, 9  ;;  %v2983_v24 = vmax.f32 %v2663_v8, %v5718_v37 }
 0x279   : > { %v2444_v3 = vcombine.high %v2442_v10, %v2442_v10  ;;  %v2668_v32 = vmax.f32 %v2443_v47, %v2477_v0  ;;  %v2669_v63 = vmax.f32 %v2442_v10, %v2476_v58  ;;  %v5722_v7 = vrot.slane %v2667_v26, 9 }
 0x27a   : > { %v5721_v42 = vrot.slane %v2666_v57, 9  ;;  %v2984_v48 = vmax.f32 %v2664_v33, %v5719_v14  ;;  %v2985_v45 = vmax.f32 %v2665_v18, %v5720_v6  ;;  %v5998_v41 = vpack.c.bf16 %v2983_v24, %v2983_v24 }
 0x27b   : > { %v2670_v17 = vmax.f32 %v2444_v3, %v2478_v21  ;;  %v5723_v15 = vrot.slane %v2668_v32, 9  ;;  %v5724_v19 = vrot.slane %v2669_v63, 9  ;;  %v2987_v59 = vmax.f32 %v2667_v26, %v5722_v7  ;;  %v3527_v26 = vld [vmem:[#allocation2 + $0x44] sm:$0x1] }
 0x27c   : > { %v2986_v1 = vmax.f32 %v2666_v57, %v5721_v42  ;;  %v5999_v31 = vpack.c.bf16 %v2984_v48, %v2984_v48  ;;  %v6000_v25 = vpack.c.bf16 %v2985_v45, %v2985_v45  ;;  %v3325_v11 = vunpack.c.l.b16 %v5998_v41 }
 0x27d   : > { %v5725_v27 = vrot.slane %v2670_v17, 9  ;;  %v2988_v51 = vmax.f32 %v2668_v32, %v5723_v15  ;;  %v2989_v53 = vmax.f32 %v2669_v63, %v5724_v19  ;;  %v6002_v8 = vpack.c.bf16 %v2987_v59, %v2987_v59  ;;  %v3524_v15 = vld [vmem:[#allocation2 + $0x40] sm:$0xf]  ;;  %v3548_v59 = vld [vmem:[#allocation2 + $0x48] sm:$0xf] }
 0x27e   : > { %v6001_v35 = vpack.c.bf16 %v2986_v1, %v2986_v1  ;;  %v3326_v58 = vunpack.c.l.b16 %v5999_v31  ;;  %v3327_v0 = vunpack.c.l.b16 %v6000_v25  ;;  %v3430_v5 = vrot.slane %v3325_v11, 7  ;;  %v3549_v1 = vld [vmem:[#allocation2 + $0x4c] sm:$0x1] }
 0x27f   : > { %v2990_v55 = vmax.f32 %v2670_v17, %v5725_v27  ;;  %v6003_v33 = vpack.c.bf16 %v2988_v51, %v2988_v51  ;;  %v6004_v18 = vpack.c.bf16 %v2989_v53, %v2989_v53  ;;  %v3329_v37 = vunpack.c.l.b16 %v6002_v8  ;;  %v6276_v25 = vld [vmem:[%s8279_s3 + $0x88] sm:$0xff]  }
 0x280   : > { %v3328_v21 = vunpack.c.l.b16 %v6001_v35  ;;  %v3431_v10 = vrot.slane %v3326_v58, 6  ;;  %v3433_v47 = vrot.slane %v3327_v0, 5  ;;  %v3948_v57 = vsel %vm3914_vm1, %v7778_v16, %v3883_v38 }
 0x281   : > { %v3330_v14 = vunpack.c.l.b16 %v6003_v33  ;;  %v3331_v6 = vunpack.c.l.b16 %v6004_v18  ;;  %v6013_v24 = vpack.c.bf16 %v2990_v55, %v2990_v55  ;;  %4117 = vmatprep.mubr.bf16.mxu1 %v3948_v57  ;;  %v3916_v3 = vsel %vm3914_vm1, %v7766_v46, %v7727_v62 }
 0x282   : > { %v3432_v32 = vsel %vm3335_vm6, %v3431_v10, %v3430_v5  ;;  %v3435_v63 = vrot.slane %v3328_v21, 4  ;;  %4118 = vmatmul.mubr.bf16.vlgmr.msra.gmra.mrb[0].mxu1 %v3916_v3  ;;  %v3437_v42 = vrot.slane %v3329_v37, 3  ;;  %v3771_v31 = vshll.u32 %v3548_v59, 16 }
 0x283   : > { %v3434_v7 = vsel %vm3338_vm7, %v3433_v47, %v3432_v32  ;;  %v3528_v48 = vsel %vm7336_vm9, %v6013_v24, %v3527_v26  ;;  %6180 = vmatpush3.bf16.msra.mxu1 %v7734_v40  ;;  %v3439_v45 = vrot.slane %v3330_v14, 2  ;;  %v3441_v17 = vrot.slane %v3331_v6, 1 }
 0x284   : > { %v3436_v16 = vsel %vm3341_vm8, %v3435_v63, %v3434_v7  ;;  %3529 = vst [vmem:[#allocation2 + $0x44] sm:$0x1] %v3528_v48  ;;  %v3768_v40 = vshrl.u32 %v3548_v59, 16  ;;  %v5807_v11 = vrot.slane %v3548_v59, 9  ;;  %v3785_v27 = vrot.slane %v3549_v1, 5  ;;  %6181 = vmatprep.subr.bf16.mxu1 %v6276_v25  ;;  %v3834_v48 = vpop.permute.xlu1 %3833 }
 0x285   : > { %v3438_v41 = vsel %vm3344_vm10, %v3437_v42, %v3436_v16  ;;  %v3773_v8 = vrot.slane %v3771_v31, 5  ;;  %v3777_v37 = vshll.u32 %v3549_v1, 16 }
 0x286   : > { %v3440_v62 = vsel %vm3347_vm11, %v3439_v45, %v3438_v41  ;;  %v3770_v53 = vrot.slane %v3768_v40, 4  ;;  %v7810_v43 = vsel %vm6423_vm4, %v5807_v11, %v3785_v27 }
 0x287   : > { %v3442_v46 = vsel %vm3350_vm12, %v3441_v17, %v3440_v62  ;;  %6182 = vmatpush3.bf16.msra.mxu1 %v6276_v25  ;;  %v3779_v6 = vrot.slane %v3777_v37, 5 }
 0x288   : > { %v3457_v19 = vpack.c.b16 %v3442_v46, %v3442_v46  ;;  %v3774_v18 = vor.u32 %v3773_v8, %v3770_v53 }
 0x28a   : > { %v3525_v30 = vsel %vm7354_vm14, %v3457_v19, %v3524_v15  ;;  %v3775_v14 = vrot.slane %v3774_v18, 4  ;;  %vm4749_vm14 = vsmask.f32 1280 }
 0x28b   : > { %3526 = vst [vmem:[#allocation2 + $0x40] sm:$0xf] %v3525_v30  ;;  %v3547_v51 = vld [vmem:[#allocation2 + $0x44] sm:$0x1] }
 0x28c   : > { %v3765_v35 = vrot.slane %v3547_v51, 5  ;;  %v3757_v26 = vshll.u32 %v3547_v51, 16  ;;  %v3780_v63 = vsel %vm6458_vm5, %v3775_v14, %v3779_v6 }
 0x28e   : > { %v3759_v3 = vrot.slane %v3757_v26, 5 }
 0x28f   : > { %v3865_v16 = vpop.permute.xlu0 %3864 }
 0x290   : > { %v3932_v52 = vsel %vm3892_vm15, %v5825_v9, %v3865_v16  ;;  %v6282_v16 = vld [vmem:[%s8281_s5 + $0x8] sm:$0xff]  }
 0x292   : > { %v3546_v38 = vld [vmem:[#allocation2 + $0x40] sm:$0xf] }
 0x293   : > { %v5832_v58 = vcombine.low %v3546_v38, %v3548_v59  ;;  %v5823_v0 = vcombine.low %v7736_v39, %v3546_v38  ;;  %v5806_v5 = vrot.slane %v3546_v38, 9  ;;  %v3748_v55 = vshrl.u32 %v3546_v38, 16 }
 0x294   : > { %v3751_v33 = vshll.u32 %v3546_v38, 16 }
 0x295   : > { %3878 = vrot.lane.b32.xlu0 %v5832_v58, %s6340_s21  ;;  %3850 = vrot.lane.b32.xlu1 %v5823_v0, %s6341_s22  ;;  %v7817_v21 = vsel %vm6423_vm4, %v5806_v5, %v3765_v35  ;;  %v3750_v10 = vrot.slane %v3748_v55, 4  ;;  %vm4495_vm4 = vcmask 518144  }
 0x296   : > { %v3753_v47 = vrot.slane %v3751_v33, 5  ;;  %v5834_v57 = vcombine.low %v7817_v21, %v7810_v43  ;;  %v5831_v32 = vcombine.low %v7749_v44, %v7817_v21  ;;  %4496 = vst.msk [vmem:[#allocation3] sm:$0x7] %vm4495_vm4, %v6338_v61  ;;  %4498 = vst.msk [vmem:[#allocation3 + $0x8] sm:$0x7] %vm4495_vm4, %v6338_v61 }
 0x297   : > { %4501 = vst.msk [vmem:[#allocation3 + $0x14] sm:$0x7] %vm4495_vm4, %v6338_v61  ;;  %4497 = vst.msk [vmem:[#allocation3 + $0x4] sm:$0x7] %vm4495_vm4, %v6338_v61 }
 0x298   : > { %v3754_v39 = vor.u32 %v3753_v47, %v3750_v10  ;;  %4499 = vst.msk [vmem:[#allocation3 + $0xc] sm:$0x7] %vm4495_vm4, %v6338_v61  ;;  %4500 = vst.msk [vmem:[#allocation3 + $0x10] sm:$0x7] %vm4495_vm4, %v6338_v61 }
 0x299   : > { %3886 = vrot.lane.b32.xlu0 %v7775_v22, %s6341_s22  ;;  %v3847_v22 = vpop.permute.xlu1 %3846 }
 0x29a   : > { %v3755_v24 = vrot.slane %v3754_v39, 4 }
 0x29c   : > { %v3760_v13 = vsel %vm6458_vm5, %v3755_v24, %v3759_v3  ;;  %vm4812_vm5 = vcmask 1040384  }
 0x29d   : > { %3868 = vrot.lane.b32.xlu0 %v5831_v32, %s6342_s29  ;;  %v5827_v7 = vcombine.low %v7770_v60, %v3760_v13  ;;  %v5833_v42 = vcombine.low %v3760_v13, %v3780_v63  ;;  %v3814_v45 = vpop.permute.xlu1 %3813  ;;  %v7886_v47 = vld [vmem:[#allocation3] sm:$0x7]  ;;  %vm4814_vm2 = vmor %vm4812_vm5, %vm3335_vm6 }
 0x29e   : > { %v3898_v44 = vsel %vm3892_vm15, %v7546_v49, %v3814_v45  ;;  %v7890_v26 = vrot.slane %v7886_v47, %v7310_v36  ;;  %vm4816_vm3 = vmor %vm4814_vm2, %vm3341_vm8  ;;  %v7905_v6 = vld [vmem:[#allocation3 + $0x14] sm:$0x7]  ;;  %vm6344_vm2 = vmmov 0  }
 0x29f   : > { %v3909_v17 = vsel %vm3905_vm0, %v3898_v44, %v3834_v48  ;;  %vm7899_vm9 = vmor %vm4816_vm3, %vm3347_vm11  ;;  %v7909_v24 = vrot.slane %v7905_v6, %v7310_v36  ;;  %v6280_v48 = vld [vmem:[%s8281_s5] sm:$0xff]   ;;  %vm4620_vm11 = vsmask.f32 2306 }
 0x2a0   : > { %v3919_v15 = vsel %vm3914_vm1, %v3909_v17, %v3847_v22  ;;  %v5890_v39 = vrot.slane %v7890_v26, 9  ;;  %v6281_v22 = vld [vmem:[%s8281_s5 + $0x48] sm:$0xff]   ;;  %v6289_v45 = vld [vmem:[%s8281_s5 + $0xc0] sm:$0xff]   ;;  %vm8037_vm13 = vmand %vm4495_vm4, %vm4620_vm11  ;;  %vm4754_vm4 = vsmask.f32 7448 }
 0x2a1   : > { %3888 = vrot.lane.b32.xlu0 %v5833_v42, %s6341_s22  ;;  %v7917_v32 = vcombine.high %v7909_v24, %v7909_v24  ;;  %v5895_v13 = vrot.slane %v7909_v24, 9  ;;  %v6279_v42 = vld [vmem:[%s8281_s5 + $0x40] sm:$0xff]   ;;  %6116 = vmatprep.subr.bf16.mxu1 %v6289_v45  ;;  %v6294_v17 = vld [vmem:[%s8281_s5 + $0x88] sm:$0xff]  }
 0x2a2   : > { %6094 = vmatprep.subr.bf16.mxu0 %v6279_v42  ;;  %v6290_v44 = vld [vmem:[%s8281_s5 + $0x80] sm:$0xff]  }
 0x2a3   : > { %v4887_v63 = vrot.slane %v7917_v32, 7  ;;  %6095 = vmatpush3.bf16.msra.mxu0 %v6280_v48  ;;  %v4872_v48 = vshrl.u32 %v7909_v24, 16 }
 0x2a4   : > { %6096 = vmatprep.subr.bf16.mxu0 %v6281_v22 }
 0x2a7   : > { %6097 = vmatpush3.bf16.msra.mxu0 %v6282_v16 }
 0x2aa   : > { %v3875_v41 = vpop.permute.xlu0 %3874 }
 0x2ab   : > { %v3942_v60 = vsel %vm3905_vm0, %v3932_v52, %v3875_v41  ;;  %v6283_v41 = vld [vmem:[%s8281_s5 + $0x50] sm:$0xff]   ;;  %v6293_v52 = vld [vmem:[%s8281_s5 + $0xc8] sm:$0xff]  }
 0x2ac   : > { %6098 = vmatprep.subr.bf16.mxu0 %v6283_v41 }
 0x2af   : > { %v3836_v19 = vpop.permute.xlu1 %3835 }
 0x2b7   : > { %v3885_v62 = vpop.permute.xlu0 %3884 }
 0x2b8   : > { %v3951_v46 = vsel %vm3914_vm1, %v3942_v60, %v3885_v62  ;;  %v6284_v60 = vld [vmem:[%s8281_s5 + $0x10] sm:$0xff]  }
 0x2b9   : > { %4125 = vmatprep.mubr.bf16.mxu1 %v3951_v46  ;;  %v6295_v62 = vld [vmem:[%s8281_s5 + $0xd0] sm:$0xff]   ;;  %v6285_v46 = vld [vmem:[%s8281_s5 + $0x58] sm:$0xff]   ;;  %6099 = vmatpush3.bf16.msra.mxu0 %v6284_v60 }
 0x2ba   : > { %4126 = vmatmul.mubr.bf16.gmra.mrb[4].mxu1 %v3919_v15  ;;  %v6296_v15 = vld [vmem:[%s8281_s5 + $0x90] sm:$0xff]   ;;  %6100 = vmatprep.subr.bf16.mxu0 %v6285_v46 }
 0x2ca   : > { %v3849_v59 = vpop.permute.xlu1 %3848 }
 0x2ce   : > { %v3867_v49 = vpop.permute.xlu0 %3866  ;;  %v3816_v1 = vpop.permute.xlu1 %3815 }
 0x2cf   : > { %v3901_v12 = vsel %vm3892_vm15, %v7652_v50, %v3816_v1  ;;  %v3935_v9 = vsel %vm3892_vm15, %v5826_v2, %v3867_v49  ;;  %v6287_v49 = vld [vmem:[%s8281_s5 + $0x60] sm:$0xff]  }
 0x2d0   : > { %v3911_v31 = vsel %vm3905_vm0, %v3901_v12, %v3836_v19  ;;  %v6286_v19 = vld [vmem:[%s8281_s5 + $0x18] sm:$0xff]   ;;  %v6288_v1 = vld [vmem:[%s8281_s5 + $0x20] sm:$0xff]   ;;  %v6291_v12 = vld [vmem:[%s8281_s5 + $0x68] sm:$0xff]  }
 0x2d1   : > { %v3922_v51 = vsel %vm3914_vm1, %v3911_v31, %v3849_v59  ;;  %v6299_v59 = vld [vmem:[%s8281_s5 + $0xd8] sm:$0xff]   ;;  %6101 = vmatpush3.bf16.msra.mxu0 %v6286_v19 }
 0x2d2   : > { %6102 = vmatprep.subr.bf16.mxu0 %v6287_v49 }
 0x2d5   : > { %6103 = vmatpush3.bf16.msra.mxu0 %v6288_v1 }
 0x2d6   : > { %6104 = vmatprep.subr.bf16.mxu0 %v6291_v12 }
 0x2dd   : > { %v3877_v30 = vpop.permute.xlu0 %3876 }
 0x2de   : > { %v3944_v25 = vsel %vm3905_vm0, %v3935_v9, %v3877_v30  ;;  %v6300_v30 = vld [vmem:[%s8281_s5 + $0x98] sm:$0xff]   ;;  %v6297_v9 = vld [vmem:[%s8281_s5 + $0x70] sm:$0xff]  }
 0x2e0   : > { %v3838_v40 = vpop.permute.xlu1 %3837 }
 0x2e6   : > { %v3818_v53 = vpop.permute.xlu1 %3817 }
 0x2e7   : > { %v3904_v28 = vsel %vm3892_vm15, %v7739_v34, %v3818_v53 }
 0x2e8   : > { %v3913_v43 = vsel %vm3905_vm0, %v3904_v28, %v3838_v40  ;;  %v6298_v40 = vld [vmem:[%s8281_s5 + $0x30] sm:$0xff]  }
 0x307   : > { %v3879_v20 = vpop.permute.xlu0 %3878  ;;  %v3851_v23 = vpop.permute.xlu1 %3850 }
 0x308   : > { %v3925_v58 = vsel %vm3914_vm1, %v3913_v43, %v3851_v23 }
 0x30b   : > { %v3887_v11 = vpop.permute.xlu0 %3886 }
 0x30c   : > { %v3954_v27 = vsel %vm3914_vm1, %v3944_v25, %v3887_v11 }
 0x30d   : > { %4133 = vmatprep.mubr.bf16.mxu1 %v3954_v27 }
 0x30e   : > { %4134 = vmatmul.mubr.bf16.gmra.mrb[8].mxu1 %v3922_v51 }
 0x30f   : > { %v3869_v50 = vpop.permute.xlu0 %3868 }
 0x310   : > { %v3938_v8 = vsel %vm3892_vm15, %v5827_v7, %v3869_v50  ;;  %v7923_v7 = vsel %vm7899_vm9, %v5895_v13, %v4887_v63  ;;  %v4757_v13 = vshrl.u32 %v7890_v26, 16 }
 0x311   : > { %v3946_v38 = vsel %vm3905_vm0, %v3938_v8, %v3879_v20  ;;  %v6292_v20 = vld [vmem:[%s8281_s5 + $0x28] sm:$0xff]  }
 0x312   : > { %6105 = vmatpush3.bf16.msra.mxu0 %v6292_v20 }
 0x313   : > { %v3889_v2 = vpop.permute.xlu0 %3888  ;;  %6106 = vmatprep.subr.bf16.mxu0 %v6297_v9 }
 0x314   : > { %v3957_v35 = vsel %vm3914_vm1, %v3946_v38, %v3889_v2  ;;  %vm4752_vm1 = vsmask.f32 5392 }
 0x315   : > { %4141 = vmatprep.mubr.bf16.mxu1 %v3957_v35  ;;  %v7996_v35 = vld [vmem:[%s8280_s4] ss:$0 sm:$0xff] }
 0x316   : > { %4142 = vmatmul.mubr.bf16.gmra.mrb[12].mxu1 %v3925_v58  ;;  %6107 = vmatpush3.bf16.msra.mxu0 %v6298_v40 }
 0x317   : > { %6183 = vmatprep.mubr.msk.bf16.mxu1 %vm3892_vm15, %v7568_v56 }
 0x31e   : > { %6184 = vmatmul.mubr.msk.bf16.vlgmr.msra.gmra.mrb[16].mxu1 %vm3892_vm15, %v7671_v54 }
 0x31f   : > { %6187 = vmatprep.mubr.msk.bf16.mxu1 %vm3892_vm15, %v7752_v29  ;;  %6117 = vmatpush3.bf16.msra.mxu1 %v6290_v44 }
 0x320   : > { %6118 = vmatprep.subr.bf16.mxu1 %v6293_v52 }
 0x323   : > { %6119 = vmatpush3.bf16.msra.mxu1 %v6294_v17 }
 0x324   : > { %6120 = vmatprep.subr.bf16.mxu1 %v6295_v62 }
 0x326   : > { %6188 = vmatmul.mubr.msk.bf16.gmra.mrb[20].mxu1 %vm3892_vm15, %v5834_v57  ;;  %v7894_v57 = vcombine.high %v7890_v26, %v7890_v26  ;;  %vm4750_vm15 = vsmask.f32 3336 }
 0x327   : > { %6121 = vmatpush3.bf16.msra.mxu1 %v6296_v15  ;;  %vm4751_vm5 = vmor %vm4749_vm14, %vm4750_vm15 }
 0x328   : > { %v4821_v14 = vrot.slane %v7894_v57, 7  ;;  %6122 = vmatprep.subr.bf16.mxu1 %v6299_v59 }
 0x32a   : > { %v7913_v3 = vsel %vm7899_vm9, %v5890_v39, %v4821_v14 }
 0x32b   : > { %6123 = vmatpush3.bf16.msra.mxu1 %v6300_v30 }
 0x355   : > { %v6064_v34 = vpop.f32.mrb[0].mxu1 }
 0x356   : > { %v6065_v0 = vpop.f32.mrb[1].mxu1 }
 0x357   : > { %v7866_v5 = vadd.f32 %v6065_v0, %v6064_v34  ;;  %v6067_v55 = vpop.f32.mrb[2].mxu1 }
 0x358   : > { %v6068_v33 = vpop.f32.mrb[3].mxu1 }
 0x359   : > { %v7868_v18 = vadd.f32 %v6068_v33, %v6067_v55  ;;  %v4120_v34 = vadd.f32 %v7866_v5, %v7996_v35 }
 0x38d   : > { %v6070_v56 = vpop.f32.mrb[4].mxu1 }
 0x38e   : > { %v6071_v54 = vpop.f32.mrb[5].mxu1 }
 0x38f   : > { %v7882_v29 = vadd.f32 %v6071_v54, %v6070_v56  ;;  %v6073_v37 = vpop.f32.mrb[6].mxu1 }
 0x390   : > { %v6074_v21 = vpop.f32.mrb[7].mxu1 }
 0x391   : > { %v7884_v10 = vadd.f32 %v6074_v21, %v6073_v37  ;;  %v4128_v43 = vadd.f32 %v7882_v29, %v7996_v35  ;;  %v4123_v37 = vadd.f32 %v7868_v18, %v7996_v35  ;;  %v4760_v29 = vshll.u32 %v7890_v26, 16 }
 0x393   : > { %v4131_v33 = vadd.f32 %v7884_v10, %v7996_v35 }
 0x3e1   : > { %v6076_v31 = vpop.f32.mrb[8].mxu1 }
 0x3e2   : > { %v6077_v25 = vpop.f32.mrb[9].mxu1 }
 0x3e3   : > { %v6078_v11 = vadd.f32 %v6077_v25, %v6076_v31  ;;  %v6079_v27 = vpop.f32.mrb[10].mxu1 }
 0x3e4   : > { %v6080_v51 = vpop.f32.mrb[11].mxu1 }
 0x3e5   : > { %v7991_v53 = vadd.f32 %v6080_v51, %v6079_v27  ;;  %v8009_v5 = vadd.f32 %v6078_v11, %v7996_v35 }
 0x3e9   : > { %v6082_v50 = vpop.f32.mrb[12].mxu1 }
 0x3ea   : > { %v6083_v8 = vpop.f32.mrb[13].mxu1 }
 0x3eb   : > { %v6084_v28 = vadd.f32 %v6083_v8, %v6082_v50  ;;  %v6085_v23 = vpop.f32.mrb[14].mxu1 }
 0x3ec   : > { %v6086_v2 = vpop.f32.mrb[15].mxu1 }
 0x3ed   : > { %v6087_v38 = vadd.f32 %v6086_v2, %v6085_v23  ;;  %v8014_v18 = vadd.f32 %v6084_v28, %v7996_v35 }
 0x3ef   : > { %v8018_v52 = vadd.f32 %v6087_v38, %v7996_v35 }
 0x3f1   : > { %v6185_v58 = vpop.f32.mrb[16].mxu1 }
 0x3f2   : > { %v4193_v0 = vadd.f32 %v6185_v58, %v4128_v43  ;;  %v4184_v55 = vpop.f32.mrb[17].mxu1 }
 0x3f3   : > { %v4185_v56 = vadd.f32 %v4184_v55, %v4120_v34  ;;  %v6186_v54 = vpop.f32.mrb[18].mxu1 }
 0x3f4   : > { %v4217_v21 = vmax.f32 %v4193_v0, 0.0  ;;  %v4196_v39 = vadd.f32 %v6186_v54, %v4131_v33  ;;  %v4187_v14 = vpop.f32.mrb[19].mxu1 }
 0x3f5   : > { %v4215_v63 = vmax.f32 %v4185_v56, 0.0  ;;  %v4188_v42 = vadd.f32 %v4187_v14, %v4123_v37 }
 0x3f6   : > { %v4265_v10 = vcombine.high %v4217_v21, %v4217_v21  ;;  %v4272_v22 = vrot.slane %v4217_v21, %v7310_v36  ;;  %v4218_v16 = vmax.f32 %v4196_v39, 0.0 }
 0x3f7   : > { %v4231_v45 = vcombine.high %v4215_v63, %v4215_v63  ;;  %v4238_v44 = vrot.slane %v4215_v63, %v7310_v36  ;;  %v4216_v41 = vmax.f32 %v4188_v42, 0.0 }
 0x3f8   : > { %v4279_v17 = vrot.slane %v4265_v10, %v7310_v36  ;;  %v4280_v60 = vcombine.high %v4272_v22, %v4272_v22  ;;  %v4282_v62 = vcombine.high %v4218_v16, %v4218_v16  ;;  %v4289_v46 = vrot.slane %v4218_v16, %v7310_v36 }
 0x3f9   : > { %v4245_v15 = vrot.slane %v4231_v45, %v7310_v36  ;;  %v4246_v19 = vcombine.high %v4238_v44, %v4238_v44  ;;  %v4248_v59 = vcombine.high %v4216_v41, %v4216_v41  ;;  %v4255_v49 = vrot.slane %v4216_v41, %v7310_v36  ;;  %v6189_v30 = vpop.f32.mrb[20].mxu1 }
 0x3fa   : > { %v4281_v1 = vcombine.high %v4279_v17, %v4279_v17  ;;  %v4296_v12 = vrot.slane %v4282_v62, %v7310_v36  ;;  %v4297_v20 = vcombine.high %v4289_v46, %v4289_v46  ;;  %v4403_v9 = vmax.f32 %v4272_v22, %v4289_v46  ;;  %v4200_v40 = vpop.f32.mrb[21].mxu1 }
 0x3fb   : > { %v4247_v31 = vcombine.high %v4245_v15, %v4245_v15  ;;  %v4262_v25 = vrot.slane %v4248_v59, %v7310_v36  ;;  %v4263_v11 = vcombine.high %v4255_v49, %v4255_v49  ;;  %v4399_v27 = vmax.f32 %v4238_v44, %v4255_v49  ;;  %v6190_v51 = vpop.f32.mrb[22].mxu1 }
 0x3fc   : > { %v4298_v50 = vcombine.high %v4296_v12, %v4296_v12  ;;  %v4404_v8 = vmax.f32 %v4280_v60, %v4297_v20  ;;  %v4405_v28 = vmax.f32 %v4279_v17, %v4296_v12  ;;  %v5862_v23 = vrot.slane %v4403_v9, 9  ;;  %v8026_v2 = vpop.f32.mrb[23].mxu1 }
 0x3fd   : > { %v4264_v38 = vcombine.high %v4262_v25, %v4262_v25  ;;  %v4400_v43 = vmax.f32 %v4246_v19, %v4263_v11  ;;  %v4401_v58 = vmax.f32 %v4245_v15, %v4262_v25  ;;  %v5858_v34 = vrot.slane %v4399_v27, 9 }
 0x3fe   : > { %v4406_v0 = vmax.f32 %v4281_v1, %v4298_v50  ;;  %v5863_v55 = vrot.slane %v4404_v8, 9  ;;  %v5864_v33 = vrot.slane %v4405_v28, 9  ;;  %v4483_v56 = vmax.f32 %v4403_v9, %v5862_v23 }
 0x3ff   : > { %v4402_v54 = vmax.f32 %v4247_v31, %v4264_v38  ;;  %v5859_v37 = vrot.slane %v4400_v43, 9  ;;  %v5860_v21 = vrot.slane %v4401_v58, 9  ;;  %v4479_v39 = vmax.f32 %v4399_v27, %v5858_v34 }
 0x400   : > { %v5865_v14 = vrot.slane %v4406_v0, 9  ;;  %v4484_v63 = vmax.f32 %v4404_v8, %v5863_v55  ;;  %v4485_v42 = vmax.f32 %v4405_v28, %v5864_v33  ;;  %v6018_v10 = vpack.c.bf16 %v4483_v56, %v4483_v56 }
 0x401   : > { %v5861_v22 = vrot.slane %v4402_v54, 9  ;;  %v4480_v16 = vmax.f32 %v4400_v43, %v5859_v37  ;;  %v4481_v45 = vmax.f32 %v4401_v58, %v5860_v21  ;;  %v6014_v44 = vpack.c.bf16 %v4479_v39, %v4479_v39 }
 0x402   : > { %v4486_v41 = vmax.f32 %v4406_v0, %v5865_v14  ;;  %v6019_v17 = vpack.c.bf16 %v4484_v63, %v4484_v63  ;;  %v6020_v60 = vpack.c.bf16 %v4485_v42, %v4485_v42  ;;  %v4570_v62 = vunpack.c.l.b16 %v6018_v10  ;;  %v4622_v63 = vld [vmem:[#allocation3 + $0x4] sm:$0x7] }
 0x403   : > { %v4482_v46 = vmax.f32 %v4402_v54, %v5861_v22  ;;  %v6015_v15 = vpack.c.bf16 %v4480_v16, %v4480_v16  ;;  %v6016_v19 = vpack.c.bf16 %v4481_v45, %v4481_v45  ;;  %v4566_v59 = vunpack.c.l.b16 %v6014_v44 }
 0x404   : > { %v6021_v49 = vpack.c.bf16 %v4486_v41, %v4486_v41  ;;  %v4571_v1 = vunpack.c.l.b16 %v6019_v17  ;;  %v4572_v12 = vunpack.c.l.b16 %v6020_v60  ;;  %v4589_v20 = vrot.slane %v4570_v62, 7 }
 0x405   : > { %v6017_v9 = vpack.c.bf16 %v4482_v46, %v4482_v46  ;;  %v4567_v31 = vunpack.c.l.b16 %v6015_v15  ;;  %v4568_v25 = vunpack.c.l.b16 %v6016_v19  ;;  %v4582_v11 = vrot.slane %v4566_v59, 7 }
 0x406   : > { %v4573_v27 = vunpack.c.l.b16 %v6021_v49  ;;  %v4590_v50 = vrot.slane %v4571_v1, 6  ;;  %v4592_v8 = vrot.slane %v4572_v12, 5  ;;  %v4209_v28 = vadd.f32 %v6189_v30, %v8014_v18  ;;  %v6301_v18 = vld [vmem:[%s8281_s5 + $0xe0] sm:$0xff]  }
 0x407   : > { %v4569_v23 = vunpack.c.l.b16 %v6017_v9  ;;  %v4583_v38 = vrot.slane %v4567_v31, 6  ;;  %v4585_v43 = vrot.slane %v4568_v25, 5  ;;  %v4201_v58 = vadd.f32 %v4200_v40, %v8009_v5  ;;  %v4625_v5 = vld [vmem:[#allocation3 + $0x8] sm:$0x7]  ;;  %6124 = vmatprep.subr.bf16.mxu1 %v6301_v18 }
 0x408   : > { %v4591_v34 = vsel %vm3335_vm6, %v4590_v50, %v4589_v20  ;;  %v4594_v0 = vrot.slane %v4573_v27, 4  ;;  %v4221_v55 = vmax.f32 %v4209_v28, 0.0  ;;  %v4212_v33 = vadd.f32 %v6190_v51, %v8018_v52 }
 0x409   : > { %v4593_v56 = vsel %vm3338_vm7, %v4592_v8, %v4591_v34  ;;  %v4584_v54 = vsel %vm3335_vm6, %v4583_v38, %v4582_v11  ;;  %v4587_v37 = vrot.slane %v4569_v23, 4  ;;  %v4219_v21 = vmax.f32 %v4201_v58, 0.0 }
 0x40a   : > { %v4595_v39 = vsel %vm3341_vm8, %v4594_v0, %v4593_v56  ;;  %v4586_v30 = vsel %vm3338_vm7, %v4585_v43, %v4584_v54  ;;  %v4333_v40 = vcombine.high %v4221_v55, %v4221_v55  ;;  %v4875_v52 = vshll.u32 %v7909_v24, 16 }
 0x40b   : > { %v4611_v51 = vpack.c.b16 %v4595_v39, %v4595_v39  ;;  %v4588_v14 = vsel %vm3341_vm8, %v4587_v37, %v4586_v30  ;;  %v4299_v42 = vcombine.high %v4219_v21, %v4219_v21  ;;  %v4139_v10 = vadd.f32 %v7991_v53, %v7996_v35 }
 0x40c   : > { %v4610_v22 = vpack.c.b16 %v4588_v14, %v4588_v14  ;;  %v4340_v16 = vrot.slane %v4221_v55, %v7310_v36  ;;  %v4222_v45 = vmax.f32 %v4212_v33, 0.0  ;;  %v8049_v44 = vrot.slane %v4757_v13, 6 }
 0x40d   : > { %v4626_v41 = vsel %vm8037_vm13, %v4611_v51, %v4625_v5  ;;  %v4347_v17 = vrot.slane %v4333_v40, %v7310_v36  ;;  %v4306_v60 = vrot.slane %v4219_v21, %v7310_v36  ;;  %v4204_v62 = vadd.f32 %v8026_v2, %v4139_v10 }
 0x40e   : > { %4627 = vst [vmem:[#allocation3 + $0x8] sm:$0x7] %v4626_v41  ;;  %v4623_v53 = vsel %vm8037_vm13, %v4610_v22, %v4622_v63  ;;  %v4350_v35 = vcombine.high %v4222_v45, %v4222_v45  ;;  %v4357_v46 = vrot.slane %v4222_v45, %v7310_v36  ;;  %v8061_v13 = vrot.slane %v4760_v29, 7 }
 0x40f   : > { %4624 = vst [vmem:[#allocation3 + $0x4] sm:$0x7] %v4623_v53  ;;  %v4313_v15 = vrot.slane %v4299_v42, %v7310_v36  ;;  %v4220_v19 = vmax.f32 %v4204_v62, 0.0  ;;  %v8066_v59 = vrot.slane %v4872_v48, 6  ;;  %v8068_v2 = vrot.slane %v4875_v52, 7 }
 0x410   : > { %v4348_v49 = vcombine.high %v4340_v16, %v4340_v16  ;;  %v4364_v1 = vrot.slane %v4350_v35, %v7310_v36  ;;  %v4365_v12 = vcombine.high %v4357_v46, %v4357_v46  ;;  %v4411_v20 = vmax.f32 %v4340_v16, %v4357_v46 }
 0x411   : > { %v4349_v9 = vcombine.high %v4347_v17, %v4347_v17  ;;  %v4314_v31 = vcombine.high %v4306_v60, %v4306_v60  ;;  %v4316_v26 = vcombine.high %v4220_v19, %v4220_v19  ;;  %v4323_v29 = vrot.slane %v4220_v19, %v7310_v36 }
 0x412   : > { %v4366_v25 = vcombine.high %v4364_v1, %v4364_v1  ;;  %v4412_v11 = vmax.f32 %v4348_v49, %v4365_v12  ;;  %v4413_v27 = vmax.f32 %v4347_v17, %v4364_v1  ;;  %v5870_v50 = vrot.slane %v4411_v20, 9 }
 0x413   : > { %v4315_v8 = vcombine.high %v4313_v15, %v4313_v15  ;;  %v4330_v24 = vrot.slane %v4316_v26, %v7310_v36  ;;  %v4331_v48 = vcombine.high %v4323_v29, %v4323_v29  ;;  %v4407_v28 = vmax.f32 %v4306_v60, %v4323_v29 }
 0x414   : > { %v4414_v23 = vmax.f32 %v4349_v9, %v4366_v25  ;;  %v5871_v38 = vrot.slane %v4412_v11, 9  ;;  %v5872_v43 = vrot.slane %v4413_v27, 9  ;;  %v4491_v58 = vmax.f32 %v4411_v20, %v5870_v50 }
 0x415   : > { %v4332_v34 = vcombine.high %v4330_v24, %v4330_v24  ;;  %v4408_v0 = vmax.f32 %v4314_v31, %v4331_v48  ;;  %v4409_v55 = vmax.f32 %v4313_v15, %v4330_v24  ;;  %v5866_v33 = vrot.slane %v4407_v28, 9  ;;  %v8075_v19 = vld [vmem:[#allocation3 + $0x8] sm:$0x7] }
 0x416   : > { %v5873_v56 = vrot.slane %v4414_v23, 9  ;;  %v4492_v54 = vmax.f32 %v4412_v11, %v5871_v38  ;;  %v4493_v37 = vmax.f32 %v4413_v27, %v5872_v43  ;;  %v6026_v21 = vpack.c.bf16 %v4491_v58, %v4491_v58  ;;  %v8073_v45 = vld [vmem:[#allocation3 + $0x4] sm:$0x7] }
 0x417   : > { %v4410_v39 = vmax.f32 %v4315_v8, %v4332_v34  ;;  %v5867_v5 = vrot.slane %v4408_v0, 9  ;;  %v5868_v30 = vrot.slane %v4409_v55, 9  ;;  %v4487_v40 = vmax.f32 %v4407_v28, %v5866_v33 }
 0x418   : > { %v4494_v52 = vmax.f32 %v4414_v23, %v5873_v56  ;;  %v6027_v51 = vpack.c.bf16 %v4492_v54, %v4492_v54  ;;  %v6028_v14 = vpack.c.bf16 %v4493_v37, %v4493_v37  ;;  %v4578_v63 = vunpack.c.l.b16 %v6026_v21  ;;  %v4631_v23 = vld [vmem:[#allocation3 + $0x10] sm:$0x7] }
 0x419   : > { %v5869_v42 = vrot.slane %v4410_v39, 9  ;;  %v4488_v10 = vmax.f32 %v4408_v0, %v5867_v5  ;;  %v4489_v22 = vmax.f32 %v4409_v55, %v5868_v30  ;;  %v6022_v16 = vpack.c.bf16 %v4487_v40, %v4487_v40 }
 0x41a   : > { %v6029_v41 = vpack.c.bf16 %v4494_v52, %v4494_v52  ;;  %v4579_v17 = vunpack.c.l.b16 %v6027_v51  ;;  %v4580_v60 = vunpack.c.l.b16 %v6028_v14  ;;  %v4603_v62 = vrot.slane %v4578_v63, 7 }
 0x41b   : > { %v4490_v53 = vmax.f32 %v4410_v39, %v5869_v42  ;;  %v6023_v35 = vpack.c.bf16 %v4488_v10, %v4488_v10  ;;  %v6024_v46 = vpack.c.bf16 %v4489_v22, %v4489_v22  ;;  %v4574_v15 = vunpack.c.l.b16 %v6022_v16 }
 0x41c   : > { %v4581_v49 = vunpack.c.l.b16 %v6029_v41  ;;  %v4604_v1 = vrot.slane %v4579_v17, 6  ;;  %v4606_v12 = vrot.slane %v4580_v60, 5  ;;  %v4731_v20 = vrot.slane %v8073_v45, %v7310_v36 }
 0x41d   : > { %v6025_v9 = vpack.c.bf16 %v4490_v53, %v4490_v53  ;;  %v4575_v31 = vunpack.c.l.b16 %v6023_v35  ;;  %v4576_v26 = vunpack.c.l.b16 %v6024_v46  ;;  %v4596_v11 = vrot.slane %v4574_v15, 7 }
 0x41e   : > { %v4605_v29 = vsel %vm3335_vm6, %v4604_v1, %v4603_v62  ;;  %v4608_v25 = vrot.slane %v4581_v49, 4  ;;  %v8082_v27 = vrot.slane %v8075_v19, %v7310_v36  ;;  %v4732_v38 = vcombine.high %v4731_v20, %v4731_v20 }
 0x41f   : > { %v4607_v50 = vsel %vm3338_vm7, %v4606_v12, %v4605_v29  ;;  %v4577_v8 = vunpack.c.l.b16 %v6025_v9  ;;  %v4597_v24 = vrot.slane %v4575_v31, 6  ;;  %v4599_v48 = vrot.slane %v4576_v26, 5  ;;  %v6304_v9 = vld [vmem:[%s8281_s5 + $0x38] sm:$0xff]   ;;  %v6305_v31 = vld [vmem:[%s8281_s5 + $0xe8] sm:$0xff]  }
 0x420   : > { %v4609_v28 = vsel %vm3341_vm8, %v4608_v25, %v4607_v50  ;;  %v8088_v43 = vcombine.high %v8082_v27, %v8082_v27  ;;  %v4878_v58 = vor.u32 %v8068_v2, %v8066_v59  ;;  %v4771_v33 = vshrl.u32 %v4731_v20, 16  ;;  %v4628_v2 = vld [vmem:[#allocation3 + $0xc] sm:$0x7]  ;;  %v6306_v25 = vld [vmem:[%s8281_s5 + $0xa8] sm:$0xff]  }
 0x421   : > { %v4613_v34 = vpack.c.b16 %v4609_v28, %v4609_v28  ;;  %v4598_v0 = vsel %vm3335_vm6, %v4597_v24, %v4596_v11  ;;  %v4601_v55 = vrot.slane %v4577_v8, 4  ;;  %v4774_v54 = vshll.u32 %v4731_v20, 16  ;;  %vm4753_vm6 = vmor %vm4751_vm5, %vm4752_vm1 }
 0x422   : > { %v4600_v56 = vsel %vm3338_vm7, %v4599_v48, %v4598_v0  ;;  %v4785_v37 = vshrl.u32 %v8082_v27, 16  ;;  %v4881_v21 = vshll.u32 %v7917_v32, 16  ;;  %v4773_v5 = vrot.slane %v4771_v33, 6 }
 0x423   : > { %v4632_v39 = vsel %vm8037_vm13, %v4613_v34, %v4631_v23  ;;  %v4602_v59 = vsel %vm3341_vm8, %v4601_v55, %v4600_v56  ;;  %v4788_v30 = vshll.u32 %v8082_v27, 16  ;;  %v4776_v52 = vrot.slane %v4774_v54, 7  ;;  %vm8109_vm8 = vmor %vm4753_vm6, %vm4754_vm4 }
 0x424   : > { %4633 = vst [vmem:[#allocation3 + $0x10] sm:$0x7] %v4632_v39  ;;  %v4612_v40 = vpack.c.b16 %v4602_v59, %v4602_v59  ;;  %v4780_v51 = vshll.u32 %v4732_v38, 16  ;;  %v4787_v14 = vrot.slane %v4785_v37, 6  ;;  %v4794_v42 = vshll.u32 %v8088_v43, 16 }
 0x425   : > { %v4790_v63 = vrot.slane %v4788_v30, 7  ;;  %v5891_v32 = vrot.slane %v4731_v20, 9  ;;  %v4825_v10 = vrot.slane %v4732_v38, 7  ;;  %v4763_v16 = vor.u32 %v8061_v13, %v8049_v44  ;;  %v6303_v20 = vld [vmem:[%s8281_s5 + $0x78] sm:$0xff]  }
 0x426   : > { %v4629_v22 = vsel %vm8037_vm13, %v4612_v40, %v4628_v2  ;;  %v4777_v41 = vor.u32 %v4776_v52, %v4773_v5  ;;  %v4766_v60 = vshll.u32 %v7894_v57, 16  ;;  %v8114_v53 = vrot.slane %v4878_v58, 2  ;;  %v6302_v57 = vld [vmem:[%s8281_s5 + $0xa0] sm:$0xff]   ;;  %6108 = vmatprep.subr.bf16.mxu0 %v6303_v20 }
 0x427   : > { %4630 = vst [vmem:[#allocation3 + $0xc] sm:$0x7] %v4629_v22  ;;  %v4791_v62 = vor.u32 %v4790_v63, %v4787_v14  ;;  %v8118_v35 = vsel %vm7899_vm9, %v5891_v32, %v4825_v10  ;;  %v4782_v13 = vrot.slane %v4780_v51, 7  ;;  %v8123_v46 = vrot.slane %v4881_v21, 7  ;;  %6125 = vmatpush3.bf16.msra.mxu1 %v6302_v57  ;;  %6109 = vmatpush3.bf16.msra.mxu0 %v6304_v9 }
 0x428   : > { %v4778_v44 = vrot.slane %v4777_v41, 2  ;;  %v4925_v15 = vcombine.low %v7913_v3, %v8118_v35  ;;  %v4942_v49 = vcombine.low %v8073_v45, %v8075_v19  ;;  %v4796_v12 = vrot.slane %v4794_v42, 7  ;;  %6126 = vmatprep.subr.bf16.mxu1 %v6305_v31 }
 0x429   : > { %v4792_v1 = vrot.slane %v4791_v62, 2  ;;  %v4889_v26 = vcombine.low %v7886_v47, %v8073_v45  ;;  %v8150_v50 = vrot.slane %v4763_v16, 2  ;;  %v8152_v8 = vrot.slane %v4766_v60, 7  ;;  %v6307_v47 = vld [vmem:[%s8281_s5 + $0xf0] sm:$0xff]  }
 0x42a   : > { %v8145_v29 = vsel %vm8109_vm8, %v4778_v44, %v4782_v13  ;;  %v4884_v48 = vsel %vm8109_vm8, %v8114_v53, %v8123_v46  ;;  %v4950_v38 = vrot.slane %v4942_v49, %v7310_v36  ;;  %v5892_v58 = vrot.slane %v8082_v27, 9  ;;  %v6311_v44 = vld [vmem:[%s8281_s5 + $0xf8] sm:$0xff]  }
 0x42b   : > { %v4638_v11 = vld [vmem:[#allocation3 + $0x10] sm:$0x7]  ;;  %v8156_v24 = vsel %vm8109_vm8, %v4792_v1, %v4796_v12  ;;  %v4829_v34 = vrot.slane %v8088_v43, 7  ;;  %v8173_v0 = vrot.slane %v4889_v26, %v7310_v36  ;;  %6127 = vmatpush3.bf16.msra.mxu1 %v6306_v25  ;;  %v4769_v13 = vsel %vm8109_vm8, %v8150_v50, %v8152_v8 }
 0x42c   : > { %v4842_v45 = vrot.slane %v4638_v11, %v7310_v36  ;;  %v4997_v28 = vcombine.low %v4638_v11, %v7905_v6  ;;  %v4961_v23 = vcombine.low %v8145_v29, %v8156_v24  ;;  %v6308_v6 = vld [vmem:[%s8281_s5 + $0xb0] sm:$0xff]   ;;  %6128 = vmatprep.subr.bf16.mxu1 %v6307_v47  ;;  %v6343_v9 = vmov 0.0  }
 0x42d   : > { %v4830_v57 = vsel %vm7899_vm9, %v5892_v58, %v4829_v34  ;;  %6191 = vmatprep.subr.bf16.mxu0 %v6343_v9  ;;  %v4906_v50 = vcombine.low %v4769_v13, %v8145_v29  ;;  %v4933_v47 = vrot.slane %v4925_v15, %v7310_v36 }
 0x42e   : > { %v4637_v55 = vld [vmem:[#allocation3 + $0xc] sm:$0x7]  ;;  %v4843_v33 = vcombine.high %v4842_v45, %v4842_v45  ;;  %v4845_v56 = vshrl.u32 %v4842_v45, 16  ;;  %v4848_v54 = vshll.u32 %v4842_v45, 16  ;;  %v5894_v37 = vrot.slane %v4842_v45, 9 }
 0x42f   : > { %v4747_v21 = vrot.slane %v4637_v55, %v7310_v36  ;;  %v4943_v39 = vcombine.low %v4637_v55, %v4638_v11  ;;  %v4890_v27 = vcombine.low %v8075_v19, %v4637_v55  ;;  %v8181_v43 = vrot.slane %v4997_v28, %v7310_v36  ;;  %6129 = vmatpush3.bf16.msra.mxu1 %v6308_v6 }
 0x430   : > { %v4847_v59 = vrot.slane %v4845_v56, 6  ;;  %v4850_v2 = vrot.slane %v4848_v54, 7  ;;  %v4854_v5 = vshll.u32 %v4843_v33, 16  ;;  %v4860_v30 = vrot.slane %v4843_v33, 7  ;;  %6130 = vmatprep.subr.bf16.mxu1 %v6311_v44 }
 0x431   : > { %v4957_v40 = vrot.slane %v4943_v39, %v7310_v36  ;;  %v4748_v52 = vcombine.high %v4747_v21, %v4747_v21  ;;  %v4799_v51 = vshrl.u32 %v4747_v21, 16  ;;  %v4802_v14 = vshll.u32 %v4747_v21, 16 }
 0x432   : > { %v4851_v63 = vor.u32 %v4850_v2, %v4847_v59  ;;  %v4856_v42 = vrot.slane %v4854_v5, 7  ;;  %v5893_v32 = vrot.slane %v4747_v21, 9  ;;  %v4861_v10 = vsel %vm7899_vm9, %v5894_v37, %v4860_v30  ;;  %v6315_v2 = vld [vmem:[%s8281_s5 + $0x108] sm:$0xff]  }
 0x433   : > { %v4958_v19 = vcombine.low %v4950_v38, %v4957_v40  ;;  %v4801_v22 = vrot.slane %v4799_v51, 6  ;;  %v4804_v16 = vrot.slane %v4802_v14, 7  ;;  %v4808_v41 = vshll.u32 %v4748_v52, 16  ;;  %v6316_v40 = vld [vmem:[%s8281_s5 + $0x110] sm:$0xff]  }
 0x434   : > { %v4852_v60 = vrot.slane %v4851_v63, 2  ;;  %v4833_v62 = vrot.slane %v4748_v52, 7  ;;  %v5017_v53 = vcombine.low %v4861_v10, %v7923_v7  ;;  %v4904_v18 = vrot.slane %v4890_v27, %v7310_v36  ;;  %v6314_v7 = vld [vmem:[%s8281_s5 + $0xb8] sm:$0xff]  }
 0x435   : > { %4959 = vrot.lane.b32.xlu0 %v4958_v19, %s6340_s21  ;;  %v4805_v46 = vor.u32 %v4804_v16, %v4801_v22  ;;  %v4810_v49 = vrot.slane %v4808_v41, 7  ;;  %6131 = vmatpush3.bf16.msra.mxu1 %v6314_v7  ;;  %v4978_v34 = vcombine.low %v8118_v35, %v4830_v57  ;;  %v4914_v17 = vrot.slane %v4906_v50, %v7310_v36  ;;  %v6317_v52 = vld [vmem:[%s8281_s5 + $0x118] sm:$0xff]  }
 0x436   : > { %v4857_v1 = vsel %vm8109_vm8, %v4852_v60, %v4856_v42  ;;  %v4834_v12 = vsel %vm7899_vm9, %v5893_v32, %v4833_v62  ;;  %v4905_v20 = vcombine.low %v8173_v0, %v4904_v18  ;;  %v5024_v11 = vrot.slane %v5017_v53, %v7310_v36  ;;  %v5896_v32 = vld [vmem:[%s8282_s6] ss:$0 sm:$0xff] }
 0x437   : > { %v4806_v31 = vrot.slane %v4805_v46, 2  ;;  %v5006_v26 = vcombine.low %v4857_v1, %v4884_v48  ;;  %v4926_v25 = vcombine.low %v4830_v57, %v4834_v12  ;;  %v5005_v8 = vcombine.low %v4904_v18, %v8181_v43 }
 0x438   : > { %v4979_v38 = vcombine.low %v4834_v12, %v4861_v10  ;;  %v4969_v3 = vrot.slane %v4961_v23, %v7310_v36  ;;  %v4986_v35 = vrot.slane %v4978_v34, %v7310_v36 }
 0x439   : > { %v4811_v61 = vsel %vm8109_vm8, %v4806_v31, %v4810_v49  ;;  %v4940_v45 = vrot.slane %v4926_v25, %v7310_v36  ;;  %v5013_v28 = vrot.slane %v5006_v26, %v7310_v36 }
 0x43a   : > { %v4907_v48 = vcombine.low %v8156_v24, %v4811_v61  ;;  %v4962_v58 = vcombine.low %v4811_v61, %v4857_v1  ;;  %v4993_v37 = vrot.slane %v4979_v38, %v7310_v36  ;;  %v6313_v24 = vld [vmem:[%s8281_s5 + $0x100] sm:$0xff]  }
 0x43b   : > { %v4941_v0 = vcombine.low %v4933_v47, %v4940_v45  ;;  %v5025_v55 = vcombine.low %v4940_v45, %v5024_v11 }
 0x43c   : > { %v4921_v33 = vrot.slane %v4907_v48, %v7310_v36  ;;  %v4976_v15 = vrot.slane %v4962_v58, %v7310_v36  ;;  %v4994_v21 = vcombine.low %v4986_v35, %v4993_v37 }
 0x43e   : > { %v4922_v56 = vcombine.low %v4914_v17, %v4921_v33  ;;  %v5014_v54 = vcombine.low %v4921_v33, %v5013_v28  ;;  %v4977_v6 = vcombine.low %v4969_v3, %v4976_v15 }
 0x440   : > { %4923 = vrot.lane.b32.xlu1 %v4922_v56, %s6340_s21  ;;  %5015 = vrot.lane.b32.xlu0 %v5014_v54, %s6340_s21  ;;  %v6345_v54 = vmov 1934713408  }
 0x441   : > { %v5483_v37 = vunpack.c.l.s4 %v6345_v54 }
 0x444   : > { %4995 = vrot.lane.b32.xlu1 %v4994_v21, %s6340_s21 }
 0x4a7   : > { %v4960_v39 = vpop.permute.xlu0 %4959 }
 0x4a8   : > { %v5032_v29 = vsel %vm3905_vm0, %v4941_v0, %v4960_v39 }
 0x4a9   : > { %5299 = vmatprep.mubr.bf16.mxu0 %v5032_v29 }
 0x4b2   : > { %v4924_v23 = vpop.permute.xlu1 %4923  ;;  %v5016_v27 = vpop.permute.xlu0 %5015 }
 0x4b3   : > { %v5028_v43 = vsel %vm3905_vm0, %v4905_v20, %v4924_v23  ;;  %v5040_v59 = vsel %vm3905_vm0, %v5005_v8, %v5016_v27 }
 0x4b4   : > { %5300 = vmatmul.mubr.bf16.vlgmr.msra.gmra.mrb[32].mxu0 %v5028_v43  ;;  %5340 = vmatprep.mubr.bf16.mxu1 %v5040_v59  ;;  %v6346_v59 = vmov 1966171168  }
 0x4b5   : > { %6192 = vmatpush3.bf16.msra.mxu0 %v6313_v24  ;;  %6199 = vmatprep.mubr.msk.bf16.mxu0 %vm6344_vm2, %v6343_v9  ;;  %v5484_v24 = vunpack.c.0.s8 %v5483_v37 }
 0x4b6   : > { %v4996_v5 = vpop.permute.xlu1 %4995  ;;  %6193 = vmatprep.subr.bf16.mxu0 %v6343_v9 }
 0x4b7   : > { %v5036_v30 = vsel %vm3905_vm0, %v4977_v6, %v4996_v5 }
 0x4b8   : > { %5341 = vmatmul.mubr.bf16.vlgmr.msra.gmra.mrb[24].mxu1 %v5036_v30 }
 0x4b9   : > { %6194 = vmatpush3.bf16.msra.mxu0 %v6315_v2  ;;  %v5496_v2 = vunpack.c.l.s4 %v6346_v59 }
 0x4ba   : > { %6195 = vmatprep.subr.bf16.mxu0 %v6343_v9 }
 0x4bd   : > { %6196 = vmatpush3.bf16.msra.mxu0 %v6316_v40  ;;  %v5487_v40 = vsub.s32 %v5484_v24, %v7294_v4 }
 0x4be   : > { %6197 = vmatprep.subr.bf16.mxu0 %v6343_v9 }
 0x4c1   : > { %6198 = vmatpush3.bf16.msra.mxu0 %v6317_v52 }
 0x4c4   : > { %6200 = vmatmul.mubr.msk.bf16.vlgmr.msra.gmra.mrb[36].mxu0 %vm3905_vm0, %v5025_v55  ;;  %vm5467_vm0 = vcmask 1041409  }
 0x587   : > { %v6110_v51 = vpop.f32.mrb[32].mxu0 }
 0x588   : > { %v6111_v14 = vpop.f32.mrb[33].mxu0 }
 0x589   : > { %v6112_v63 = vadd.f32 %v6111_v14, %v6110_v51  ;;  %v6113_v42 = vpop.f32.mrb[34].mxu0 }
 0x58a   : > { %v6114_v10 = vpop.f32.mrb[35].mxu0 }
 0x58b   : > { %v6115_v19 = vadd.f32 %v6114_v10, %v6113_v42  ;;  %v6132_v22 = vpop.f32.mrb[24].mxu1  ;;  %v5302_v41 = vadd.f32 %v6112_v63, %v5896_v32  ;;  %v5497_v63 = vunpack.c.0.s8 %v5496_v2 }
 0x58c   : > { %v6133_v16 = vpop.f32.mrb[25].mxu1 }
 0x58d   : > { %v6134_v60 = vadd.f32 %v6133_v16, %v6132_v22  ;;  %v6135_v62 = vpop.f32.mrb[26].mxu1  ;;  %v5305_v18 = vadd.f32 %v6115_v19, %v5896_v32  ;;  %v5500_v10 = vsub.s32 %v5497_v63, %v7294_v4 }
 0x58e   : > { %v6136_v53 = vpop.f32.mrb[27].mxu1 }
 0x58f   : > { %v6137_v44 = vadd.f32 %v6136_v53, %v6135_v62  ;;  %v5343_v13 = vadd.f32 %v6134_v60, %v5302_v41 }
 0x591   : > { %v5346_v46 = vadd.f32 %v6137_v44, %v5305_v18 }
 0x597   : > { %v5383_v57 = vpop.f32.mrb[36].mxu0 }
 0x598   : > { %v5384_v7 = vadd.f32 %v5383_v57, %v5343_v13  ;;  %v6201_v49 = vpop.f32.mrb[37].mxu0 }
 0x599   : > { %v5386_v1 = vpop.f32.mrb[38].mxu0 }
 0x59a   : > { %v5390_v12 = vmax.f32 %v5384_v7, 0.0  ;;  %v5387_v20 = vadd.f32 %v5386_v1, %v5346_v46  ;;  %v6202_v31 = vpop.f32.mrb[39].mxu0 }
 0x59c   : > { %v5394_v26 = vcombine.high %v5390_v12, %v5390_v12  ;;  %v5401_v25 = vrot.slane %v5390_v12, %v7310_v36  ;;  %v5391_v11 = vmax.f32 %v5387_v20, 0.0 }
 0x59e   : > { %v5408_v50 = vrot.slane %v5394_v26, %v7310_v36  ;;  %v5411_v8 = vcombine.high %v5391_v11, %v5391_v11  ;;  %v5418_v61 = vrot.slane %v5391_v11, %v7310_v36  ;;  %v5409_v47 = vcombine.high %v5401_v25, %v5401_v25 }
 0x5a0   : > { %v5410_v45 = vcombine.high %v5408_v50, %v5408_v50  ;;  %v5436_v48 = vmax.f32 %v5401_v25, %v5408_v50  ;;  %v5425_v28 = vrot.slane %v5411_v8, %v7310_v36  ;;  %v5426_v58 = vcombine.high %v5418_v61, %v5418_v61 }
 0x5a2   : > { %v5437_v38 = vmax.f32 %v5409_v47, %v5410_v45  ;;  %v5427_v34 = vcombine.high %v5425_v28, %v5425_v28  ;;  %v5438_v0 = vmax.f32 %v5418_v61, %v5425_v28  ;;  %v5934_v55 = vrot.slane %v5436_v48, 9 }
 0x5a4   : > { %v5935_v17 = vrot.slane %v5437_v38, 9  ;;  %v5439_v33 = vmax.f32 %v5426_v58, %v5427_v34  ;;  %v5936_v15 = vrot.slane %v5438_v0, 9  ;;  %v5456_v6 = vmax.f32 %v5436_v48, %v5934_v55 }
 0x5a6   : > { %v5457_v3 = vmax.f32 %v5437_v38, %v5935_v17  ;;  %v5937_v56 = vrot.slane %v5439_v33, 9  ;;  %v5458_v29 = vmax.f32 %v5438_v0, %v5936_v15 }
 0x5a8   : > { %v5466_v35 = vrot.slane %v5457_v3, 7  ;;  %v5459_v21 = vmax.f32 %v5439_v33, %v5937_v56 }
 0x5aa   : > { %v5468_v39 = vsel %vm5467_vm0, %v5466_v35, %v5456_v6  ;;  %v5474_v36 = vrot.slane %v5459_v21, 7 }
 0x5ab   : > { %v5469_v23 = vsel %vm3338_vm7, %v5466_v35, %v5468_v39 }
 0x5ac   : > { %v5470_v27 = vsel %vm3344_vm10, %v5466_v35, %v5469_v23  ;;  %v5475_v43 = vsel %vm5467_vm0, %v5474_v36, %v5458_v29 }
 0x5ad   : > { %v5476_v5 = vsel %vm3338_vm7, %v5474_v36, %v5475_v43  ;;  %v5471_v52 = vsel %vm3350_vm12, %v5466_v35, %v5470_v27 }
 0x5ae   : > { %v5477_v30 = vsel %vm3344_vm10, %v5474_v36, %v5476_v5 }
 0x5af   : > { %v5478_v51 = vsel %vm3350_vm12, %v5474_v36, %v5477_v30 }
 0x5b0   : > { %v5481_v14 = vcombine.low %v5471_v52, %v5478_v51 }
 0x5b2   : > { %v5488_v42 = vrot.slane %v5481_v14, %v5487_v40 }
 0x5b4   : > { %v5489_v32 = vcombine.high %v5488_v42, %v6343_v9 }
 0x5b6   : > { %v5938_v19 = vpack.c.bf16 %v5489_v32, %v5488_v42 }
 0x5b8   : > { %v5501_v22 = vrot.slane %v5938_v19, %v5500_v10 }
 0x5ba   : > { %5939 = vst.sshfl [vmem:[%s276_s23] sm:$0x5 pattern:$0x73625140] %v5501_v22 }
 0x5bb PF: > { %s17_s24 = sadd.s32 1, %s6327_s24  }
 0x5bc   : > { %p14_p4 = scmp.ge.s32.totalorder %s17_s24, 4  }
 0x5be   :  { %16 = sbr.rel (!%p14_p4) target bundleno = 1 (0x1), region = 80 }

</bundles_post_ra>
